<compile_context>
chip_gen: v5e
topology: v5e:2x2
jax: 0.10.0
libtpu: 0.0.40
codegen_flags: <defaults>
</compile_context>

<pallas_src>
import numpy as np
import jax
import jax.numpy as jnp
from jax.experimental import pallas as pl
from jax.experimental.pallas import tpu as pltpu

BN_EPS = 1e-5
F32 = jnp.float32
BF16 = jnp.bfloat16


# ------------------------------ fused kernel --------------------------------

def _aggregation_kernel(
    # per-batch activations, lane-dense (H, W*C) layout
    x1_ref, x2_ref, x3_ref, m2_ref,
    # bilinear upsample matrices
    uh12_ref, mw12c_ref, uh23_ref, mw23c_ref, mw23cc_ref,
    # +/-1 row-shift matrices [down, up] for the two spatial heights
    sh2_ref, sh3_ref,
    # block-banded conv matrices (bf16) + folded-BN bias rows (f32)
    B14_ref, b14_ref, Bc2_ref, bc2_ref, B5_ref, b5_ref,
    B2_ref, b2_ref, B3_ref, b3_ref, Bc3_ref, bc3_ref,
    B41f_ref, b41f_ref,
    # per-pixel channel-broadcast matrix for the sigmoid gate
    Eg_ref,
    # outputs
    r1_ref, r2_ref,
):
    def mm(a, b):
        return jnp.dot(a.astype(BF16), b.astype(BF16),
                       preferred_element_type=F32)

    def bconv(act, b_ref, sh_ref, bias):
        # 3x3 same-pad conv + folded inference BN.  The dx taps and the column
        # zero-padding are baked into the banded matrices; the +/-1 dy row
        # shift (with zeroed edge rows) is two tiny shift-matrix matmuls.
        a = act.astype(BF16)
        t0 = jnp.dot(a, b_ref[0], preferred_element_type=F32)
        t1 = jnp.dot(a, b_ref[1], preferred_element_type=F32)
        t2 = jnp.dot(a, b_ref[2], preferred_element_type=F32)
        return mm(sh_ref[0], t0) + t1 + mm(sh_ref[1], t2) + bias

    uh23 = uh23_ref[...]
    mw23c = mw23c_ref[...]

    # ---- bilinear 2x upsamples (separable, as matmuls) ----
    x1 = x1_ref[...]                                            # (h1, w1*c)
    x1_up = mm(mm(uh12_ref[...], x1), mw12c_ref[...])           # (h2, w2*c)
    x1_upup = mm(mm(uh23, x1_up), mw23c)                        # (h3, w3*c)
    x2_up = mm(mm(uh23, x2_ref[...]), mw23c)                    # (h3, w3*c)

    # ---- x2 branch: [conv_upsample1 * x2 || conv_upsample4] -> conv_concat2
    # (the two convs are fused into one banded matrix; m2 = [x2 | ones] applies
    #  the multiply only to the conv_upsample1 half of each pixel.)
    x22 = bconv(x1_up, B14_ref, sh2_ref, b14_ref[...]) * m2_ref[...]   # (h2, w2*2c)
    x2_2 = bconv(x22, Bc2_ref, sh2_ref, bc2_ref[...])                  # (h2, w2*2c)

    # ---- upsample x2_2, conv_upsample5
    ux22 = mm(mm(uh23, x2_2), mw23cc_ref[...])                         # (h3, w3*2c)
    up5 = bconv(ux22, B5_ref, sh3_ref, b5_ref[...])                    # (h3, w3*2c)

    # ---- x3 branch: conv_upsample2(x1_upup) * conv_upsample3(x2_up) * x3
    x3_1 = (bconv(x1_upup, B2_ref, sh3_ref, b2_ref[...])
            * bconv(x2_up, B3_ref, sh3_ref, b3_ref[...])
            * x3_ref[...])                                             # (h3, w3*c)

    # ---- conv_concat3 over the block-layout lane concat [x3_1 | up5]
    cat3 = jnp.concatenate([x3_1.astype(BF16), up5.astype(BF16)], axis=1)
    x3_2 = bconv(cat3, Bc3_ref, sh3_ref, bc3_ref[...])                 # (h3, w3*3c)

    # ---- head 1: conv4_1 with conv5_1 folded in
    b41f = b41f_ref[...]
    x_r1 = bconv(x3_2, B41f_ref, sh3_ref, b41f)                        # (h3, w3)
    r1_ref[...] = x_r1

    # ---- head 2: sigmoid gate broadcast over 3c channels, same folded conv
    gate = mm(jax.nn.sigmoid(x_r1), Eg_ref[...])                       # (h3, w3*3c)
    r2_ref[...] = bconv(gate * x3_2, B41f_ref, sh3_ref, b41f)


# -------------------------- weight preprocessing ----------------------------

def _up_matrix(n_in):
    """1D bilinear 2x upsample matrix (align_corners=True): (2n, n)."""
    n_out = 2 * n_in
    src = np.arange(n_out, dtype=np.float64) * (n_in - 1) / (n_out - 1)
    i0 = np.clip(np.floor(src).astype(np.int64), 0, max(n_in - 2, 0))
    frac = src - i0
    i1 = np.clip(i0 + 1, 0, n_in - 1)
    U = np.zeros((n_out, n_in), np.float32)
    U[np.arange(n_out), i0] += (1.0 - frac)
    U[np.arange(n_out), i1] += frac
    return U


def _banded(w9, scale, bias, width):
    """Block-banded matrices for a 3x3 same-pad conv in (H, W*C) layout.

    Direct transcription of cross-correlation: out[:, wo] += w[ky, kx] applied
    to in[:, wo + kx - 1]  =>  B[ky][wi*cin:(wi+1)*cin, wo*cout:(wo+1)*cout]
    = w[ky, kx] with wi = wo + kx - 1 (out-of-range columns dropped = zero pad).
    Inference-BN scale is folded into B, BN bias tiled into a (1, width*cout) row.
    """
    w9 = np.asarray(w9, np.float32) * np.asarray(scale, np.float32)[0][None, None, :]
    cin, cout = w9.shape[1], w9.shape[2]
    w = w9.reshape(3, 3, cin, cout)                 # (ky, kx, ci, co)
    B = np.zeros((3, width * cin, width * cout), np.float32)
    for ky in range(3):
        for kx in range(3):
            for wo in range(width):
                wi = wo + kx - 1
                if 0 <= wi < width:
                    B[ky, wi * cin:(wi + 1) * cin,
                          wo * cout:(wo + 1) * cout] = w[ky, kx]
    brow = np.tile(np.asarray(bias, np.float32)[0], width)[None, :]
    return B, brow


def prepare(params, channel, h1, w1):
    """One-time conversion of module params into the matrices the kernel uses."""
    c = channel
    h2, w2 = 2 * h1, 2 * w1
    h3, w3 = 4 * h1, 4 * w1

    def kron_w(U, ch):                      # kron(U_w^T, I_C): width upsample
        return np.kron(U.T, np.eye(ch, dtype=np.float32))

    uh12, uw12 = _up_matrix(h1), _up_matrix(w1)
    uh23, uw23 = _up_matrix(h2), _up_matrix(w2)

    def shifts(h):                          # [D, U]: (D@t)[r]=t[r-1], (U@t)[r]=t[r+1]
        return np.stack([np.eye(h, k=-1), np.eye(h, k=1)]).astype(np.float32)

    # conv_upsample1 || conv_upsample4 fused (both consume x1_up)
    w1_, s1_, b1_ = params["conv_upsample1"]
    w4_, s4_, b4_ = params["conv_upsample4"]
    w14 = np.concatenate([np.asarray(w1_), np.asarray(w4_)], axis=-1)
    s14 = np.concatenate([np.asarray(s1_), np.asarray(s4_)], axis=-1)
    bi14 = np.concatenate([np.asarray(b1_), np.asarray(b4_)], axis=-1)
    B14, b14 = _banded(w14, s14, bi14, w2)

    B2, b2 = _banded(*params["conv_upsample2"], w3)
    B3, b3 = _banded(*params["conv_upsample3"], w3)
    B5, b5 = _banded(*params["conv_upsample5"], w3)
    Bc2, bc2 = _banded(*params["conv_concat2"], w2)

    # conv_concat3: block-layout K ([x3_1 block | up5 block]) -> interleaved out
    wc3, sc3, bic3 = params["conv_concat3"]
    wc3 = np.asarray(wc3)
    Bc3a, _ = _banded(wc3[:, :c, :], sc3, bic3, w3)       # acts on x3_1 (c chans)
    Bc3b, bc3 = _banded(wc3[:, c:, :], sc3, bic3, w3)     # acts on up5 (2c chans)
    Bc3 = np.concatenate([Bc3a, Bc3b], axis=1)            # (3, w3*3c, w3*3c)

    # conv4_1 with the 1x1 conv5_1 folded in (exact linear composition)
    B41, b41 = _banded(*params["conv4_1"], w3)
    w51, b51 = params["conv5_1"]                          # (1, 3c), (1, 1)
    P51 = np.kron(np.eye(w3, dtype=np.float32),
                  np.asarray(w51, np.float32).reshape(3 * c, 1))   # (w3*3c, w3)
    B41f = B41 @ P51                                                # (3, w3*3c, w3)
    b41f = b41 @ P51 + float(np.asarray(b51).reshape(()))          # (1, w3)

    # gate broadcast: sigmoid(x_r1) (h3, w3) -> (h3, w3*3c) per-pixel repeat
    Eg = np.kron(np.eye(w3, dtype=np.float32), np.ones((1, 3 * c), np.float32))

    tob = lambda a: jnp.asarray(a, BF16)
    tof = lambda a: jnp.asarray(a, F32)
    return dict(
        uh12=tob(uh12), mw12c=tob(kron_w(uw12, c)),
        uh23=tob(uh23), mw23c=tob(kron_w(uw23, c)), mw23cc=tob(kron_w(uw23, 2 * c)),
        sh2=tob(shifts(h2)), sh3=tob(shifts(h3)),
        B14=tob(B14), b14=tof(b14), Bc2=tob(Bc2), bc2=tof(bc2),
        B5=tob(B5), b5=tof(b5), B2=tob(B2), b2=tof(b2), B3=tob(B3), b3=tof(b3),
        Bc3=tob(Bc3), bc3=tof(bc3), B41f=tob(B41f), b41f=tof(b41f), Eg=tob(Eg),
    )


# ---------------------------- forward (one launch) ---------------------------

_WEIGHT_KEYS = ("uh12", "mw12c", "uh23", "mw23c", "mw23cc", "sh2", "sh3",
                "B14", "b14", "Bc2", "bc2", "B5", "b5",
                "B2", "b2", "B3", "b3", "Bc3", "bc3",
                "B41f", "b41f", "Eg")


def aggregation_forward(prep, x1, x2, x3):
    """x1: (B,H,W,c), x2: (B,2H,2W,c), x3: (B,4H,4W,c)  (NHWC, f32)."""
    B, h1, w1, c = x1.shape
    h2, w2 = 2 * h1, 2 * w1
    h3, w3 = 4 * h1, 4 * w1

    x1f = x1.reshape(B, h1, w1 * c)
    x2f = x2.reshape(B, h2, w2 * c)
    x3f = x3.reshape(B, h3, w3 * c)
    # [x2 | ones] multiplier: applies x2 only to the conv_upsample1 half of the
    # fused conv_upsample1||conv_upsample4 output.
    m2 = jnp.concatenate([x2, jnp.ones_like(x2)], axis=-1).reshape(B, h2, w2 * 2 * c)

    def aspec(h, n):        # batched 2D activation, full block per batch element
        return pl.BlockSpec((None, h, n), lambda b: (b, 0, 0))

    def wspec(a):           # shared weights/matrices: full block, constant index
        return pl.BlockSpec(a.shape, lambda b, _n=a.ndim: (0,) * _n)

    weights = [prep[k] for k in _WEIGHT_KEYS]
    in_arrays = [x1f, x2f, x3f, m2] + weights
    in_specs = [aspec(h1, w1 * c), aspec(h2, w2 * c),
                aspec(h3, w3 * c), aspec(h2, w2 * 2 * c)]
    in_specs += [wspec(a) for a in weights]

    r1, r2 = pl.pallas_call(
        _aggregation_kernel,
        out_shape=(jax.ShapeDtypeStruct((B, h3, w3), F32),
                   jax.ShapeDtypeStruct((B, h3, w3), F32)),
        grid=(B,),
        in_specs=in_specs,
        out_specs=(pl.BlockSpec((None, h3, w3), lambda b: (b, 0, 0)),
                   pl.BlockSpec((None, h3, w3), lambda b: (b, 0, 0))),
        compiler_params=pltpu.CompilerParams(
            dimension_semantics=("parallel",)),   # B=2 -> both TCs on v7x
    )(*in_arrays)

    return r1[..., None], r2[..., None]           # back to NHWC with C=1


# ------------------------------- parameters ---------------------------------

def _basic_conv2d_params(key, cin, cout):
    k1, k2, k3, k4, k5 = jax.random.split(key, 5)
    w = 0.05 * jax.random.normal(k1, (3, 3, cin, cout), jnp.float32)       # HWIO
    gamma = 1.0 + 0.1 * jax.random.normal(k2, (cout,), jnp.float32)
    beta = 0.05 * jax.random.normal(k3, (cout,), jnp.float32)
    running_mean = 0.1 * jax.random.normal(k4, (cout,), jnp.float32)
    running_var = jax.random.uniform(k5, (cout,), jnp.float32, 0.5, 1.5)
    scale = gamma / jnp.sqrt(running_var + BN_EPS)
    bias = beta - running_mean * scale
    return (w.reshape(9, cin, cout), scale.reshape(1, cout), bias.reshape(1, cout))


def init_params(key, channel):
    # conv4_2 / conv5_2 exist in __init__ but are never used in forward().
    layers = [
        ("conv_upsample1", channel, channel),
        ("conv_upsample2", channel, channel),
        ("conv_upsample3", channel, channel),
        ("conv_upsample4", channel, channel),
        ("conv_upsample5", 2 * channel, 2 * channel),
        ("conv_concat2", 2 * channel, 2 * channel),
        ("conv_concat3", 3 * channel, 3 * channel),
        ("conv4_1", 3 * channel, 3 * channel),
    ]
    keys = jax.random.split(key, len(layers) + 1)
    params = {name: _basic_conv2d_params(k, cin, cout)
              for k, (name, cin, cout) in zip(keys, layers)}
    kw, kb = jax.random.split(keys[-1])
    params["conv5_1"] = (0.05 * jax.random.normal(kw, (1, 3 * channel), jnp.float32),
                         0.05 * jax.random.normal(kb, (1, 1), jnp.float32))
    return params


# ---------------------------- pure-JAX reference ----------------------------

def upsample2x(x):
    B, H, W, C = x.shape
    Ho, Wo = 2 * H, 2 * W

    def coords(n_in, n_out):
        src = jnp.arange(n_out, dtype=jnp.float32) * (n_in - 1) / (n_out - 1)
        i0 = jnp.clip(jnp.floor(src).astype(jnp.int32), 0, max(n_in - 2, 0))
        frac = src - i0.astype(jnp.float32)
        return frac, i0, jnp.clip(i0 + 1, 0, n_in - 1)

    fh, h0, h1 = coords(H, Ho)
    fw, w0, w1 = coords(W, Wo)
    xh = x[:, h0] * (1.0 - fh)[None, :, None, None] + x[:, h1] * fh[None, :, None, None]
    return (xh[:, :, w0] * (1.0 - fw)[None, None, :, None]
            + xh[:, :, w1] * fw[None, None, :, None])


def _ref_conv3x3_bn(x, p):
    w9, sc, bi = p
    cin, cout = w9.shape[1], w9.shape[2]
    y = jax.lax.conv_general_dilated(x, w9.reshape(3, 3, cin, cout), (1, 1),
                                     ((1, 1), (1, 1)),
                                     dimension_numbers=("NHWC", "HWIO", "NHWC"))
    return y * sc[0] + bi[0]


def _ref_conv1x1(x, w, b):
    return jnp.sum(x * w[0], axis=-1, keepdims=True) + b[0, 0]


def reference_forward(params, x1, x2, x3):
    up = upsample2x
    x2_1 = _ref_conv3x3_bn(up(x1), params["conv_upsample1"]) * x2
    x3_1 = (_ref_conv3x3_bn(up(up(x1)), params["conv_upsample2"])
            * _ref_conv3x3_bn(up(x2), params["conv_upsample3"]) * x3)
    x2_2 = jnp.concatenate([x2_1, _ref_conv3x3_bn(up(x1), params["conv_upsample4"])], axis=-1)
    x2_2 = _ref_conv3x3_bn(x2_2, params["conv_concat2"])
    x3_2 = jnp.concatenate([x3_1, _ref_conv3x3_bn(up(x2_2), params["conv_upsample5"])], axis=-1)
    x3_2 = _ref_conv3x3_bn(x3_2, params["conv_concat3"])
    w51, b51 = params["conv5_1"]
    x_r1 = _ref_conv1x1(_ref_conv3x3_bn(x3_2, params["conv4_1"]), w51, b51)
    x_r2 = _ref_conv1x1(_ref_conv3x3_bn(jax.nn.sigmoid(x_r1) * x3_2,
                                        params["conv4_1"]), w51, b51)
    return x_r1, x_r2


# ------------------------------------ main -----------------------------------

if __name__ == "__main__":
    channel = 8
    B, H1, W1 = 2, 4, 4
    key = jax.random.PRNGKey(0)
    k0, k1, k2, k3 = jax.random.split(key, 4)
    # NHWC inputs (PyTorch NCHW equivalents: x1=(2,8,4,4), x2=(2,8,8,8), x3=(2,8,16,16))
    x1 = jax.random.normal(k0, (B, H1, W1, channel), jnp.float32)
    x2 = jax.random.normal(k1, (B, 2 * H1, 2 * W1, channel), jnp.float32)
    x3 = jax.random.normal(k2, (B, 4 * H1, 4 * W1, channel), jnp.float32)

    params = init_params(k3, channel)
    prep = prepare(params, channel, H1, W1)    # one-time weight preprocessing

    fwd = jax.jit(aggregation_forward)
    x_r1, x_r2 = fwd(prep, x1, x2, x3)
    jax.block_until_ready((x_r1, x_r2))

    assert x_r1.shape == (B, 4 * H1, 4 * W1, 1)
    assert x_r2.shape == (B, 4 * H1, 4 * W1, 1)

    ref1, ref2 = reference_forward(params, x1, x2, x3)
    assert jnp.allclose(x_r1, ref1, atol=5e-2, rtol=5e-2), "x_r1 mismatch vs reference"
    assert jnp.allclose(x_r2, ref2, atol=5e-2, rtol=5e-2), "x_r2 mismatch vs reference"

    print("KERNEL_OK")
</pallas_src>

<mosaic_0001>
module attributes {stable_mosaic.version = 11 : i64} {
  func.func @_aggregation_kernel(%arg0: i32, %arg1: memref<1x4x32xf32, #tpu.memory_space<vmem>>, %arg2: memref<1x8x64xf32, #tpu.memory_space<vmem>>, %arg3: memref<1x16x128xf32, #tpu.memory_space<vmem>>, %arg4: memref<1x8x128xf32, #tpu.memory_space<vmem>>, %arg5: memref<8x4xbf16, #tpu.memory_space<vmem>>, %arg6: memref<32x64xbf16, #tpu.memory_space<vmem>>, %arg7: memref<16x8xbf16, #tpu.memory_space<vmem>>, %arg8: memref<64x128xbf16, #tpu.memory_space<vmem>>, %arg9: memref<128x256xbf16, #tpu.memory_space<vmem>>, %arg10: memref<2x8x8xbf16, #tpu.memory_space<vmem>>, %arg11: memref<2x16x16xbf16, #tpu.memory_space<vmem>>, %arg12: memref<3x64x128xbf16, #tpu.memory_space<vmem>>, %arg13: memref<1x128xf32, #tpu.memory_space<vmem>>, %arg14: memref<3x128x128xbf16, #tpu.memory_space<vmem>>, %arg15: memref<1x128xf32, #tpu.memory_space<vmem>>, %arg16: memref<3x256x256xbf16, #tpu.memory_space<vmem>>, %arg17: memref<1x256xf32, #tpu.memory_space<vmem>>, %arg18: memref<3x128x128xbf16, #tpu.memory_space<vmem>>, %arg19: memref<1x128xf32, #tpu.memory_space<vmem>>, %arg20: memref<3x128x128xbf16, #tpu.memory_space<vmem>>, %arg21: memref<1x128xf32, #tpu.memory_space<vmem>>, %arg22: memref<3x384x384xbf16, #tpu.memory_space<vmem>>, %arg23: memref<1x384xf32, #tpu.memory_space<vmem>>, %arg24: memref<3x384x16xbf16, #tpu.memory_space<vmem>>, %arg25: memref<1x16xf32, #tpu.memory_space<vmem>>, %arg26: memref<16x384xbf16, #tpu.memory_space<vmem>>, %arg27: memref<1x16x16xf32, #tpu.memory_space<vmem>>, %arg28: memref<1x16x16xf32, #tpu.memory_space<vmem>>) attributes {dimension_semantics = [#tpu.dimension_semantics<parallel>], iteration_bounds = array<i64: 2>, scalar_prefetch = 0 : i64, scratch_operands = 0 : i64, tpu.core_type = #tpu.core_type<tc>, window_params = [{transform_indices = @transform_0, window_bounds = array<i64: 1, 4, 32>}, {transform_indices = @transform_1, window_bounds = array<i64: 1, 8, 64>}, {transform_indices = @transform_2, window_bounds = array<i64: 1, 16, 128>}, {transform_indices = @transform_3, window_bounds = array<i64: 1, 8, 128>}, {pipeline_mode = #tpu.pipeline_mode<synchronous>, transform_indices = @transform_4, window_bounds = array<i64: 8, 4>}, {pipeline_mode = #tpu.pipeline_mode<synchronous>, transform_indices = @transform_5, window_bounds = array<i64: 32, 64>}, {pipeline_mode = #tpu.pipeline_mode<synchronous>, transform_indices = @transform_6, window_bounds = array<i64: 16, 8>}, {pipeline_mode = #tpu.pipeline_mode<synchronous>, transform_indices = @transform_7, window_bounds = array<i64: 64, 128>}, {pipeline_mode = #tpu.pipeline_mode<synchronous>, transform_indices = @transform_8, window_bounds = array<i64: 128, 256>}, {pipeline_mode = #tpu.pipeline_mode<synchronous>, transform_indices = @transform_9, window_bounds = array<i64: 2, 8, 8>}, {pipeline_mode = #tpu.pipeline_mode<synchronous>, transform_indices = @transform_10, window_bounds = array<i64: 2, 16, 16>}, {pipeline_mode = #tpu.pipeline_mode<synchronous>, transform_indices = @transform_11, window_bounds = array<i64: 3, 64, 128>}, {pipeline_mode = #tpu.pipeline_mode<synchronous>, transform_indices = @transform_12, window_bounds = array<i64: 1, 128>}, {pipeline_mode = #tpu.pipeline_mode<synchronous>, transform_indices = @transform_13, window_bounds = array<i64: 3, 128, 128>}, {pipeline_mode = #tpu.pipeline_mode<synchronous>, transform_indices = @transform_14, window_bounds = array<i64: 1, 128>}, {pipeline_mode = #tpu.pipeline_mode<synchronous>, transform_indices = @transform_15, window_bounds = array<i64: 3, 256, 256>}, {pipeline_mode = #tpu.pipeline_mode<synchronous>, transform_indices = @transform_16, window_bounds = array<i64: 1, 256>}, {pipeline_mode = #tpu.pipeline_mode<synchronous>, transform_indices = @transform_17, window_bounds = array<i64: 3, 128, 128>}, {pipeline_mode = #tpu.pipeline_mode<synchronous>, transform_indices = @transform_18, window_bounds = array<i64: 1, 128>}, {pipeline_mode = #tpu.pipeline_mode<synchronous>, transform_indices = @transform_19, window_bounds = array<i64: 3, 128, 128>}, {pipeline_mode = #tpu.pipeline_mode<synchronous>, transform_indices = @transform_20, window_bounds = array<i64: 1, 128>}, {pipeline_mode = #tpu.pipeline_mode<synchronous>, transform_indices = @transform_21, window_bounds = array<i64: 3, 384, 384>}, {pipeline_mode = #tpu.pipeline_mode<synchronous>, transform_indices = @transform_22, window_bounds = array<i64: 1, 384>}, {pipeline_mode = #tpu.pipeline_mode<synchronous>, transform_indices = @transform_23, window_bounds = array<i64: 3, 384, 16>}, {pipeline_mode = #tpu.pipeline_mode<synchronous>, transform_indices = @transform_24, window_bounds = array<i64: 1, 16>}, {pipeline_mode = #tpu.pipeline_mode<synchronous>, transform_indices = @transform_25, window_bounds = array<i64: 16, 384>}, {transform_indices = @transform_26, window_bounds = array<i64: 1, 16, 16>}, {transform_indices = @transform_27, window_bounds = array<i64: 1, 16, 16>}]} {
    %c0 = arith.constant 0 : index
    %c0_0 = arith.constant 0 : index
    %0 = vector.load %arg7[%c0, %c0_0] : memref<16x8xbf16, #tpu.memory_space<vmem>>, vector<16x8xbf16>
    %c0_1 = arith.constant 0 : index
    %c0_2 = arith.constant 0 : index
    %1 = vector.load %arg8[%c0_1, %c0_2] : memref<64x128xbf16, #tpu.memory_space<vmem>>, vector<64x128xbf16>
    %c0_3 = arith.constant 0 : index
    %c0_4 = arith.constant 0 : index
    %c0_5 = arith.constant 0 : index
    %2 = vector.load %arg1[%c0_3, %c0_4, %c0_5] : memref<1x4x32xf32, #tpu.memory_space<vmem>>, vector<1x4x32xf32>
    %3 = vector.shape_cast %2 : vector<1x4x32xf32> to vector<4x32xf32>
    %c0_6 = arith.constant 0 : index
    %c0_7 = arith.constant 0 : index
    %4 = vector.load %arg5[%c0_6, %c0_7] : memref<8x4xbf16, #tpu.memory_space<vmem>>, vector<8x4xbf16>
    %5 = arith.truncf %3 : vector<4x32xf32> to vector<4x32xbf16>
    %cst = arith.constant dense<0.000000e+00> : vector<8x32xf32>
    %6 = tpu.matmul %4, %5, %cst {dimension_numbers = #tpu.dot_dimension_numbers<[1], [0], [0], [1], [0, 0, 1, 1], [], []>} : vector<8x4xbf16>, vector<4x32xbf16>, vector<8x32xf32> -> vector<8x32xf32>
    %c0_8 = arith.constant 0 : index
    %c0_9 = arith.constant 0 : index
    %7 = vector.load %arg6[%c0_8, %c0_9] : memref<32x64xbf16, #tpu.memory_space<vmem>>, vector<32x64xbf16>
    %8 = arith.truncf %6 : vector<8x32xf32> to vector<8x32xbf16>
    %cst_10 = arith.constant dense<0.000000e+00> : vector<8x64xf32>
    %9 = tpu.matmul %8, %7, %cst_10 {dimension_numbers = #tpu.dot_dimension_numbers<[1], [0], [0], [1], [0, 0, 1, 1], [], []>} : vector<8x32xbf16>, vector<32x64xbf16>, vector<8x64xf32> -> vector<8x64xf32>
    %10 = arith.truncf %9 : vector<8x64xf32> to vector<8x64xbf16>
    %cst_11 = arith.constant dense<0.000000e+00> : vector<16x64xf32>
    %11 = tpu.matmul %0, %10, %cst_11 {dimension_numbers = #tpu.dot_dimension_numbers<[1], [0], [0], [1], [0, 0, 1, 1], [], []>} : vector<16x8xbf16>, vector<8x64xbf16>, vector<16x64xf32> -> vector<16x64xf32>
    %12 = arith.truncf %11 : vector<16x64xf32> to vector<16x64xbf16>
    %cst_12 = arith.constant dense<0.000000e+00> : vector<16x128xf32>
    %13 = tpu.matmul %12, %1, %cst_12 {dimension_numbers = #tpu.dot_dimension_numbers<[1], [0], [0], [1], [0, 0, 1, 1], [], []>} : vector<16x64xbf16>, vector<64x128xbf16>, vector<16x128xf32> -> vector<16x128xf32>
    %c0_13 = arith.constant 0 : index
    %c0_14 = arith.constant 0 : index
    %c0_15 = arith.constant 0 : index
    %14 = vector.load %arg2[%c0_13, %c0_14, %c0_15] : memref<1x8x64xf32, #tpu.memory_space<vmem>>, vector<1x8x64xf32>
    %15 = vector.shape_cast %14 : vector<1x8x64xf32> to vector<8x64xf32>
    %16 = arith.truncf %15 : vector<8x64xf32> to vector<8x64xbf16>
    %cst_16 = arith.constant dense<0.000000e+00> : vector<16x64xf32>
    %17 = tpu.matmul %0, %16, %cst_16 {dimension_numbers = #tpu.dot_dimension_numbers<[1], [0], [0], [1], [0, 0, 1, 1], [], []>} : vector<16x8xbf16>, vector<8x64xbf16>, vector<16x64xf32> -> vector<16x64xf32>
    %18 = arith.truncf %17 : vector<16x64xf32> to vector<16x64xbf16>
    %cst_17 = arith.constant dense<0.000000e+00> : vector<16x128xf32>
    %19 = tpu.matmul %18, %1, %cst_17 {dimension_numbers = #tpu.dot_dimension_numbers<[1], [0], [0], [1], [0, 0, 1, 1], [], []>} : vector<16x64xbf16>, vector<64x128xbf16>, vector<16x128xf32> -> vector<16x128xf32>
    %c0_18 = arith.constant 0 : index
    %c0_19 = arith.constant 0 : index
    %20 = vector.load %arg13[%c0_18, %c0_19] : memref<1x128xf32, #tpu.memory_space<vmem>>, vector<1x128xf32>
    %21 = arith.truncf %9 : vector<8x64xf32> to vector<8x64xbf16>
    %c0_20 = arith.constant 0 : index
    %c0_21 = arith.constant 0 : index
    %c0_22 = arith.constant 0 : index
    %22 = vector.load %arg12[%c0_20, %c0_21, %c0_22] : memref<3x64x128xbf16, #tpu.memory_space<vmem>>, vector<1x64x128xbf16>
    %23 = vector.shape_cast %22 : vector<1x64x128xbf16> to vector<64x128xbf16>
    %cst_23 = arith.constant dense<0.000000e+00> : vector<8x128xf32>
    %24 = tpu.matmul %21, %23, %cst_23 {dimension_numbers = #tpu.dot_dimension_numbers<[1], [0], [0], [1], [0, 0, 1, 1], [], []>} : vector<8x64xbf16>, vector<64x128xbf16>, vector<8x128xf32> -> vector<8x128xf32>
    %c1 = arith.constant 1 : index
    %c0_24 = arith.constant 0 : index
    %c0_25 = arith.constant 0 : index
    %25 = vector.load %arg12[%c1, %c0_24, %c0_25] : memref<3x64x128xbf16, #tpu.memory_space<vmem>>, vector<1x64x128xbf16>
    %26 = vector.shape_cast %25 : vector<1x64x128xbf16> to vector<64x128xbf16>
    %cst_26 = arith.constant dense<0.000000e+00> : vector<8x128xf32>
    %27 = tpu.matmul %21, %26, %cst_26 {dimension_numbers = #tpu.dot_dimension_numbers<[1], [0], [0], [1], [0, 0, 1, 1], [], []>} : vector<8x64xbf16>, vector<64x128xbf16>, vector<8x128xf32> -> vector<8x128xf32>
    %c2 = arith.constant 2 : index
    %c0_27 = arith.constant 0 : index
    %c0_28 = arith.constant 0 : index
    %28 = vector.load %arg12[%c2, %c0_27, %c0_28] : memref<3x64x128xbf16, #tpu.memory_space<vmem>>, vector<1x64x128xbf16>
    %29 = vector.shape_cast %28 : vector<1x64x128xbf16> to vector<64x128xbf16>
    %cst_29 = arith.constant dense<0.000000e+00> : vector<8x128xf32>
    %30 = tpu.matmul %21, %29, %cst_29 {dimension_numbers = #tpu.dot_dimension_numbers<[1], [0], [0], [1], [0, 0, 1, 1], [], []>} : vector<8x64xbf16>, vector<64x128xbf16>, vector<8x128xf32> -> vector<8x128xf32>
    %c0_30 = arith.constant 0 : index
    %c0_31 = arith.constant 0 : index
    %c0_32 = arith.constant 0 : index
    %31 = vector.load %arg10[%c0_30, %c0_31, %c0_32] : memref<2x8x8xbf16, #tpu.memory_space<vmem>>, vector<1x8x8xbf16>
    %32 = vector.shape_cast %31 : vector<1x8x8xbf16> to vector<8x8xbf16>
    %33 = arith.truncf %24 : vector<8x128xf32> to vector<8x128xbf16>
    %cst_33 = arith.constant dense<0.000000e+00> : vector<8x128xf32>
    %34 = tpu.matmul %32, %33, %cst_33 {dimension_numbers = #tpu.dot_dimension_numbers<[1], [0], [0], [1], [0, 0, 1, 1], [], []>} : vector<8x8xbf16>, vector<8x128xbf16>, vector<8x128xf32> -> vector<8x128xf32>
    %35 = arith.addf %34, %27 : vector<8x128xf32>
    %c1_34 = arith.constant 1 : index
    %c0_35 = arith.constant 0 : index
    %c0_36 = arith.constant 0 : index
    %36 = vector.load %arg10[%c1_34, %c0_35, %c0_36] : memref<2x8x8xbf16, #tpu.memory_space<vmem>>, vector<1x8x8xbf16>
    %37 = vector.shape_cast %36 : vector<1x8x8xbf16> to vector<8x8xbf16>
    %38 = arith.truncf %30 : vector<8x128xf32> to vector<8x128xbf16>
    %cst_37 = arith.constant dense<0.000000e+00> : vector<8x128xf32>
    %39 = tpu.matmul %37, %38, %cst_37 {dimension_numbers = #tpu.dot_dimension_numbers<[1], [0], [0], [1], [0, 0, 1, 1], [], []>} : vector<8x8xbf16>, vector<8x128xbf16>, vector<8x128xf32> -> vector<8x128xf32>
    %40 = arith.addf %35, %39 : vector<8x128xf32>
    %41 = vector.broadcast %20 : vector<1x128xf32> to vector<8x128xf32>
    %42 = arith.addf %40, %41 : vector<8x128xf32>
    %c0_38 = arith.constant 0 : index
    %c0_39 = arith.constant 0 : index
    %c0_40 = arith.constant 0 : index
    %43 = vector.load %arg4[%c0_38, %c0_39, %c0_40] : memref<1x8x128xf32, #tpu.memory_space<vmem>>, vector<1x8x128xf32>
    %44 = vector.shape_cast %43 : vector<1x8x128xf32> to vector<8x128xf32>
    %45 = arith.mulf %42, %44 : vector<8x128xf32>
    %c0_41 = arith.constant 0 : index
    %c0_42 = arith.constant 0 : index
    %46 = vector.load %arg15[%c0_41, %c0_42] : memref<1x128xf32, #tpu.memory_space<vmem>>, vector<1x128xf32>
    %47 = arith.truncf %45 : vector<8x128xf32> to vector<8x128xbf16>
    %c0_43 = arith.constant 0 : index
    %c0_44 = arith.constant 0 : index
    %c0_45 = arith.constant 0 : index
    %48 = vector.load %arg14[%c0_43, %c0_44, %c0_45] : memref<3x128x128xbf16, #tpu.memory_space<vmem>>, vector<1x128x128xbf16>
    %49 = vector.shape_cast %48 : vector<1x128x128xbf16> to vector<128x128xbf16>
    %cst_46 = arith.constant dense<0.000000e+00> : vector<8x128xf32>
    %50 = tpu.matmul %47, %49, %cst_46 {dimension_numbers = #tpu.dot_dimension_numbers<[1], [0], [0], [1], [0, 0, 1, 1], [], []>} : vector<8x128xbf16>, vector<128x128xbf16>, vector<8x128xf32> -> vector<8x128xf32>
    %c1_47 = arith.constant 1 : index
    %c0_48 = arith.constant 0 : index
    %c0_49 = arith.constant 0 : index
    %51 = vector.load %arg14[%c1_47, %c0_48, %c0_49] : memref<3x128x128xbf16, #tpu.memory_space<vmem>>, vector<1x128x128xbf16>
    %52 = vector.shape_cast %51 : vector<1x128x128xbf16> to vector<128x128xbf16>
    %cst_50 = arith.constant dense<0.000000e+00> : vector<8x128xf32>
    %53 = tpu.matmul %47, %52, %cst_50 {dimension_numbers = #tpu.dot_dimension_numbers<[1], [0], [0], [1], [0, 0, 1, 1], [], []>} : vector<8x128xbf16>, vector<128x128xbf16>, vector<8x128xf32> -> vector<8x128xf32>
    %c2_51 = arith.constant 2 : index
    %c0_52 = arith.constant 0 : index
    %c0_53 = arith.constant 0 : index
    %54 = vector.load %arg14[%c2_51, %c0_52, %c0_53] : memref<3x128x128xbf16, #tpu.memory_space<vmem>>, vector<1x128x128xbf16>
    %55 = vector.shape_cast %54 : vector<1x128x128xbf16> to vector<128x128xbf16>
    %cst_54 = arith.constant dense<0.000000e+00> : vector<8x128xf32>
    %56 = tpu.matmul %47, %55, %cst_54 {dimension_numbers = #tpu.dot_dimension_numbers<[1], [0], [0], [1], [0, 0, 1, 1], [], []>} : vector<8x128xbf16>, vector<128x128xbf16>, vector<8x128xf32> -> vector<8x128xf32>
    %c0_55 = arith.constant 0 : index
    %c0_56 = arith.constant 0 : index
    %c0_57 = arith.constant 0 : index
    %57 = vector.load %arg10[%c0_55, %c0_56, %c0_57] : memref<2x8x8xbf16, #tpu.memory_space<vmem>>, vector<1x8x8xbf16>
    %58 = vector.shape_cast %57 : vector<1x8x8xbf16> to vector<8x8xbf16>
    %59 = arith.truncf %50 : vector<8x128xf32> to vector<8x128xbf16>
    %cst_58 = arith.constant dense<0.000000e+00> : vector<8x128xf32>
    %60 = tpu.matmul %58, %59, %cst_58 {dimension_numbers = #tpu.dot_dimension_numbers<[1], [0], [0], [1], [0, 0, 1, 1], [], []>} : vector<8x8xbf16>, vector<8x128xbf16>, vector<8x128xf32> -> vector<8x128xf32>
    %61 = arith.addf %60, %53 : vector<8x128xf32>
    %c1_59 = arith.constant 1 : index
    %c0_60 = arith.constant 0 : index
    %c0_61 = arith.constant 0 : index
    %62 = vector.load %arg10[%c1_59, %c0_60, %c0_61] : memref<2x8x8xbf16, #tpu.memory_space<vmem>>, vector<1x8x8xbf16>
    %63 = vector.shape_cast %62 : vector<1x8x8xbf16> to vector<8x8xbf16>
    %64 = arith.truncf %56 : vector<8x128xf32> to vector<8x128xbf16>
    %cst_62 = arith.constant dense<0.000000e+00> : vector<8x128xf32>
    %65 = tpu.matmul %63, %64, %cst_62 {dimension_numbers = #tpu.dot_dimension_numbers<[1], [0], [0], [1], [0, 0, 1, 1], [], []>} : vector<8x8xbf16>, vector<8x128xbf16>, vector<8x128xf32> -> vector<8x128xf32>
    %66 = arith.addf %61, %65 : vector<8x128xf32>
    %67 = vector.broadcast %46 : vector<1x128xf32> to vector<8x128xf32>
    %68 = arith.addf %66, %67 : vector<8x128xf32>
    %69 = arith.truncf %68 : vector<8x128xf32> to vector<8x128xbf16>
    %cst_63 = arith.constant dense<0.000000e+00> : vector<16x128xf32>
    %70 = tpu.matmul %0, %69, %cst_63 {dimension_numbers = #tpu.dot_dimension_numbers<[1], [0], [0], [1], [0, 0, 1, 1], [], []>} : vector<16x8xbf16>, vector<8x128xbf16>, vector<16x128xf32> -> vector<16x128xf32>
    %c0_64 = arith.constant 0 : index
    %c0_65 = arith.constant 0 : index
    %71 = vector.load %arg9[%c0_64, %c0_65] : memref<128x256xbf16, #tpu.memory_space<vmem>>, vector<128x256xbf16>
    %72 = arith.truncf %70 : vector<16x128xf32> to vector<16x128xbf16>
    %cst_66 = arith.constant dense<0.000000e+00> : vector<16x256xf32>
    %73 = tpu.matmul %72, %71, %cst_66 {dimension_numbers = #tpu.dot_dimension_numbers<[1], [0], [0], [1], [0, 0, 1, 1], [], []>} : vector<16x128xbf16>, vector<128x256xbf16>, vector<16x256xf32> -> vector<16x256xf32>
    %c0_67 = arith.constant 0 : index
    %c0_68 = arith.constant 0 : index
    %74 = vector.load %arg17[%c0_67, %c0_68] : memref<1x256xf32, #tpu.memory_space<vmem>>, vector<1x256xf32>
    %75 = arith.truncf %73 : vector<16x256xf32> to vector<16x256xbf16>
    %c0_69 = arith.constant 0 : index
    %c0_70 = arith.constant 0 : index
    %c0_71 = arith.constant 0 : index
    %76 = vector.load %arg16[%c0_69, %c0_70, %c0_71] : memref<3x256x256xbf16, #tpu.memory_space<vmem>>, vector<1x256x256xbf16>
    %77 = vector.shape_cast %76 : vector<1x256x256xbf16> to vector<256x256xbf16>
    %cst_72 = arith.constant dense<0.000000e+00> : vector<16x256xf32>
    %78 = tpu.matmul %75, %77, %cst_72 {dimension_numbers = #tpu.dot_dimension_numbers<[1], [0], [0], [1], [0, 0, 1, 1], [], []>} : vector<16x256xbf16>, vector<256x256xbf16>, vector<16x256xf32> -> vector<16x256xf32>
    %c1_73 = arith.constant 1 : index
    %c0_74 = arith.constant 0 : index
    %c0_75 = arith.constant 0 : index
    %79 = vector.load %arg16[%c1_73, %c0_74, %c0_75] : memref<3x256x256xbf16, #tpu.memory_space<vmem>>, vector<1x256x256xbf16>
    %80 = vector.shape_cast %79 : vector<1x256x256xbf16> to vector<256x256xbf16>
    %cst_76 = arith.constant dense<0.000000e+00> : vector<16x256xf32>
    %81 = tpu.matmul %75, %80, %cst_76 {dimension_numbers = #tpu.dot_dimension_numbers<[1], [0], [0], [1], [0, 0, 1, 1], [], []>} : vector<16x256xbf16>, vector<256x256xbf16>, vector<16x256xf32> -> vector<16x256xf32>
    %c2_77 = arith.constant 2 : index
    %c0_78 = arith.constant 0 : index
    %c0_79 = arith.constant 0 : index
    %82 = vector.load %arg16[%c2_77, %c0_78, %c0_79] : memref<3x256x256xbf16, #tpu.memory_space<vmem>>, vector<1x256x256xbf16>
    %83 = vector.shape_cast %82 : vector<1x256x256xbf16> to vector<256x256xbf16>
    %cst_80 = arith.constant dense<0.000000e+00> : vector<16x256xf32>
    %84 = tpu.matmul %75, %83, %cst_80 {dimension_numbers = #tpu.dot_dimension_numbers<[1], [0], [0], [1], [0, 0, 1, 1], [], []>} : vector<16x256xbf16>, vector<256x256xbf16>, vector<16x256xf32> -> vector<16x256xf32>
    %c0_81 = arith.constant 0 : index
    %c0_82 = arith.constant 0 : index
    %c0_83 = arith.constant 0 : index
    %85 = vector.load %arg11[%c0_81, %c0_82, %c0_83] : memref<2x16x16xbf16, #tpu.memory_space<vmem>>, vector<1x16x16xbf16>
    %86 = vector.shape_cast %85 : vector<1x16x16xbf16> to vector<16x16xbf16>
    %87 = arith.truncf %78 : vector<16x256xf32> to vector<16x256xbf16>
    %cst_84 = arith.constant dense<0.000000e+00> : vector<16x256xf32>
    %88 = tpu.matmul %86, %87, %cst_84 {dimension_numbers = #tpu.dot_dimension_numbers<[1], [0], [0], [1], [0, 0, 1, 1], [], []>} : vector<16x16xbf16>, vector<16x256xbf16>, vector<16x256xf32> -> vector<16x256xf32>
    %89 = arith.addf %88, %81 : vector<16x256xf32>
    %c1_85 = arith.constant 1 : index
    %c0_86 = arith.constant 0 : index
    %c0_87 = arith.constant 0 : index
    %90 = vector.load %arg11[%c1_85, %c0_86, %c0_87] : memref<2x16x16xbf16, #tpu.memory_space<vmem>>, vector<1x16x16xbf16>
    %91 = vector.shape_cast %90 : vector<1x16x16xbf16> to vector<16x16xbf16>
    %92 = arith.truncf %84 : vector<16x256xf32> to vector<16x256xbf16>
    %cst_88 = arith.constant dense<0.000000e+00> : vector<16x256xf32>
    %93 = tpu.matmul %91, %92, %cst_88 {dimension_numbers = #tpu.dot_dimension_numbers<[1], [0], [0], [1], [0, 0, 1, 1], [], []>} : vector<16x16xbf16>, vector<16x256xbf16>, vector<16x256xf32> -> vector<16x256xf32>
    %94 = arith.addf %89, %93 : vector<16x256xf32>
    %95 = vector.broadcast %74 : vector<1x256xf32> to vector<16x256xf32>
    %96 = arith.addf %94, %95 : vector<16x256xf32>
    %c0_89 = arith.constant 0 : index
    %c0_90 = arith.constant 0 : index
    %97 = vector.load %arg19[%c0_89, %c0_90] : memref<1x128xf32, #tpu.memory_space<vmem>>, vector<1x128xf32>
    %98 = arith.truncf %13 : vector<16x128xf32> to vector<16x128xbf16>
    %c0_91 = arith.constant 0 : index
    %c0_92 = arith.constant 0 : index
    %c0_93 = arith.constant 0 : index
    %99 = vector.load %arg18[%c0_91, %c0_92, %c0_93] : memref<3x128x128xbf16, #tpu.memory_space<vmem>>, vector<1x128x128xbf16>
    %100 = vector.shape_cast %99 : vector<1x128x128xbf16> to vector<128x128xbf16>
    %cst_94 = arith.constant dense<0.000000e+00> : vector<16x128xf32>
    %101 = tpu.matmul %98, %100, %cst_94 {dimension_numbers = #tpu.dot_dimension_numbers<[1], [0], [0], [1], [0, 0, 1, 1], [], []>} : vector<16x128xbf16>, vector<128x128xbf16>, vector<16x128xf32> -> vector<16x128xf32>
    %c1_95 = arith.constant 1 : index
    %c0_96 = arith.constant 0 : index
    %c0_97 = arith.constant 0 : index
    %102 = vector.load %arg18[%c1_95, %c0_96, %c0_97] : memref<3x128x128xbf16, #tpu.memory_space<vmem>>, vector<1x128x128xbf16>
    %103 = vector.shape_cast %102 : vector<1x128x128xbf16> to vector<128x128xbf16>
    %cst_98 = arith.constant dense<0.000000e+00> : vector<16x128xf32>
    %104 = tpu.matmul %98, %103, %cst_98 {dimension_numbers = #tpu.dot_dimension_numbers<[1], [0], [0], [1], [0, 0, 1, 1], [], []>} : vector<16x128xbf16>, vector<128x128xbf16>, vector<16x128xf32> -> vector<16x128xf32>
    %c2_99 = arith.constant 2 : index
    %c0_100 = arith.constant 0 : index
    %c0_101 = arith.constant 0 : index
    %105 = vector.load %arg18[%c2_99, %c0_100, %c0_101] : memref<3x128x128xbf16, #tpu.memory_space<vmem>>, vector<1x128x128xbf16>
    %106 = vector.shape_cast %105 : vector<1x128x128xbf16> to vector<128x128xbf16>
    %cst_102 = arith.constant dense<0.000000e+00> : vector<16x128xf32>
    %107 = tpu.matmul %98, %106, %cst_102 {dimension_numbers = #tpu.dot_dimension_numbers<[1], [0], [0], [1], [0, 0, 1, 1], [], []>} : vector<16x128xbf16>, vector<128x128xbf16>, vector<16x128xf32> -> vector<16x128xf32>
    %c0_103 = arith.constant 0 : index
    %c0_104 = arith.constant 0 : index
    %c0_105 = arith.constant 0 : index
    %108 = vector.load %arg11[%c0_103, %c0_104, %c0_105] : memref<2x16x16xbf16, #tpu.memory_space<vmem>>, vector<1x16x16xbf16>
    %109 = vector.shape_cast %108 : vector<1x16x16xbf16> to vector<16x16xbf16>
    %110 = arith.truncf %101 : vector<16x128xf32> to vector<16x128xbf16>
    %cst_106 = arith.constant dense<0.000000e+00> : vector<16x128xf32>
    %111 = tpu.matmul %109, %110, %cst_106 {dimension_numbers = #tpu.dot_dimension_numbers<[1], [0], [0], [1], [0, 0, 1, 1], [], []>} : vector<16x16xbf16>, vector<16x128xbf16>, vector<16x128xf32> -> vector<16x128xf32>
    %112 = arith.addf %111, %104 : vector<16x128xf32>
    %c1_107 = arith.constant 1 : index
    %c0_108 = arith.constant 0 : index
    %c0_109 = arith.constant 0 : index
    %113 = vector.load %arg11[%c1_107, %c0_108, %c0_109] : memref<2x16x16xbf16, #tpu.memory_space<vmem>>, vector<1x16x16xbf16>
    %114 = vector.shape_cast %113 : vector<1x16x16xbf16> to vector<16x16xbf16>
    %115 = arith.truncf %107 : vector<16x128xf32> to vector<16x128xbf16>
    %cst_110 = arith.constant dense<0.000000e+00> : vector<16x128xf32>
    %116 = tpu.matmul %114, %115, %cst_110 {dimension_numbers = #tpu.dot_dimension_numbers<[1], [0], [0], [1], [0, 0, 1, 1], [], []>} : vector<16x16xbf16>, vector<16x128xbf16>, vector<16x128xf32> -> vector<16x128xf32>
    %117 = arith.addf %112, %116 : vector<16x128xf32>
    %118 = vector.broadcast %97 : vector<1x128xf32> to vector<16x128xf32>
    %119 = arith.addf %117, %118 : vector<16x128xf32>
    %c0_111 = arith.constant 0 : index
    %c0_112 = arith.constant 0 : index
    %120 = vector.load %arg21[%c0_111, %c0_112] : memref<1x128xf32, #tpu.memory_space<vmem>>, vector<1x128xf32>
    %121 = arith.truncf %19 : vector<16x128xf32> to vector<16x128xbf16>
    %c0_113 = arith.constant 0 : index
    %c0_114 = arith.constant 0 : index
    %c0_115 = arith.constant 0 : index
    %122 = vector.load %arg20[%c0_113, %c0_114, %c0_115] : memref<3x128x128xbf16, #tpu.memory_space<vmem>>, vector<1x128x128xbf16>
    %123 = vector.shape_cast %122 : vector<1x128x128xbf16> to vector<128x128xbf16>
    %cst_116 = arith.constant dense<0.000000e+00> : vector<16x128xf32>
    %124 = tpu.matmul %121, %123, %cst_116 {dimension_numbers = #tpu.dot_dimension_numbers<[1], [0], [0], [1], [0, 0, 1, 1], [], []>} : vector<16x128xbf16>, vector<128x128xbf16>, vector<16x128xf32> -> vector<16x128xf32>
    %c1_117 = arith.constant 1 : index
    %c0_118 = arith.constant 0 : index
    %c0_119 = arith.constant 0 : index
    %125 = vector.load %arg20[%c1_117, %c0_118, %c0_119] : memref<3x128x128xbf16, #tpu.memory_space<vmem>>, vector<1x128x128xbf16>
    %126 = vector.shape_cast %125 : vector<1x128x128xbf16> to vector<128x128xbf16>
    %cst_120 = arith.constant dense<0.000000e+00> : vector<16x128xf32>
    %127 = tpu.matmul %121, %126, %cst_120 {dimension_numbers = #tpu.dot_dimension_numbers<[1], [0], [0], [1], [0, 0, 1, 1], [], []>} : vector<16x128xbf16>, vector<128x128xbf16>, vector<16x128xf32> -> vector<16x128xf32>
    %c2_121 = arith.constant 2 : index
    %c0_122 = arith.constant 0 : index
    %c0_123 = arith.constant 0 : index
    %128 = vector.load %arg20[%c2_121, %c0_122, %c0_123] : memref<3x128x128xbf16, #tpu.memory_space<vmem>>, vector<1x128x128xbf16>
    %129 = vector.shape_cast %128 : vector<1x128x128xbf16> to vector<128x128xbf16>
    %cst_124 = arith.constant dense<0.000000e+00> : vector<16x128xf32>
    %130 = tpu.matmul %121, %129, %cst_124 {dimension_numbers = #tpu.dot_dimension_numbers<[1], [0], [0], [1], [0, 0, 1, 1], [], []>} : vector<16x128xbf16>, vector<128x128xbf16>, vector<16x128xf32> -> vector<16x128xf32>
    %c0_125 = arith.constant 0 : index
    %c0_126 = arith.constant 0 : index
    %c0_127 = arith.constant 0 : index
    %131 = vector.load %arg11[%c0_125, %c0_126, %c0_127] : memref<2x16x16xbf16, #tpu.memory_space<vmem>>, vector<1x16x16xbf16>
    %132 = vector.shape_cast %131 : vector<1x16x16xbf16> to vector<16x16xbf16>
    %133 = arith.truncf %124 : vector<16x128xf32> to vector<16x128xbf16>
    %cst_128 = arith.constant dense<0.000000e+00> : vector<16x128xf32>
    %134 = tpu.matmul %132, %133, %cst_128 {dimension_numbers = #tpu.dot_dimension_numbers<[1], [0], [0], [1], [0, 0, 1, 1], [], []>} : vector<16x16xbf16>, vector<16x128xbf16>, vector<16x128xf32> -> vector<16x128xf32>
    %135 = arith.addf %134, %127 : vector<16x128xf32>
    %c1_129 = arith.constant 1 : index
    %c0_130 = arith.constant 0 : index
    %c0_131 = arith.constant 0 : index
    %136 = vector.load %arg11[%c1_129, %c0_130, %c0_131] : memref<2x16x16xbf16, #tpu.memory_space<vmem>>, vector<1x16x16xbf16>
    %137 = vector.shape_cast %136 : vector<1x16x16xbf16> to vector<16x16xbf16>
    %138 = arith.truncf %130 : vector<16x128xf32> to vector<16x128xbf16>
    %cst_132 = arith.constant dense<0.000000e+00> : vector<16x128xf32>
    %139 = tpu.matmul %137, %138, %cst_132 {dimension_numbers = #tpu.dot_dimension_numbers<[1], [0], [0], [1], [0, 0, 1, 1], [], []>} : vector<16x16xbf16>, vector<16x128xbf16>, vector<16x128xf32> -> vector<16x128xf32>
    %140 = arith.addf %135, %139 : vector<16x128xf32>
    %141 = vector.broadcast %120 : vector<1x128xf32> to vector<16x128xf32>
    %142 = arith.addf %140, %141 : vector<16x128xf32>
    %143 = arith.mulf %119, %142 : vector<16x128xf32>
    %c0_133 = arith.constant 0 : index
    %c0_134 = arith.constant 0 : index
    %c0_135 = arith.constant 0 : index
    %144 = vector.load %arg3[%c0_133, %c0_134, %c0_135] : memref<1x16x128xf32, #tpu.memory_space<vmem>>, vector<1x16x128xf32>
    %145 = vector.shape_cast %144 : vector<1x16x128xf32> to vector<16x128xf32>
    %146 = arith.mulf %143, %145 : vector<16x128xf32>
    %147 = arith.truncf %146 : vector<16x128xf32> to vector<16x128xbf16>
    %148 = arith.truncf %96 : vector<16x256xf32> to vector<16x256xbf16>
    %149 = tpu.concatenate %147, %148 in 1 : vector<16x128xbf16>, vector<16x256xbf16> -> vector<16x384xbf16>
    %c0_136 = arith.constant 0 : index
    %c0_137 = arith.constant 0 : index
    %150 = vector.load %arg23[%c0_136, %c0_137] : memref<1x384xf32, #tpu.memory_space<vmem>>, vector<1x384xf32>
    %c0_138 = arith.constant 0 : index
    %c0_139 = arith.constant 0 : index
    %c0_140 = arith.constant 0 : index
    %151 = vector.load %arg22[%c0_138, %c0_139, %c0_140] : memref<3x384x384xbf16, #tpu.memory_space<vmem>>, vector<1x384x384xbf16>
    %152 = vector.shape_cast %151 : vector<1x384x384xbf16> to vector<384x384xbf16>
    %cst_141 = arith.constant dense<0.000000e+00> : vector<16x384xf32>
    %153 = tpu.matmul %149, %152, %cst_141 {dimension_numbers = #tpu.dot_dimension_numbers<[1], [0], [0], [1], [0, 0, 1, 1], [], []>} : vector<16x384xbf16>, vector<384x384xbf16>, vector<16x384xf32> -> vector<16x384xf32>
    %c1_142 = arith.constant 1 : index
    %c0_143 = arith.constant 0 : index
    %c0_144 = arith.constant 0 : index
    %154 = vector.load %arg22[%c1_142, %c0_143, %c0_144] : memref<3x384x384xbf16, #tpu.memory_space<vmem>>, vector<1x384x384xbf16>
    %155 = vector.shape_cast %154 : vector<1x384x384xbf16> to vector<384x384xbf16>
    %cst_145 = arith.constant dense<0.000000e+00> : vector<16x384xf32>
    %156 = tpu.matmul %149, %155, %cst_145 {dimension_numbers = #tpu.dot_dimension_numbers<[1], [0], [0], [1], [0, 0, 1, 1], [], []>} : vector<16x384xbf16>, vector<384x384xbf16>, vector<16x384xf32> -> vector<16x384xf32>
    %c2_146 = arith.constant 2 : index
    %c0_147 = arith.constant 0 : index
    %c0_148 = arith.constant 0 : index
    %157 = vector.load %arg22[%c2_146, %c0_147, %c0_148] : memref<3x384x384xbf16, #tpu.memory_space<vmem>>, vector<1x384x384xbf16>
    %158 = vector.shape_cast %157 : vector<1x384x384xbf16> to vector<384x384xbf16>
    %cst_149 = arith.constant dense<0.000000e+00> : vector<16x384xf32>
    %159 = tpu.matmul %149, %158, %cst_149 {dimension_numbers = #tpu.dot_dimension_numbers<[1], [0], [0], [1], [0, 0, 1, 1], [], []>} : vector<16x384xbf16>, vector<384x384xbf16>, vector<16x384xf32> -> vector<16x384xf32>
    %c0_150 = arith.constant 0 : index
    %c0_151 = arith.constant 0 : index
    %c0_152 = arith.constant 0 : index
    %160 = vector.load %arg11[%c0_150, %c0_151, %c0_152] : memref<2x16x16xbf16, #tpu.memory_space<vmem>>, vector<1x16x16xbf16>
    %161 = vector.shape_cast %160 : vector<1x16x16xbf16> to vector<16x16xbf16>
    %162 = arith.truncf %153 : vector<16x384xf32> to vector<16x384xbf16>
    %cst_153 = arith.constant dense<0.000000e+00> : vector<16x384xf32>
    %163 = tpu.matmul %161, %162, %cst_153 {dimension_numbers = #tpu.dot_dimension_numbers<[1], [0], [0], [1], [0, 0, 1, 1], [], []>} : vector<16x16xbf16>, vector<16x384xbf16>, vector<16x384xf32> -> vector<16x384xf32>
    %164 = arith.addf %163, %156 : vector<16x384xf32>
    %c1_154 = arith.constant 1 : index
    %c0_155 = arith.constant 0 : index
    %c0_156 = arith.constant 0 : index
    %165 = vector.load %arg11[%c1_154, %c0_155, %c0_156] : memref<2x16x16xbf16, #tpu.memory_space<vmem>>, vector<1x16x16xbf16>
    %166 = vector.shape_cast %165 : vector<1x16x16xbf16> to vector<16x16xbf16>
    %167 = arith.truncf %159 : vector<16x384xf32> to vector<16x384xbf16>
    %cst_157 = arith.constant dense<0.000000e+00> : vector<16x384xf32>
    %168 = tpu.matmul %166, %167, %cst_157 {dimension_numbers = #tpu.dot_dimension_numbers<[1], [0], [0], [1], [0, 0, 1, 1], [], []>} : vector<16x16xbf16>, vector<16x384xbf16>, vector<16x384xf32> -> vector<16x384xf32>
    %169 = arith.addf %164, %168 : vector<16x384xf32>
    %170 = vector.broadcast %150 : vector<1x384xf32> to vector<16x384xf32>
    %171 = arith.addf %169, %170 : vector<16x384xf32>
    %c0_158 = arith.constant 0 : index
    %c0_159 = arith.constant 0 : index
    %172 = vector.load %arg25[%c0_158, %c0_159] : memref<1x16xf32, #tpu.memory_space<vmem>>, vector<1x16xf32>
    %173 = arith.truncf %171 : vector<16x384xf32> to vector<16x384xbf16>
    %c0_160 = arith.constant 0 : index
    %c0_161 = arith.constant 0 : index
    %c0_162 = arith.constant 0 : index
    %174 = vector.load %arg24[%c0_160, %c0_161, %c0_162] : memref<3x384x16xbf16, #tpu.memory_space<vmem>>, vector<1x384x16xbf16>
    %175 = vector.shape_cast %174 : vector<1x384x16xbf16> to vector<384x16xbf16>
    %cst_163 = arith.constant dense<0.000000e+00> : vector<16x16xf32>
    %176 = tpu.matmul %173, %175, %cst_163 {dimension_numbers = #tpu.dot_dimension_numbers<[1], [0], [0], [1], [0, 0, 1, 1], [], []>} : vector<16x384xbf16>, vector<384x16xbf16>, vector<16x16xf32> -> vector<16x16xf32>
    %c1_164 = arith.constant 1 : index
    %c0_165 = arith.constant 0 : index
    %c0_166 = arith.constant 0 : index
    %177 = vector.load %arg24[%c1_164, %c0_165, %c0_166] : memref<3x384x16xbf16, #tpu.memory_space<vmem>>, vector<1x384x16xbf16>
    %178 = vector.shape_cast %177 : vector<1x384x16xbf16> to vector<384x16xbf16>
    %cst_167 = arith.constant dense<0.000000e+00> : vector<16x16xf32>
    %179 = tpu.matmul %173, %178, %cst_167 {dimension_numbers = #tpu.dot_dimension_numbers<[1], [0], [0], [1], [0, 0, 1, 1], [], []>} : vector<16x384xbf16>, vector<384x16xbf16>, vector<16x16xf32> -> vector<16x16xf32>
    %c2_168 = arith.constant 2 : index
    %c0_169 = arith.constant 0 : index
    %c0_170 = arith.constant 0 : index
    %180 = vector.load %arg24[%c2_168, %c0_169, %c0_170] : memref<3x384x16xbf16, #tpu.memory_space<vmem>>, vector<1x384x16xbf16>
    %181 = vector.shape_cast %180 : vector<1x384x16xbf16> to vector<384x16xbf16>
    %cst_171 = arith.constant dense<0.000000e+00> : vector<16x16xf32>
    %182 = tpu.matmul %173, %181, %cst_171 {dimension_numbers = #tpu.dot_dimension_numbers<[1], [0], [0], [1], [0, 0, 1, 1], [], []>} : vector<16x384xbf16>, vector<384x16xbf16>, vector<16x16xf32> -> vector<16x16xf32>
    %c0_172 = arith.constant 0 : index
    %c0_173 = arith.constant 0 : index
    %c0_174 = arith.constant 0 : index
    %183 = vector.load %arg11[%c0_172, %c0_173, %c0_174] : memref<2x16x16xbf16, #tpu.memory_space<vmem>>, vector<1x16x16xbf16>
    %184 = vector.shape_cast %183 : vector<1x16x16xbf16> to vector<16x16xbf16>
    %185 = arith.truncf %176 : vector<16x16xf32> to vector<16x16xbf16>
    %cst_175 = arith.constant dense<0.000000e+00> : vector<16x16xf32>
    %186 = tpu.matmul %184, %185, %cst_175 {dimension_numbers = #tpu.dot_dimension_numbers<[1], [0], [0], [1], [0, 0, 1, 1], [], []>} : vector<16x16xbf16>, vector<16x16xbf16>, vector<16x16xf32> -> vector<16x16xf32>
    %187 = arith.addf %186, %179 : vector<16x16xf32>
    %c1_176 = arith.constant 1 : index
    %c0_177 = arith.constant 0 : index
    %c0_178 = arith.constant 0 : index
    %188 = vector.load %arg11[%c1_176, %c0_177, %c0_178] : memref<2x16x16xbf16, #tpu.memory_space<vmem>>, vector<1x16x16xbf16>
    %189 = vector.shape_cast %188 : vector<1x16x16xbf16> to vector<16x16xbf16>
    %190 = arith.truncf %182 : vector<16x16xf32> to vector<16x16xbf16>
    %cst_179 = arith.constant dense<0.000000e+00> : vector<16x16xf32>
    %191 = tpu.matmul %189, %190, %cst_179 {dimension_numbers = #tpu.dot_dimension_numbers<[1], [0], [0], [1], [0, 0, 1, 1], [], []>} : vector<16x16xbf16>, vector<16x16xbf16>, vector<16x16xf32> -> vector<16x16xf32>
    %192 = arith.addf %187, %191 : vector<16x16xf32>
    %193 = vector.broadcast %172 : vector<1x16xf32> to vector<16x16xf32>
    %194 = arith.addf %192, %193 : vector<16x16xf32>
    %c0_180 = arith.constant 0 : index
    %c0_181 = arith.constant 0 : index
    %c0_182 = arith.constant 0 : index
    %195 = vector.load %arg27[%c0_180, %c0_181, %c0_182] : memref<1x16x16xf32, #tpu.memory_space<vmem>>, vector<1x16x16xf32>
    %196 = vector.shape_cast %195 : vector<1x16x16xf32> to vector<16x16xf32>
    %197 = vector.shape_cast %194 : vector<16x16xf32> to vector<1x16x16xf32>
    tpu.vector_store %arg27[%c0_180, %c0_181, %c0_182], %197 {strides = array<i32>} : memref<1x16x16xf32, #tpu.memory_space<vmem>>, vector<1x16x16xf32>,
    %198 = arith.negf %194 : vector<16x16xf32>
    %199 = math.exp %198 : vector<16x16xf32>
    %cst_183 = arith.constant 1.000000e+00 : f32
    %200 = vector.broadcast %cst_183 : f32 to vector<16x16xf32>
    %201 = arith.addf %200, %199 : vector<16x16xf32>
    %202 = arith.divf %200, %201 : vector<16x16xf32>
    %c0_184 = arith.constant 0 : index
    %c0_185 = arith.constant 0 : index
    %203 = vector.load %arg26[%c0_184, %c0_185] : memref<16x384xbf16, #tpu.memory_space<vmem>>, vector<16x384xbf16>
    %204 = arith.truncf %202 : vector<16x16xf32> to vector<16x16xbf16>
    %cst_186 = arith.constant dense<0.000000e+00> : vector<16x384xf32>
    %205 = tpu.matmul %204, %203, %cst_186 {dimension_numbers = #tpu.dot_dimension_numbers<[1], [0], [0], [1], [0, 0, 1, 1], [], []>} : vector<16x16xbf16>, vector<16x384xbf16>, vector<16x384xf32> -> vector<16x384xf32>
    %206 = arith.mulf %205, %171 : vector<16x384xf32>
    %207 = arith.truncf %206 : vector<16x384xf32> to vector<16x384xbf16>
    %c0_187 = arith.constant 0 : index
    %c0_188 = arith.constant 0 : index
    %c0_189 = arith.constant 0 : index
    %208 = vector.load %arg24[%c0_187, %c0_188, %c0_189] : memref<3x384x16xbf16, #tpu.memory_space<vmem>>, vector<1x384x16xbf16>
    %209 = vector.shape_cast %208 : vector<1x384x16xbf16> to vector<384x16xbf16>
    %cst_190 = arith.constant dense<0.000000e+00> : vector<16x16xf32>
    %210 = tpu.matmul %207, %209, %cst_190 {dimension_numbers = #tpu.dot_dimension_numbers<[1], [0], [0], [1], [0, 0, 1, 1], [], []>} : vector<16x384xbf16>, vector<384x16xbf16>, vector<16x16xf32> -> vector<16x16xf32>
    %c1_191 = arith.constant 1 : index
    %c0_192 = arith.constant 0 : index
    %c0_193 = arith.constant 0 : index
    %211 = vector.load %arg24[%c1_191, %c0_192, %c0_193] : memref<3x384x16xbf16, #tpu.memory_space<vmem>>, vector<1x384x16xbf16>
    %212 = vector.shape_cast %211 : vector<1x384x16xbf16> to vector<384x16xbf16>
    %cst_194 = arith.constant dense<0.000000e+00> : vector<16x16xf32>
    %213 = tpu.matmul %207, %212, %cst_194 {dimension_numbers = #tpu.dot_dimension_numbers<[1], [0], [0], [1], [0, 0, 1, 1], [], []>} : vector<16x384xbf16>, vector<384x16xbf16>, vector<16x16xf32> -> vector<16x16xf32>
    %c2_195 = arith.constant 2 : index
    %c0_196 = arith.constant 0 : index
    %c0_197 = arith.constant 0 : index
    %214 = vector.load %arg24[%c2_195, %c0_196, %c0_197] : memref<3x384x16xbf16, #tpu.memory_space<vmem>>, vector<1x384x16xbf16>
    %215 = vector.shape_cast %214 : vector<1x384x16xbf16> to vector<384x16xbf16>
    %cst_198 = arith.constant dense<0.000000e+00> : vector<16x16xf32>
    %216 = tpu.matmul %207, %215, %cst_198 {dimension_numbers = #tpu.dot_dimension_numbers<[1], [0], [0], [1], [0, 0, 1, 1], [], []>} : vector<16x384xbf16>, vector<384x16xbf16>, vector<16x16xf32> -> vector<16x16xf32>
    %c0_199 = arith.constant 0 : index
    %c0_200 = arith.constant 0 : index
    %c0_201 = arith.constant 0 : index
    %217 = vector.load %arg11[%c0_199, %c0_200, %c0_201] : memref<2x16x16xbf16, #tpu.memory_space<vmem>>, vector<1x16x16xbf16>
    %218 = vector.shape_cast %217 : vector<1x16x16xbf16> to vector<16x16xbf16>
    %219 = arith.truncf %210 : vector<16x16xf32> to vector<16x16xbf16>
    %cst_202 = arith.constant dense<0.000000e+00> : vector<16x16xf32>
    %220 = tpu.matmul %218, %219, %cst_202 {dimension_numbers = #tpu.dot_dimension_numbers<[1], [0], [0], [1], [0, 0, 1, 1], [], []>} : vector<16x16xbf16>, vector<16x16xbf16>, vector<16x16xf32> -> vector<16x16xf32>
    %221 = arith.addf %220, %213 : vector<16x16xf32>
    %c1_203 = arith.constant 1 : index
    %c0_204 = arith.constant 0 : index
    %c0_205 = arith.constant 0 : index
    %222 = vector.load %arg11[%c1_203, %c0_204, %c0_205] : memref<2x16x16xbf16, #tpu.memory_space<vmem>>, vector<1x16x16xbf16>
    %223 = vector.shape_cast %222 : vector<1x16x16xbf16> to vector<16x16xbf16>
    %224 = arith.truncf %216 : vector<16x16xf32> to vector<16x16xbf16>
    %cst_206 = arith.constant dense<0.000000e+00> : vector<16x16xf32>
    %225 = tpu.matmul %223, %224, %cst_206 {dimension_numbers = #tpu.dot_dimension_numbers<[1], [0], [0], [1], [0, 0, 1, 1], [], []>} : vector<16x16xbf16>, vector<16x16xbf16>, vector<16x16xf32> -> vector<16x16xf32>
    %226 = arith.addf %221, %225 : vector<16x16xf32>
    %227 = vector.broadcast %172 : vector<1x16xf32> to vector<16x16xf32>
    %228 = arith.addf %226, %227 : vector<16x16xf32>
    %c0_207 = arith.constant 0 : index
    %c0_208 = arith.constant 0 : index
    %c0_209 = arith.constant 0 : index
    %229 = vector.load %arg28[%c0_207, %c0_208, %c0_209] : memref<1x16x16xf32, #tpu.memory_space<vmem>>, vector<1x16x16xf32>
    %230 = vector.shape_cast %229 : vector<1x16x16xf32> to vector<16x16xf32>
    %231 = vector.shape_cast %228 : vector<16x16xf32> to vector<1x16x16xf32>
    tpu.vector_store %arg28[%c0_207, %c0_208, %c0_209], %231 {strides = array<i32>} : memref<1x16x16xf32, #tpu.memory_space<vmem>>, vector<1x16x16xf32>,
    return
  }
  func.func @transform_0(%arg0: i32) -> (i32, i32, i32) {
    %c0_i32 = arith.constant 0 : i32
    %c0_i32_0 = arith.constant 0 : i32
    %c0_i32_1 = arith.constant 0 : i32
    return %arg0, %c0_i32, %c0_i32_0 : i32, i32, i32
  }
  func.func @transform_1(%arg0: i32) -> (i32, i32, i32) {
    %c0_i32 = arith.constant 0 : i32
    %c0_i32_0 = arith.constant 0 : i32
    %c0_i32_1 = arith.constant 0 : i32
    return %arg0, %c0_i32, %c0_i32_0 : i32, i32, i32
  }
  func.func @transform_2(%arg0: i32) -> (i32, i32, i32) {
    %c0_i32 = arith.constant 0 : i32
    %c0_i32_0 = arith.constant 0 : i32
    %c0_i32_1 = arith.constant 0 : i32
    return %arg0, %c0_i32, %c0_i32_0 : i32, i32, i32
  }
  func.func @transform_3(%arg0: i32) -> (i32, i32, i32) {
    %c0_i32 = arith.constant 0 : i32
    %c0_i32_0 = arith.constant 0 : i32
    %c0_i32_1 = arith.constant 0 : i32
    return %arg0, %c0_i32, %c0_i32_0 : i32, i32, i32
  }
  func.func @transform_4(%arg0: i32) -> (i32, i32) {
    %c0_i32 = arith.constant 0 : i32
    %c0_i32_0 = arith.constant 0 : i32
    %c0_i32_1 = arith.constant 0 : i32
    return %c0_i32, %c0_i32_0 : i32, i32
  }
  func.func @transform_5(%arg0: i32) -> (i32, i32) {
    %c0_i32 = arith.constant 0 : i32
    %c0_i32_0 = arith.constant 0 : i32
    %c0_i32_1 = arith.constant 0 : i32
    return %c0_i32, %c0_i32_0 : i32, i32
  }
  func.func @transform_6(%arg0: i32) -> (i32, i32) {
    %c0_i32 = arith.constant 0 : i32
    %c0_i32_0 = arith.constant 0 : i32
    %c0_i32_1 = arith.constant 0 : i32
    return %c0_i32, %c0_i32_0 : i32, i32
  }
  func.func @transform_7(%arg0: i32) -> (i32, i32) {
    %c0_i32 = arith.constant 0 : i32
    %c0_i32_0 = arith.constant 0 : i32
    %c0_i32_1 = arith.constant 0 : i32
    return %c0_i32, %c0_i32_0 : i32, i32
  }
  func.func @transform_8(%arg0: i32) -> (i32, i32) {
    %c0_i32 = arith.constant 0 : i32
    %c0_i32_0 = arith.constant 0 : i32
    %c0_i32_1 = arith.constant 0 : i32
    return %c0_i32, %c0_i32_0 : i32, i32
  }
  func.func @transform_9(%arg0: i32) -> (i32, i32, i32) {
    %c0_i32 = arith.constant 0 : i32
    %c0_i32_0 = arith.constant 0 : i32
    %c0_i32_1 = arith.constant 0 : i32
    %c0_i32_2 = arith.constant 0 : i32
    return %c0_i32, %c0_i32_0, %c0_i32_1 : i32, i32, i32
  }
  func.func @transform_10(%arg0: i32) -> (i32, i32, i32) {
    %c0_i32 = arith.constant 0 : i32
    %c0_i32_0 = arith.constant 0 : i32
    %c0_i32_1 = arith.constant 0 : i32
    %c0_i32_2 = arith.constant 0 : i32
    return %c0_i32, %c0_i32_0, %c0_i32_1 : i32, i32, i32
  }
  func.func @transform_11(%arg0: i32) -> (i32, i32, i32) {
    %c0_i32 = arith.constant 0 : i32
    %c0_i32_0 = arith.constant 0 : i32
    %c0_i32_1 = arith.constant 0 : i32
    %c0_i32_2 = arith.constant 0 : i32
    return %c0_i32, %c0_i32_0, %c0_i32_1 : i32, i32, i32
  }
  func.func @transform_12(%arg0: i32) -> (i32, i32) {
    %c0_i32 = arith.constant 0 : i32
    %c0_i32_0 = arith.constant 0 : i32
    %c0_i32_1 = arith.constant 0 : i32
    return %c0_i32, %c0_i32_0 : i32, i32
  }
  func.func @transform_13(%arg0: i32) -> (i32, i32, i32) {
    %c0_i32 = arith.constant 0 : i32
    %c0_i32_0 = arith.constant 0 : i32
    %c0_i32_1 = arith.constant 0 : i32
    %c0_i32_2 = arith.constant 0 : i32
    return %c0_i32, %c0_i32_0, %c0_i32_1 : i32, i32, i32
  }
  func.func @transform_14(%arg0: i32) -> (i32, i32) {
    %c0_i32 = arith.constant 0 : i32
    %c0_i32_0 = arith.constant 0 : i32
    %c0_i32_1 = arith.constant 0 : i32
    return %c0_i32, %c0_i32_0 : i32, i32
  }
  func.func @transform_15(%arg0: i32) -> (i32, i32, i32) {
    %c0_i32 = arith.constant 0 : i32
    %c0_i32_0 = arith.constant 0 : i32
    %c0_i32_1 = arith.constant 0 : i32
    %c0_i32_2 = arith.constant 0 : i32
    return %c0_i32, %c0_i32_0, %c0_i32_1 : i32, i32, i32
  }
  func.func @transform_16(%arg0: i32) -> (i32, i32) {
    %c0_i32 = arith.constant 0 : i32
    %c0_i32_0 = arith.constant 0 : i32
    %c0_i32_1 = arith.constant 0 : i32
    return %c0_i32, %c0_i32_0 : i32, i32
  }
  func.func @transform_17(%arg0: i32) -> (i32, i32, i32) {
    %c0_i32 = arith.constant 0 : i32
    %c0_i32_0 = arith.constant 0 : i32
    %c0_i32_1 = arith.constant 0 : i32
    %c0_i32_2 = arith.constant 0 : i32
    return %c0_i32, %c0_i32_0, %c0_i32_1 : i32, i32, i32
  }
  func.func @transform_18(%arg0: i32) -> (i32, i32) {
    %c0_i32 = arith.constant 0 : i32
    %c0_i32_0 = arith.constant 0 : i32
    %c0_i32_1 = arith.constant 0 : i32
    return %c0_i32, %c0_i32_0 : i32, i32
  }
  func.func @transform_19(%arg0: i32) -> (i32, i32, i32) {
    %c0_i32 = arith.constant 0 : i32
    %c0_i32_0 = arith.constant 0 : i32
    %c0_i32_1 = arith.constant 0 : i32
    %c0_i32_2 = arith.constant 0 : i32
    return %c0_i32, %c0_i32_0, %c0_i32_1 : i32, i32, i32
  }
  func.func @transform_20(%arg0: i32) -> (i32, i32) {
    %c0_i32 = arith.constant 0 : i32
    %c0_i32_0 = arith.constant 0 : i32
    %c0_i32_1 = arith.constant 0 : i32
    return %c0_i32, %c0_i32_0 : i32, i32
  }
  func.func @transform_21(%arg0: i32) -> (i32, i32, i32) {
    %c0_i32 = arith.constant 0 : i32
    %c0_i32_0 = arith.constant 0 : i32
    %c0_i32_1 = arith.constant 0 : i32
    %c0_i32_2 = arith.constant 0 : i32
    return %c0_i32, %c0_i32_0, %c0_i32_1 : i32, i32, i32
  }
  func.func @transform_22(%arg0: i32) -> (i32, i32) {
    %c0_i32 = arith.constant 0 : i32
    %c0_i32_0 = arith.constant 0 : i32
    %c0_i32_1 = arith.constant 0 : i32
    return %c0_i32, %c0_i32_0 : i32, i32
  }
  func.func @transform_23(%arg0: i32) -> (i32, i32, i32) {
    %c0_i32 = arith.constant 0 : i32
    %c0_i32_0 = arith.constant 0 : i32
    %c0_i32_1 = arith.constant 0 : i32
    %c0_i32_2 = arith.constant 0 : i32
    return %c0_i32, %c0_i32_0, %c0_i32_1 : i32, i32, i32
  }
  func.func @transform_24(%arg0: i32) -> (i32, i32) {
    %c0_i32 = arith.constant 0 : i32
    %c0_i32_0 = arith.constant 0 : i32
    %c0_i32_1 = arith.constant 0 : i32
    return %c0_i32, %c0_i32_0 : i32, i32
  }
  func.func @transform_25(%arg0: i32) -> (i32, i32) {
    %c0_i32 = arith.constant 0 : i32
    %c0_i32_0 = arith.constant 0 : i32
    %c0_i32_1 = arith.constant 0 : i32
    return %c0_i32, %c0_i32_0 : i32, i32
  }
  func.func @transform_26(%arg0: i32) -> (i32, i32, i32) {
    %c0_i32 = arith.constant 0 : i32
    %c0_i32_0 = arith.constant 0 : i32
    %c0_i32_1 = arith.constant 0 : i32
    return %arg0, %c0_i32, %c0_i32_0 : i32, i32, i32
  }
  func.func @transform_27(%arg0: i32) -> (i32, i32, i32) {
    %c0_i32 = arith.constant 0 : i32
    %c0_i32_0 = arith.constant 0 : i32
    %c0_i32_1 = arith.constant 0 : i32
    return %arg0, %c0_i32, %c0_i32_0 : i32, i32, i32
  }
}

</mosaic_0001>

<bundles_post_ra>
// kernel: aggregation_forward.1
= control target key start
LH: loop header
LB: loop body
LE: loop exit
PB: predicated region body
PF: predicated region fallthrough
CT: control target
= control target key end

     0   :  { %s12984_s0 = inlined_call_operand.vmem [shape: f32[2,4,32], index: 0, kind: input, shape index: {}]   ;;  %s12985_s1 = inlined_call_operand.vmem [shape: f32[2,8,64], index: 1, kind: input, shape index: {}]   ;;  %s12986_s2 = inlined_call_operand.vmem [shape: f32[2,16,128], index: 2, kind: input, shape index: {}]   ;;  %s12987_s3 = inlined_call_operand.vmem [shape: f32[2,8,128], index: 3, kind: input, shape index: {}]   ;;  %s12988_s4 = inlined_call_operand.vmem [shape: bf16[8,4], index: 4, kind: input, shape index: {}]   ;;  %s12989_s5 = inlined_call_operand.vmem [shape: bf16[32,64], index: 5, kind: input, shape index: {}]   ;;  %s12990_s6 = inlined_call_operand.vmem [shape: bf16[16,8], index: 6, kind: input, shape index: {}]   ;;  %s12991_s7 = inlined_call_operand.vmem [shape: bf16[64,128], index: 7, kind: input, shape index: {}]   ;;  %s12992_s8 = inlined_call_operand.vmem [shape: bf16[128,256], index: 8, kind: input, shape index: {}]   ;;  %s12993_s9 = inlined_call_operand.hbm [shape: bf16[2,8,8], index: 9, kind: input, shape index: {}]   ;;  %s12994_s10 = inlined_call_operand.hbm [shape: bf16[2,16,16], index: 10, kind: input, shape index: {}]   ;;  %s12995_s11 = inlined_call_operand.vmem [shape: bf16[3,64,128], index: 11, kind: input, shape index: {}]   ;;  %s12996_s12 = inlined_call_operand.hbm [shape: f32[1,128], index: 12, kind: input, shape index: {}]   ;;  %s12997_s13 = inlined_call_operand.vmem [shape: bf16[3,128,128], index: 13, kind: input, shape index: {}]   ;;  %s12998_s14 = inlined_call_operand.hbm [shape: f32[1,128], index: 14, kind: input, shape index: {}]   ;;  %s12999_s15 = inlined_call_operand.vmem [shape: bf16[3,256,256], index: 15, kind: input, shape index: {}]   ;;  %s13000_s16 = inlined_call_operand.hbm [shape: f32[1,256], index: 16, kind: input, shape index: {}]   ;;  %s13001_s17 = inlined_call_operand.vmem [shape: bf16[3,128,128], index: 17, kind: input, shape index: {}]   ;;  %s13002_s18 = inlined_call_operand.hbm [shape: f32[1,128], index: 18, kind: input, shape index: {}]   ;;  %s13003_s19 = inlined_call_operand.vmem [shape: bf16[3,128,128], index: 19, kind: input, shape index: {}]   ;;  %s13004_s20 = inlined_call_operand.hbm [shape: f32[1,128], index: 20, kind: input, shape index: {}]   ;;  %s13005_s21 = inlined_call_operand.hbm [shape: bf16[3,384,384], index: 21, kind: input, shape index: {}]   ;;  %s13006_s22 = inlined_call_operand.vmem [shape: f32[1,384], index: 22, kind: input, shape index: {}]   ;;  %s13007_s23 = inlined_call_operand.vmem [shape: bf16[3,384,16], index: 23, kind: input, shape index: {}]   ;;  %s13008_s24 = inlined_call_operand.hbm [shape: f32[1,16], index: 24, kind: input, shape index: {}]   ;;  %s13009_s25 = inlined_call_operand.hbm [shape: bf16[16,384], index: 25, kind: input, shape index: {}]   ;;  %s13010_s26 = inlined_call_operand.hbm [shape: f32[2,16,16], index: 26, kind: output, shape index: {0}]   ;;  %s13011_s27 = inlined_call_operand.hbm [shape: f32[2,16,16], index: 27, kind: output, shape index: {1}]  }
   0x1   :  { %13033 = sst [smem:[#allocation38_spill]] %s12984_s0 }
   0x2   :  { %13034 = sst [smem:[#allocation39_spill]] %s12985_s1 }
   0x3   :  { %13035 = sst [smem:[#allocation40_spill]] %s12986_s2 }
   0x4   :  { %13036 = sst [smem:[#allocation41_spill]] %s12987_s3 }
   0x5   :  { %13037 = sst [smem:[#allocation42_spill]] %s12988_s4 }
   0x6   :  { %13038 = sst [smem:[#allocation43_spill]] %s12989_s5 }
   0x7   :  { %13039 = sst [smem:[#allocation44_spill]] %s12990_s6 }
   0x8   :  { %13040 = sst [smem:[#allocation45_spill]] %s12991_s7 }
   0x9   :  { %13041 = sst [smem:[#allocation46_spill]] %s12992_s8 }
   0xa   :  { %13042 = sst [smem:[#allocation47_spill]] %s12993_s9 }
   0xb   :  { %13043 = sst [smem:[#allocation48_spill]] %s12994_s10 }
   0xc   :  { %13044 = sst [smem:[#allocation49_spill]] %s12995_s11 }
   0xd   :  { %13045 = sst [smem:[#allocation50_spill]] %s12996_s12 }
   0xe   :  { %13046 = sst [smem:[#allocation51_spill]] %s12997_s13 }
   0xf   :  { %13047 = sst [smem:[#allocation52_spill]] %s12998_s14 }
  0x10   :  { %13048 = sst [smem:[#allocation53_spill]] %s13010_s26 }
  0x11   :  { %13049 = sst [smem:[#allocation54_spill]] %s13011_s27 }
  0x12   :  { %33 = vsyncpa [#allocation3], 0 }
  0x13   :  { %34 = vsyncpa [#allocation6], 0 }
  0x14   :  { %35 = vsyncpa [#allocation9], 0 }
  0x15   :  { %36 = vsyncpa [#allocation12], 0 }
  0x16   :  { %37 = vsyncpa [#allocation15], 0 }
  0x17   :  { %38 = vsyncpa [#allocation18], 0 }
  0x18   :  { %39 = vsyncpa [#allocation4], 0 }
  0x19   :  { %41 = vsyncpa [#allocation4 + $0x1], 0 }
  0x1a   :  { %42 = vsyncpa [#allocation21], 0 }
  0x1b   :  { %44 = vsyncpa [#allocation21 + $0x1], 0  ;;  %s11091_s7 = smov 0   ;;  %s11093_s4 = smov 0  }
  0x1c   :  { %s11095_s8 = smov 0   ;;  %s11097_s30 = smov 0  }
  0x1d LB: > { %13050 = sst [smem:[#allocation30_spill]] %s10921_s7  ;;  %s11112_s9 = sadd.s32 4294967295, %s10933_s30   ;;  %s10933_s30 = sphi %s11097_s30, %s13091_s30   ;;  %s10929_s8 = sphi %s11095_s8, %s13094_s8   ;;  %s10925_s4 = sphi %s11093_s4, %s13093_s4   ;;  %s10921_s7 = sphi %s11091_s7, %s13092_s7  }
  0x1e   : > { %13051 = sst [smem:[#allocation31_spill]] %s10925_s4  ;;  %s7052_s5 = sadd.s32 4294967294, %s10933_s30  }
  0x1f   : > { %13052 = sst [smem:[#allocation32_spill]] %s10929_s8  ;;  %s11116_s28 = sadd.s32 1, %s10933_s30  }
  0x20   : > { %13053 = sst [smem:[#allocation33_spill]] %s10933_s30  ;;  %s623_s0 = sadd.s32 1, %s10929_s8 }
  0x21   : > { %13054 = sst [smem:[#allocation34_spill]] %s11116_s28  ;;  %s620_s10 = ssub.s32 %s10933_s30, %s11116_s28 }
  0x22   : > { %p633_p0 = scmp.ne.s32.totalorder %s10929_s8, %s10925_s4  ;;  %p621_p1 = scmp.eq.s32.totalorder %s620_s10, 0 }
  0x23   : > { %p634_p2 = scmp.eq.s32.totalorder %s11112_s9, 1  ;;  %p639_p3 = scmp.ne.s32.totalorder %s10925_s4, %s10921_s7 }
  0x24   : > { %p640_p4 = scmp.eq.s32.totalorder %s7052_s5, 1  ;;  %p7053_p7 = scmp.ge.s32.totalorder %s10933_s30, 1 }
  0x25   : > { %s11127_s29 = scalar_select %p621_p1, %s10929_s8, %s623_s0  }
  0x26   : > { %p11129_p5 = por %p634_p2, %p633_p0  ;;  %p11133_p6 = por %p640_p4, %p639_p3 }
  0x27   : > { %13055 = sst [smem:[#allocation35_spill]] %s11127_s29  ;;  %p673_p8 = scmp.lt.s32.totalorder %s10933_s30, 3 }
  0x28   : > { %s13056_s1 = scalar_select %p11129_p5, 1, 0 }
  0x29   : > { %s13058_s6 = scalar_select %p11133_p6, 1, 0 }
  0x2a   : > { %13057 = sst [smem:[#allocation36_spill]] %s13056_s1  ;;  %p10431_p9 = scmp.eq.s32.totalorder %s11112_s9, 0 }
  0x2b   : > { %13059 = sst [smem:[#allocation37_spill]] %s13058_s6  ;;  %p11140_p10 = pnand %p7053_p7, %p673_p8 }
  0x2c   : > { %s13061_s5 = sld [smem:[#allocation48_spill]]  ;;  %s10935_s6 = smov [#allocation5]  }
  0x2d   : > { %p10393_p11 = pneg %p11140_p10  ;;  %s13062_s14 = sld [smem:[#allocation52_spill]] }
  0x2e   : > { %s715_s7 = sshll.u32 %s10935_s6, 4  ;;  %s10936_s2 = smov 64   ;;  %s716_s7 = int_to_ptr.vmem [resolvable:$true] %s715_s7 }
  0x2f   : > { %p11154_p12 = pnand %p10431_p9, %p10393_p11  ;;  %s10937_s3 = smov 4  }
  0x30   : > { %s10938_s29 = smov [#allocation8]   ;;  %s776_s30 = sshll.u32 %s13002_s18, 4  ;;  %s777_s30 = int_to_ptr.hbm [resolvable:$true] %s776_s30 }
  0x31   : > { %s802_s26 = sshll.u32 %s13005_s21, 4  ;;  %s10939_s1 = smov [#allocation11]   ;;  %s803_s26 = int_to_ptr.hbm [resolvable:$true] %s802_s26 }
  0x32   : > { %s713_s0 = sshll.u32 %s13061_s5, 4  ;;  %s748_s5 = sshll.u32 %s10938_s29, 4  ;;  %s714_s0 = int_to_ptr.hbm [resolvable:$true] %s713_s0  ;;  %s749_s5 = int_to_ptr.vmem [resolvable:$true] %s748_s5 }
  0x33   : > { %s746_s8 = sshll.u32 %s13062_s14, 4  ;;  %s778_s4 = sshll.u32 %s10939_s1, 4  ;;  %s747_s8 = int_to_ptr.hbm [resolvable:$true] %s746_s8  ;;  %s779_s4 = int_to_ptr.vmem [resolvable:$true] %s778_s4 }
  0x34   : > { %10399 = dma.hbm_to_vmem [thread:$0]  (!%p11154_p12), %s714_s0, 256, %s716_s7, [#allocation6], %s10936_s2, %s10936_s2, %s10937_s3  }
  0x35   : > { %10405 = dma.hbm_to_vmem [thread:$0]  (!%p11154_p12), %s747_s8, 16, %s749_s5, [#allocation9]  }
  0x36   : > { %10411 = dma.hbm_to_vmem [thread:$0]  (!%p11154_p12), %s777_s30, 16, %s779_s4, [#allocation12]  }
  0x37   : > { %s10940_s7 = smov [#allocation14]   ;;  %s13027_s14 = smov 192  }
  0x38   : > { %s804_s0 = sshll.u32 %s10940_s7, 4  ;;  %s13028_s29 = smov 12   ;;  %s805_s0 = int_to_ptr.vmem [resolvable:$true] %s804_s0 }
  0x39   : > { %10417 = dma.hbm_to_vmem [thread:$0]  (!%p11154_p12), %s803_s26, 27648, %s805_s0, [#allocation15], %s13027_s14, %s13027_s14, %s13028_s29  }
  0x3a   : > { %s13064_s5 = sld [smem:[#allocation47_spill]]  ;;  %s10943_s10 = smov [#allocation2]  }
  0x3b   : > { %s701_s6 = sshll.u32 %s10943_s10, 4  ;;  %s13065_s12 = sld [smem:[#allocation50_spill]]  ;;  %s702_s6 = int_to_ptr.vmem [resolvable:$true] %s701_s6 }
  0x3c   : > { %s10944_s26 = smov [#allocation7]   ;;  %s761_s8 = sshll.u32 %s13000_s16, 4  ;;  %s762_s8 = int_to_ptr.hbm [resolvable:$true] %s761_s8 }
  0x3d   : > { %s733_s0 = sshll.u32 %s10944_s26, 4  ;;  %s791_s4 = sshll.u32 %s13004_s20, 4  ;;  %s734_s0 = int_to_ptr.vmem [resolvable:$true] %s733_s0  ;;  %s792_s4 = int_to_ptr.hbm [resolvable:$true] %s791_s4 }
  0x3e   : > { %s10945_s30 = smov [#allocation10]   ;;  %s10947_s27 = smov [#allocation16]  }
  0x3f   : > { %s763_s29 = sshll.u32 %s10945_s30, 4  ;;  %s13066_s10 = smov 12   ;;  %s764_s29 = int_to_ptr.vmem [resolvable:$true] %s763_s29 }
  0x40   : > { %s699_s1 = sshll.u32 %s13064_s5, 4  ;;  %s825_s5 = sshll.u32 %s10947_s27, 4  ;;  %s700_s1 = int_to_ptr.hbm [resolvable:$true] %s699_s1  ;;  %s826_s5 = int_to_ptr.vmem [resolvable:$true] %s825_s5 }
  0x41   : > { %s731_s7 = sshll.u32 %s13065_s12, 4  ;;  %s13067_s30 = smov 192   ;;  %s732_s7 = int_to_ptr.hbm [resolvable:$true] %s731_s7 }
  0x42   : > { %10396 = dma.hbm_to_vmem [thread:$0]  (!%p11154_p12), %s700_s1, 128, %s702_s6, [#allocation3], %s10936_s2, %s10936_s2, %s10937_s3  }
  0x43   : > { %10402 = dma.hbm_to_vmem [thread:$0]  (!%p11154_p12), %s732_s7, 16, %s734_s0, [#allocation6]  }
  0x44   : > { %10408 = dma.hbm_to_vmem [thread:$0]  (!%p11154_p12), %s762_s8, 32, %s764_s29, [#allocation9]  }
  0x45   : > { %s10946_s2 = smov [#allocation13]   ;;  %s823_s6 = sshll.u32 %s13008_s24, 4  ;;  %s824_s6 = int_to_ptr.hbm [resolvable:$true] %s823_s6 }
  0x46   : > { %s793_s3 = sshll.u32 %s10946_s2, 4  ;;  %s834_s0 = sshll.u32 %s13009_s25, 4  ;;  %s794_s3 = int_to_ptr.vmem [resolvable:$true] %s793_s3  ;;  %s835_s0 = int_to_ptr.hbm [resolvable:$true] %s834_s0 }
  0x47   : > { %10414 = dma.hbm_to_vmem [thread:$0]  (!%p11154_p12), %s792_s4, 16, %s794_s3, [#allocation12]  }
  0x48   : > { %10420 = dma.hbm_to_vmem [thread:$0]  (!%p11154_p12), %s824_s6, 16, %s826_s5, [#allocation15]  }
  0x49   : > { %s10948_s29 = smov [#allocation17]   ;;  %881 = sbr.rel (%p11140_p10) target bundleno = 3151 (0xc4f), region = 124 }
  0x4a   : > { %s836_s8 = sshll.u32 %s10948_s29, 4  ;;  %s837_s8 = int_to_ptr.vmem [resolvable:$true] %s836_s8 }
  0x4b   : > { %10423 = dma.hbm_to_vmem [thread:$0]  (!%p11154_p12), %s835_s0, 384, %s837_s8, [#allocation18], %s13067_s30, %s13067_s30, %s13066_s10  }
  0x4e   : > { %10888 = dma.done.wait (%p10431_p9), [#allocation3], 128  }
  0x4f   : > { %10890 = vsyncadd (%p10431_p9), [#allocation3], 4294967168 }
  0x50   : > { %10892 = dma.done.wait (%p10431_p9), [#allocation6], 272  }
  0x51   : > { %10894 = vsyncadd (%p10431_p9), [#allocation6], 4294967024 }
  0x52   : > { %10896 = dma.done.wait (%p10431_p9), [#allocation9], 48  }
  0x53   : > { %10898 = vsyncadd (%p10431_p9), [#allocation9], 4294967248 }
  0x54   : > { %10900 = dma.done.wait (%p10431_p9), [#allocation12], 32  }
  0x55   : > { %10902 = vsyncadd (%p10431_p9), [#allocation12], 4294967264 }
  0x56   : > { %10904 = dma.done.wait (%p10431_p9), [#allocation15], 27664  }
  0x57   : > { %10906 = vsyncadd (%p10431_p9), [#allocation15], 4294939632 }
  0x58   : > { %10908 = dma.done.wait (%p10431_p9), [#allocation18], 384  }
  0x59   : > { %10910 = vsyncadd (%p10431_p9), [#allocation18], 4294966912  ;;  %p1016_p13 = scmp.lt.s32.totalorder %s11112_s9, 1  ;;  %s13068_s3 = sld [smem:[#allocation38_spill]]  ;;  %vm1051_vm0 = vcmask 1041408   ;;  %vm1047_vm1 = vcmask 31744  }
  0x5a   : > { %s13069_s7 = sld [smem:[#allocation43_spill]]  ;;  %vm1112_vm2 = vcmask 1043456   ;;  %vm1108_vm3 = vcmask 64512   ;;  %vm1085_vm4 = vcmask 261120   ;;  %vm1155_vm5 = vcmask 523264  }
  0x5b   : > { %s11242_s28 = scalar_select %p1016_p13, %s11112_s9, 1  ;;  %v11330_v45 = vld [vmem:[#allocation2 + $0x4] sm:$0xf]  ;;  %v1350_v60 = vld [vmem:[#allocation2] sm:$0xf]  ;;  %vm2575_vm6 = vcmask 130048  }
  0x5c   : > { %s13071_s5 = sld [smem:[#allocation42_spill]] }
  0x5d   : > { %s7078_s11 = sshll.u32 %s11242_s28, 2  ;;  %s7079_s10 = sshll.u32 %s11242_s28, 3 }
  0x5e   : > { %s13072_s4 = sld [smem:[#allocation39_spill]]  ;;  %s9776_s29 = sshll.u32 %s11242_s28, 4 }
  0x5f   : > { %s1019_s14 = scalar_lea.vmem %s13068_s3, %s7078_s11  ;;  %s13073_s1 = sld [smem:[#allocation49_spill]] }
  0x60   : > { %v1044_v0 = vld [vmem:[%s1019_s14] sm:$0xf]  ;;  %s13070_s26 = smov %s13069_s7  ;;  %v9783_v1 = vld [vmem:[%s13069_s7 + $0x8] sm:$0xff]  ;;  %s13074_s8 = sld [smem:[#allocation44_spill]] }
  0x61   : > { %v1046_v2 = vpack.c.bf16 %v1044_v0, %v1044_v0  ;;  %1095 = vmatpush.bf16.msra.mxu1 %v9783_v1  ;;  %v9782_v5 = vld [vmem:[%s13070_s26] sm:$0xff]  ;;  %s13077_s13 = sld [smem:[#allocation51_spill]] }
  0x62   : > { %v1045_v4 = vld [vmem:[%s13071_s5] sm:$0xf]  ;;  %s13078_s14 = sld [smem:[#allocation41_spill]] }
  0x63   : > { %v1053_v3 = vsel %vm1051_vm0, %v1046_v2, 0  ;;  %s13079_s0 = sld [smem:[#allocation46_spill]] }
  0x64   : > { %1062 = vmatpush.bf16.msra.mxu0 %v1053_v3  ;;  %s1023_s2 = scalar_lea.vmem %s13072_s4, %s7079_s10  ;;  %s13080_s4 = sld [smem:[#allocation40_spill]] }
  0x65   : > { %1096 = vmatpush.bf16.msra.mxu1 %v9782_v5  ;;  %v1173_v6 = vld [vmem:[%s1023_s2] sm:$0xff]  ;;  %v9791_v7 = vld [vmem:[%s13073_s1 + $0x38] sm:$0xff]  ;;  %v9790_v10 = vld [vmem:[%s13073_s1 + $0x30] sm:$0xff] }
  0x66   : > { %v1174_v8 = vpack.c.bf16 %v1173_v6, %v1173_v6  ;;  %v9795_v9 = vld [vmem:[%s13073_s1 + $0x58] sm:$0xff]  ;;  %1295 = vmatpush.bf16.msra.mxu3 %v9791_v7  ;;  %v11276_v12 = vld [vmem:[%s13074_s8] sm:$0xff]  ;;  %v9794_v13 = vld [vmem:[%s13073_s1 + $0x50] sm:$0xff]  ;;  %s13075_s8 = sld [smem:[#allocation45_spill]] }
  0x67   : > { %7083 = vmatmul.msk.bf16.vlgmr.msra.gmra.mxu0 %vm1047_vm1, %v1045_v4  ;;  %v9789_v14 = vld [vmem:[%s13073_s1 + $0x28] sm:$0xff]  ;;  %v9788_v19 = vld [vmem:[%s13073_s1 + $0x20] sm:$0xff]  ;;  %v9787_v32 = vld [vmem:[%s13073_s1 + $0x18] sm:$0xff] }
  0x68   : > { %v1176_v11 = vsel %vm1112_vm2, %v1174_v8, 0  ;;  %v9793_v15 = vld [vmem:[%s13073_s1 + $0x48] sm:$0xff]  ;;  %v9792_v20 = vld [vmem:[%s13073_s1 + $0x40] sm:$0xff]  ;;  %v9786_v33 = vld [vmem:[%s13073_s1 + $0x10] sm:$0xff]  ;;  %s1032_s6 = scalar_lea.vmem %s13078_s14, %s7079_s10  ;;  %s10347_s14 = sshll.u32 %s11112_s9, 4 }
  0x69   : > { %1185 = vmatpush.bf16.msrb.mxu0 %v1176_v11  ;;  %v9785_v34 = vld [vmem:[%s13073_s1 + $0x8] sm:$0xff]  ;;  %v9784_v35 = vld [vmem:[%s13073_s1] sm:$0xff]  ;;  %v9803_v46 = vld [vmem:[%s13077_s13 + $0x38] sm:$0xff] }
  0x6a   : > { %1296 = vmatpush.bf16.msra.mxu3 %v9790_v10  ;;  %v9811_v47 = vld [vmem:[%s13077_s13 + $0x78] sm:$0xff]  ;;  %v9802_v48 = vld [vmem:[%s13077_s13 + $0x30] sm:$0xff]  ;;  %v9801_v50 = vld [vmem:[%s13077_s13 + $0x28] sm:$0xff]  ;;  %s1028_s2 = scalar_lea.vmem %s13080_s4, %s9776_s29  ;;  %s13085_s29 = sld [smem:[#allocation53_spill]] }
  0x6b   : > { %v9810_v49 = vld [vmem:[%s13077_s13 + $0x70] sm:$0xff]  ;;  %v9809_v51 = vld [vmem:[%s13077_s13 + $0x68] sm:$0xff]  ;;  %v9800_v53 = vld [vmem:[%s13077_s13 + $0x20] sm:$0xff] }
  0x6c   : > { %s13076_s11 = smov %s13075_s8  ;;  %v9781_v21 = vld [vmem:[%s13075_s8 + $0x18] sm:$0xff]  ;;  %v9808_v54 = vld [vmem:[%s13077_s13 + $0x60] sm:$0xff]  ;;  %v9818_v61 = vld [vmem:[%s13077_s13 + $0xb0] sm:$0xff] }
  0x6d   : > { %1341 = vmatpush.bf16.msra.mxu0 %v9795_v9  ;;  %1163 = vmatpush.bf16.msrb.mxu1 %v9781_v21  ;;  %v9780_v22 = vld [vmem:[%s13076_s11 + $0x10] sm:$0xff]  ;;  %v9779_v28 = vld [vmem:[%s13076_s11 + $0x8] sm:$0xff]  ;;  %v9778_v30 = vld [vmem:[%s13076_s11] sm:$0xff] }
  0x6e   : > { %1297 = vmatpush.bf16.msra.mxu3 %v9789_v14  ;;  %v9819_v58 = vld [vmem:[%s13077_s13 + $0xb8] sm:$0xff]  ;;  %v9817_v63 = vld [vmem:[%s13077_s13 + $0xa8] sm:$0xff]  ;;  %v9816_v0 = vld [vmem:[%s13077_s13 + $0xa0] sm:$0xff] }
  0x6f   : > { %v9799_v1 = vld [vmem:[%s13077_s13 + $0x18] sm:$0xff]  ;;  %v9798_v5 = vld [vmem:[%s13077_s13 + $0x10] sm:$0xff]  ;;  %v9797_v9 = vld [vmem:[%s13077_s13 + $0x8] sm:$0xff] }
  0x70   : > { %v9807_v2 = vld [vmem:[%s13077_s13 + $0x58] sm:$0xff]  ;;  %v9806_v6 = vld [vmem:[%s13077_s13 + $0x50] sm:$0xff]  ;;  %v9805_v10 = vld [vmem:[%s13077_s13 + $0x48] sm:$0xff]  ;;  %s6802_s8 = scalar_lea.hbm %s13085_s29, %s10347_s14  ;;  %s10835_s11 = scalar_lea.hbm %s13085_s29, 32 }
  0x71   : > { %1342 = vmatpush.bf16.msra.mxu0 %v9794_v13  ;;  %1164 = vmatpush.bf16.msrb.mxu1 %v9780_v22  ;;  %v9815_v3 = vld [vmem:[%s13077_s13 + $0x98] sm:$0xff]  ;;  %v9814_v7 = vld [vmem:[%s13077_s13 + $0x90] sm:$0xff]  ;;  %v9813_v11 = vld [vmem:[%s13077_s13 + $0x88] sm:$0xff]  ;;  %s6805_s4 = sshll.u32 %s6802_s8, 4  ;;  %s6806_s4 = int_to_ptr.hbm [resolvable:$true] %s6805_s4 }
  0x72   : > { %1298 = vmatpush.bf16.msra.mxu3 %v9788_v19  ;;  %v9796_v13 = vld [vmem:[%s13077_s13] sm:$0xff] }
  0x73   : > { %v9804_v14 = vld [vmem:[%s13077_s13 + $0x40] sm:$0xff] }
  0x75   : > { %1343 = vmatpush.bf16.msra.mxu0 %v9793_v15  ;;  %1165 = vmatpush.bf16.msrb.mxu1 %v9779_v28  ;;  %v9812_v15 = vld [vmem:[%s13077_s13 + $0x80] sm:$0xff] }
  0x76   : > { %1466 = vmatpush.bf16.msrb.mxu3 %v9803_v46  ;;  %v7369_v46 = vld [vmem:[%s13079_s0 + $0x68] sm:$0xf0] }
  0x77   : > { %7115 = vmatmul.msk.bf16.vlgmr.msrb.gmra.mxu0 %vm1108_vm3, %v11276_v12 }
  0x79   : > { %1344 = vmatpush.bf16.msra.mxu0 %v9792_v20  ;;  %1166 = vmatpush.bf16.msrb.mxu1 %v9778_v30  ;;  %v10500_v20 = vld [vmem:[#allocation7] ss:$0 sm:$0xff] }
  0x7a   : > { %1467 = vmatpush.bf16.msrb.mxu3 %v9802_v48 }
  0x7d   : > { %1544 = vmatpush.bf16.msrb.mxu0 %v9811_v47 }
  0x7e   : > { %1468 = vmatpush.bf16.msrb.mxu3 %v9801_v50  ;;  %v9831_v50 = vld [vmem:[%s13079_s0 + $0x54] sm:$0xf0] }
  0x81   : > { %1545 = vmatpush.bf16.msrb.mxu0 %v9810_v49  ;;  %v7359_v49 = vld [vmem:[%s13079_s0 + $0x50] sm:$0xf] }
  0x82   : > { %1469 = vmatpush.bf16.msrb.mxu3 %v9800_v53  ;;  %v9830_v53 = vld [vmem:[%s13079_s0 + $0x54] sm:$0xf] }
  0x85   : > { %1546 = vmatpush.bf16.msrb.mxu0 %v9809_v51 }
  0x86   : > { %1470 = vmatpush.bf16.msrb.mxu3 %v9799_v1  ;;  %v9827_v1 = vld [vmem:[%s13079_s0 + $0x34] sm:$0xf0] }
  0x89   : > { %1547 = vmatpush.bf16.msrb.mxu0 %v9808_v54  ;;  %v7361_v54 = vld [vmem:[%s13079_s0 + $0x58] sm:$0xf0] }
  0x8a   : > { %1471 = vmatpush.bf16.msrb.mxu3 %v9798_v5 }
  0x8d   : > { %1548 = vmatpush.bf16.msrb.mxu0 %v9807_v2 }
  0x8e   : > { %1472 = vmatpush.bf16.msrb.mxu3 %v9797_v9 }
  0x91   : > { %1549 = vmatpush.bf16.msrb.mxu0 %v9806_v6 }
  0x92   : > { %1473 = vmatpush.bf16.msrb.mxu3 %v9796_v13 }
  0x95   : > { %1550 = vmatpush.bf16.msrb.mxu0 %v9805_v10 }
  0x99   : > { %1551 = vmatpush.bf16.msrb.mxu0 %v9804_v14 }
  0xe4   : > { %v1064_v16 = vpop.f32.mrf.mxu0 }
  0xe5   : > { %v1072_v17 = vpack.c.bf16 %v1064_v16, %v1064_v16 }
  0xe7   : > { %7092 = vmatmul.msk.bf16.vlgmr.msra.gmra.mxu1 %vm1085_vm4, %v1072_v17 }
  0xe8   : > { %1249 = vmatpush.bf16.msra.mxu1 %v9787_v32 }
  0xec   : > { %v1066_v18 = vpop.f32.mrf.mxu0  ;;  %1250 = vmatpush.bf16.msra.mxu1 %v9786_v33 }
  0xf0   : > { %1251 = vmatpush.bf16.msra.mxu1 %v9785_v34 }
  0xf4   : > { %v1187_v27 = vpop.f32.mrf.mxu0  ;;  %1252 = vmatpush.bf16.msra.mxu1 %v9784_v35 }
  0xfc   : > { %v1189_v29 = vpop.f32.mrf.mxu0 }
  0xfd   : > { %v1192_v31 = vpack.c.bf16 %v1189_v29, %v1187_v27 }
 0x164   : > { %v1098_v23 = vpop.f32.mrf.mxu1 }
 0x165   : > { %v1102_v24 = vpack.c.bf16 %v1098_v23, %v1098_v23 }
 0x167   : > { %7158 = vmatmul.msk.bf16.vlgmr.msra.gmra.mxu3 %vm1155_vm5, %v1102_v24  ;;  %7183 = vmatmul.msk.bf16.vlgmr.msra.gmra.mxu0 %vm1155_vm5, %v1102_v24  ;;  %v1114_v25 = vsel %vm1112_vm2, %v1102_v24, 0 }
 0x168   : > { %1123 = vmatpush.bf16.msra.mxu2 %v1114_v25 }
 0x16b   : > { %7097 = vmatmul.msk.bf16.vlgmr.msra.gmra.mxu2 %vm1108_vm3, %v11276_v12 }
 0x16c   : > { %1200 = vmatpush.bf16.msrb.mxu2 %v9781_v21  ;;  %v1100_v26 = vpop.f32.mrf.mxu1 }
 0x170   : > { %1201 = vmatpush.bf16.msrb.mxu2 %v9780_v22  ;;  %v1398_v22 = vld [vmem:[%s1032_s6] sm:$0xff]  ;;  %s13081_s6 = sld [smem:[#allocation31_spill]] }
 0x174   : > { %1202 = vmatpush.bf16.msrb.mxu2 %v9779_v28 }
 0x176   : > { %s12659_s10 = sand.u32 1, %s13081_s6  }
 0x177   : > { %s13029_s7 = sshll.u32 %s12659_s10, 4 }
 0x178   : > { %1203 = vmatpush.bf16.msrb.mxu2 %v9778_v30  ;;  %s12667_s27 = scalar_lea.vmem [#allocation19], %s13029_s7  ;;  %s6786_s7 = scalar_lea.sflag [#allocation4], %s12659_s10 }
 0x179   : > { %s6803_s30 = sshll.u32 %s12667_s27, 4  ;;  %s6804_s30 = int_to_ptr.vmem [resolvable:$true] %s6803_s30 }
 0x17b   : > { %7116 = vmatmul.msk.bf16.vlgmr.msrb.gmra.mxu2 %vm1155_vm5, %v1192_v31 }
 0x1e4   : > { %v1346_v36 = vpop.f32.mrf.mxu0 }
 0x1e5   : > { %v1373_v41 = vpack.c.bf16 %v1346_v36, %v1346_v36 }
 0x1e7   : > { %v1378_v44 = vsel %vm1112_vm2, %v1373_v41, 0  ;;  %v7377_v41 = vld [vmem:[%s13079_s0 + $0x78] sm:$0xf0] }
 0x1ea   : > { %v11325_v37 = vpop.f32.mrf.mxu3 }
 0x1ec   : > { %v1348_v38 = vpop.f32.mrf.mxu0 }
 0x1ed   : > { %v9835_v38 = vld [vmem:[%s13079_s0 + $0x74] sm:$0xf0] }
 0x1ee   : > { %v1125_v39 = vpop.f32.mrf.mxu2 }
 0x1f2   : > { %v1302_v40 = vpop.f32.mrf.mxu3 }
 0x1f6   : > { %v1127_v42 = vpop.f32.mrf.mxu2 }
 0x1f7   : > { %v1130_v43 = vpack.c.bf16 %v1127_v42, %v1125_v39  ;;  %v9834_v39 = vld [vmem:[%s13079_s0 + $0x74] sm:$0xf]  ;;  %v7367_v42 = vld [vmem:[%s13079_s0 + $0x60] sm:$0xf] }
 0x1f9   : > { %7114 = vmatmul.msk.bf16.vlgmr.msrb.gmra.mxu1 %vm1155_vm5, %v1130_v43  ;;  %v9833_v43 = vld [vmem:[%s13079_s0 + $0x64] sm:$0xf0] }
 0x1fa   : > { %1387 = vmatpush.bf16.msrb.mxu1 %v1378_v44  ;;  %v7380_v44 = vor.u32 %v9834_v39, %v7377_v41  ;;  %v7368_v47 = vor.u32 %v9833_v43, %v7367_v42  ;;  %v9851_v39 = vld [vmem:[%s12999_s15 + $0x74] sm:$0xf0]  ;;  %v7433_v41 = vld [vmem:[%s12999_s15 + $0x68] sm:$0xf0]  ;;  %v7431_v43 = vld [vmem:[%s12999_s15 + $0x60] sm:$0xf] }
 0x1fe   : > { %v11412_v16 = vpop.f32.mrf.mxu2 }
 0x206   : > { %v11414_v17 = vpop.f32.mrf.mxu2 }
 0x209   : > { %7133 = vmatmul.msk.bf16.vlgmr.msra.gmra.mxu1 %vm1155_vm5, %v1102_v24 }
 0x219   : > { %7185 = vmatmul.msk.bf16.vlgmr.msrb.gmra.mxu1 %vm1108_vm3, %v11330_v45 }
 0x276   : > { %v11352_v52 = vpop.f32.mrf.mxu1 }
 0x27e   : > { %v11360_v55 = vpop.f32.mrf.mxu1 }
 0x286   : > { %v1254_v56 = vpop.f32.mrf.mxu1 }
 0x287   : > { %v1351_v57 = vpack.c.bf16 %v1254_v56, %v1254_v56  ;;  %v7360_v56 = vor.u32 %v9831_v50, %v7359_v49  ;;  %v9867_v49 = vld [vmem:[%s12999_s15 + $0xf4] sm:$0xf0] }
 0x289   : > { %v1356_v59 = vsel %vm1112_vm2, %v1351_v57, 0  ;;  %v7364_v57 = vor.u32 %v9830_v53, %v7361_v54  ;;  %v9846_v54 = vld [vmem:[%s12999_s15 + $0x54] sm:$0xf] }
 0x28a   : > { %1365 = vmatpush.bf16.msra.mxu2 %v1356_v59  ;;  %v9829_v59 = vld [vmem:[%s13079_s0 + $0x44] sm:$0xf0] }
 0x28d   : > { %7184 = vmatmul.msk.bf16.vlgmr.msra.gmra.mxu2 %vm1108_vm3, %v1350_v60 }
 0x28e   : > { %1622 = vmatpush.bf16.msrb.mxu2 %v9819_v58  ;;  %v1256_v62 = vpop.f32.mrf.mxu1  ;;  %v7351_v58 = vld [vmem:[%s13079_s0 + $0x40] sm:$0xf] }
 0x28f   : > { %v7352_v62 = vor.u32 %v9829_v59, %v7351_v58  ;;  %v9847_v58 = vld [vmem:[%s12999_s15 + $0x54] sm:$0xf0]  ;;  %v9864_v59 = vld [vmem:[%s12999_s15 + $0xe4] sm:$0xf] }
 0x292   : > { %1623 = vmatpush.bf16.msrb.mxu2 %v9818_v61  ;;  %v7353_v61 = vld [vmem:[%s13079_s0 + $0x48] sm:$0xf0] }
 0x296   : > { %1624 = vmatpush.bf16.msrb.mxu2 %v9817_v63  ;;  %v1389_v4 = vpop.f32.mrf.mxu1 }
 0x29a   : > { %1625 = vmatpush.bf16.msrb.mxu2 %v9816_v0  ;;  %v7343_v0 = vld [vmem:[%s13079_s0 + $0x30] sm:$0xf] }
 0x29b   : > { %v7344_v5 = vor.u32 %v9827_v1, %v7343_v0 }
 0x29e   : > { %1626 = vmatpush.bf16.msrb.mxu2 %v9815_v3  ;;  %v1391_v8 = vpop.f32.mrf.mxu1  ;;  %v9826_v3 = vld [vmem:[%s13079_s0 + $0x34] sm:$0xf] }
 0x29f   : > { %v10501_v8 = vld [vmem:[#allocation8] ss:$0 sm:$0xff] }
 0x2a2   : > { %1627 = vmatpush.bf16.msrb.mxu2 %v9814_v7 }
 0x2a6   : > { %1628 = vmatpush.bf16.msrb.mxu2 %v9813_v11 }
 0x2aa   : > { %1629 = vmatpush.bf16.msrb.mxu2 %v9812_v15 }
 0x2ae   : > { %1803 = vmatpush.bf16.msra.mxu2 %v7380_v44  ;;  %v9849_v44 = vld [vmem:[%s12999_s15 + $0x64] sm:$0xf0] }
 0x2af   : > { %v7432_v50 = vor.u32 %v9849_v44, %v7431_v43  ;;  %v9857_v43 = vld [vmem:[%s12999_s15 + $0xa4] sm:$0xf0] }
 0x310   : > { %v1367_v18 = vpop.f32.mrf.mxu2 }
 0x311   : > { %v1368_v19 = vadd.f32 %v1367_v18, %v11325_v37  ;;  %v7375_v37 = vld [vmem:[%s13079_s0 + $0x70] sm:$0xf]  ;;  %v7335_v18 = vld [vmem:[%s13079_s0 + $0x20] sm:$0xf] }
 0x312   : > { %v7376_v40 = vor.u32 %v9835_v38, %v7375_v37  ;;  %v7439_v37 = vld [vmem:[%s12999_s15 + $0x70] sm:$0xf] }
 0x313   : > { %v1393_v21 = vadd.f32 %v1389_v4, %v1368_v19  ;;  %v7345_v4 = vld [vmem:[%s13079_s0 + $0x38] sm:$0xf0]  ;;  %v9825_v19 = vld [vmem:[%s13079_s0 + $0x24] sm:$0xf0]  ;;  %v7440_v42 = vor.u32 %v9851_v39, %v7439_v37  ;;  %v9856_v39 = vld [vmem:[%s12999_s15 + $0xa4] sm:$0xf] }
 0x314   : > { %1789 = vmatpush.bf16.msra.mxu0 %v7376_v40  ;;  %v7348_v6 = vor.u32 %v9826_v3, %v7345_v4  ;;  %v9848_v40 = vld [vmem:[%s12999_s15 + $0x64] sm:$0xf]  ;;  %v7417_v3 = vld [vmem:[%s12999_s15 + $0x48] sm:$0xf0] }
 0x315   : > { %v1397_v23 = vadd.f32 %v10500_v20, %v1393_v21  ;;  %v9824_v20 = vld [vmem:[%s13079_s0 + $0x24] sm:$0xf]  ;;  %v7336_v21 = vor.u32 %v9825_v19, %v7335_v18  ;;  %v7481_v18 = vld [vmem:[%s12999_s15 + $0xc8] sm:$0xf0]  ;;  %v7479_v19 = vld [vmem:[%s12999_s15 + $0xc0] sm:$0xf] }
 0x317   : > { %v1399_v24 = vmul.f32 %v1398_v22, %v1397_v23  ;;  %v7337_v22 = vld [vmem:[%s13079_s0 + $0x28] sm:$0xf0] }
 0x318   : > { %v1369_v25 = vpop.f32.mrf.mxu2  ;;  %1790 = vmatpush.bf16.msra.mxu0 %v7368_v47  ;;  %v7340_v23 = vor.u32 %v9824_v20, %v7337_v22  ;;  %v7505_v47 = vld [vmem:[%s12999_s15 + $0xf8] sm:$0xf0]  ;;  %v9861_v20 = vld [vmem:[%s12999_s15 + $0xc4] sm:$0xf0]  ;;  %v9842_v22 = vld [vmem:[%s12999_s15 + $0x34] sm:$0xf] }
 0x319   : > { %v1401_v26 = vpack.c.bf16 %v1399_v24, %v1399_v24  ;;  %v9823_v24 = vld [vmem:[%s13079_s0 + $0x14] sm:$0xf0]  ;;  %v9822_v25 = vld [vmem:[%s13079_s0 + $0x14] sm:$0xf] }
 0x31b   : > { %1474 = vmatmul.bf16.vlgmr.msrb.gmra.mxu3 %v1401_v26  ;;  %1552 = vmatmul.bf16.vlgmr.msrb.gmra.mxu0 %v1401_v26 }
 0x31c   : > { %1630 = vmatmul.bf16.vlgmr.msrb.gmra.mxu2 %v1401_v26  ;;  %1791 = vmatpush.bf16.msra.mxu0 %v7360_v56  ;;  %v7425_v56 = vld [vmem:[%s12999_s15 + $0x58] sm:$0xf0] }
 0x31d   : > { %v7428_v0 = vor.u32 %v9846_v54, %v7425_v56  ;;  %v7457_v56 = vld [vmem:[%s12999_s15 + $0x98] sm:$0xf0] }
 0x320   : > { %1792 = vmatpush.bf16.msra.mxu0 %v7352_v62  ;;  %v7495_v62 = vld [vmem:[%s12999_s15 + $0xe0] sm:$0xf] }
 0x324   : > { %1793 = vmatpush.bf16.msra.mxu0 %v7344_v5  ;;  %v9862_v5 = vld [vmem:[%s12999_s15 + $0xd4] sm:$0xf] }
 0x328   : > { %1794 = vmatpush.bf16.msra.mxu0 %v7336_v21 }
 0x398   : > { %v1553_v27 = vpop.f32.mrf.mxu0 }
 0x39e   : > { %v1475_v28 = vpop.f32.mrf.mxu3 }
 0x39f   : > { %v1635_v29 = vpack.c.bf16 %v1475_v28, %v1475_v28  ;;  %v1631_v30 = vpop.f32.mrf.mxu2 }
 0x3a0   : > { %v1652_v31 = vpack.c.bf16 %v1631_v30, %v1631_v30  ;;  %v1555_v32 = vpop.f32.mrf.mxu0  ;;  %v9821_v30 = vld [vmem:[%s13079_s0 + $0x4] sm:$0xf0] }
 0x3a1   : > { %v1637_v33 = vsel %vm1112_vm2, %v1635_v29, 0  ;;  %v7319_v29 = vld [vmem:[%s13079_s0] sm:$0xf] }
 0x3a2   : > { %v1654_v34 = vsel %vm1112_vm2, %v1652_v31, 0  ;;  %1646 = vmatpush.bf16.msra.mxu1 %v1637_v33  ;;  %v9820_v31 = vld [vmem:[%s13079_s0 + $0x4] sm:$0xf]  ;;  %v7320_v32 = vor.u32 %v9821_v30, %v7319_v29  ;;  %v7321_v33 = vld [vmem:[%s13079_s0 + $0x8] sm:$0xf0] }
 0x3a3   : > { %v7473_v29 = vld [vmem:[%s12999_s15 + $0xb8] sm:$0xf0]  ;;  %v7471_v30 = vld [vmem:[%s12999_s15 + $0xb0] sm:$0xf] }
 0x3a5   : > { %7314 = vmatmul.msk.bf16.vlgmr.msra.gmra.mxu1 %vm1108_vm3, %v1350_v60  ;;  %v9828_v60 = vld [vmem:[%s13079_s0 + $0x44] sm:$0xf] }
 0x3a6   : > { %1663 = vmatpush.bf16.msrb.mxu1 %v1654_v34  ;;  %v1477_v35 = vpop.f32.mrf.mxu3  ;;  %v7356_v63 = vor.u32 %v9828_v60, %v7353_v61  ;;  %v7324_v34 = vor.u32 %v9820_v31, %v7321_v33  ;;  %v7497_v60 = vld [vmem:[%s12999_s15 + $0xe8] sm:$0xf0]  ;;  %v9859_v31 = vld [vmem:[%s12999_s15 + $0xb4] sm:$0xf0]  ;;  %v9840_v33 = vld [vmem:[%s12999_s15 + $0x24] sm:$0xf] }
 0x3a7   : > { %v1633_v36 = vpop.f32.mrf.mxu2  ;;  %v9850_v35 = vld [vmem:[%s12999_s15 + $0x74] sm:$0xf]  ;;  %v7500_v61 = vor.u32 %v9864_v59, %v7497_v60  ;;  %v9836_v60 = vld [vmem:[%s12999_s15 + $0x4] sm:$0xf] }
 0x3a8   : > { %v7441_v36 = vld [vmem:[%s12999_s15 + $0x78] sm:$0xf0] }
 0x3a9   : > { %v7444_v38 = vor.u32 %v9850_v35, %v7441_v36  ;;  %v7399_v35 = vld [vmem:[%s12999_s15 + $0x20] sm:$0xf]  ;;  %v9841_v36 = vld [vmem:[%s12999_s15 + $0x24] sm:$0xf0] }
 0x3aa   : > { %2012 = vmatpush.bf16.msra.mxu1 %v7440_v42  ;;  %v7463_v42 = vld [vmem:[%s12999_s15 + $0xa0] sm:$0xf]  ;;  %v7400_v44 = vor.u32 %v9841_v36, %v7399_v35  ;;  %v9878_v36 = vld [vmem:[%s12999_s15 + $0x154] sm:$0xf] }
 0x3ae   : > { %2013 = vmatpush.bf16.msra.mxu1 %v7432_v50 }
 0x3b5   : > { %7315 = vmatmul.msk.bf16.vlgmr.msrb.gmra.mxu1 %vm1108_vm3, %v11330_v45  ;;  %v9832_v45 = vld [vmem:[%s13079_s0 + $0x64] sm:$0xf] }
 0x3b6   : > { %v7372_v48 = vor.u32 %v9832_v45, %v7369_v46  ;;  %v9866_v45 = vld [vmem:[%s12999_s15 + $0xf4] sm:$0xf]  ;;  %v7436_v46 = vor.u32 %v9848_v40, %v7433_v41  ;;  %v7465_v41 = vld [vmem:[%s12999_s15 + $0xa8] sm:$0xf0] }
 0x3b7   : > { %v7468_v50 = vor.u32 %v9856_v39, %v7465_v41  ;;  %v9879_v39 = vld [vmem:[%s12999_s15 + $0x154] sm:$0xf0] }
 0x3b8   : > { %1804 = vmatpush.bf16.msra.mxu2 %v7372_v48  ;;  %v7503_v48 = vld [vmem:[%s12999_s15 + $0xf0] sm:$0xf] }
 0x3b9   : > { %v7504_v53 = vor.u32 %v9867_v49, %v7503_v48  ;;  %v7391_v48 = vld [vmem:[%s12999_s15 + $0x10] sm:$0xf]  ;;  %v9839_v49 = vld [vmem:[%s12999_s15 + $0x14] sm:$0xf0] }
 0x3ba   : > { %v7392_v59 = vor.u32 %v9839_v49, %v7391_v48  ;;  %v9876_v48 = vld [vmem:[%s12999_s15 + $0x144] sm:$0xf]  ;;  %v7577_v49 = vld [vmem:[%s12999_s15 + $0x148] sm:$0xf0] }
 0x3bc   : > { %1805 = vmatpush.bf16.msra.mxu2 %v7364_v57  ;;  %v7423_v57 = vld [vmem:[%s12999_s15 + $0x50] sm:$0xf] }
 0x3bd   : > { %v7424_v4 = vor.u32 %v9847_v58, %v7423_v57  ;;  %v7455_v57 = vld [vmem:[%s12999_s15 + $0x90] sm:$0xf]  ;;  %v9855_v58 = vld [vmem:[%s12999_s15 + $0x94] sm:$0xf0] }
 0x3bf   : > { %2014 = vmatpush.bf16.msra.mxu1 %v7424_v4  ;;  %v9883_v4 = vld [vmem:[%s12999_s15 + $0x174] sm:$0xf0] }
 0x3c0   : > { %1806 = vmatpush.bf16.msra.mxu2 %v7356_v63  ;;  %v9865_v63 = vld [vmem:[%s12999_s15 + $0xe4] sm:$0xf0] }
 0x3c1   : > { %v7496_v1 = vor.u32 %v9865_v63, %v7495_v62  ;;  %v7383_v62 = vld [vmem:[%s12999_s15] sm:$0xf]  ;;  %v9837_v63 = vld [vmem:[%s12999_s15 + $0x4] sm:$0xf0] }
 0x3c4   : > { %1807 = vmatpush.bf16.msra.mxu2 %v7348_v6  ;;  %v7489_v6 = vld [vmem:[%s12999_s15 + $0xd8] sm:$0xf0] }
 0x3c8   : > { %1808 = vmatpush.bf16.msra.mxu2 %v7340_v23  ;;  %v7409_v23 = vld [vmem:[%s12999_s15 + $0x38] sm:$0xf0] }
 0x422   : > { %v1648_v51 = vpop.f32.mrf.mxu1 }
 0x423   : > { %v1649_v7 = vadd.f32 %v1648_v51, %v1553_v27  ;;  %v7329_v27 = vld [vmem:[%s13079_s0 + $0x18] sm:$0xf0]  ;;  %v7508_v51 = vor.u32 %v9866_v45, %v7505_v47  ;;  %v9838_v45 = vld [vmem:[%s12999_s15 + $0x14] sm:$0xf] }
 0x424   : > { %v7332_v28 = vor.u32 %v9822_v25, %v7329_v27  ;;  %v9858_v27 = vld [vmem:[%s12999_s15 + $0xb4] sm:$0xf] }
 0x425   : > { %v7476_v37 = vor.u32 %v9858_v27, %v7473_v29 }
 0x426   : > { %1809 = vmatpush.bf16.msra.mxu2 %v7332_v28  ;;  %v7412_v28 = vor.u32 %v9842_v22, %v7409_v23  ;;  %v9880_v23 = vld [vmem:[%s12999_s15 + $0x164] sm:$0xf] }
 0x42a   : > { %v1650_v2 = vpop.f32.mrf.mxu1  ;;  %1810 = vmatpush.bf16.msra.mxu2 %v7324_v34  ;;  %v7401_v34 = vld [vmem:[%s12999_s15 + $0x28] sm:$0xf0] }
 0x42b   : > { %v9844_v2 = vld [vmem:[%s12999_s15 + $0x44] sm:$0xf]  ;;  %v7404_v40 = vor.u32 %v9840_v33, %v7401_v34  ;;  %v7655_v33 = vld [vmem:[%s12999_s15 + $0x1e0] sm:$0xf]  ;;  %v9897_v34 = vld [vmem:[%s12999_s15 + $0x1e4] sm:$0xf0] }
 0x42c   : > { %v7656_v41 = vor.u32 %v9897_v34, %v7655_v33  ;;  %v7545_v33 = vld [vmem:[%s12999_s15 + $0x108] sm:$0xf0] }
 0x42e   : > { %2054 = vmatpush.bf16.msrb.mxu2 %v7508_v51  ;;  %v7464_v51 = vor.u32 %v9857_v43, %v7463_v42  ;;  %v9894_v42 = vld [vmem:[%s12999_s15 + $0x1d4] sm:$0xf]  ;;  %v7649_v43 = vld [vmem:[%s12999_s15 + $0x1d8] sm:$0xf0] }
 0x432   : > { %v1665_v9 = vpop.f32.mrf.mxu1  ;;  %2055 = vmatpush.bf16.msrb.mxu2 %v7500_v61  ;;  %v7385_v61 = vld [vmem:[%s12999_s15 + $0x8] sm:$0xf0] }
 0x433   : > { %v1669_v10 = vadd.f32 %v1665_v9, %v1649_v7  ;;  %v7487_v7 = vld [vmem:[%s12999_s15 + $0xd0] sm:$0xf]  ;;  %v9845_v9 = vld [vmem:[%s12999_s15 + $0x44] sm:$0xf0] }
 0x435   : > { %v1673_v11 = vadd.f32 %v10501_v8, %v1669_v10  ;;  %v7415_v8 = vld [vmem:[%s12999_s15 + $0x40] sm:$0xf]  ;;  %v9863_v10 = vld [vmem:[%s12999_s15 + $0xd4] sm:$0xf0] }
 0x436   : > { %v7416_v21 = vor.u32 %v9845_v9, %v7415_v8  ;;  %v7449_v8 = vld [vmem:[%s12999_s15 + $0x88] sm:$0xf0]  ;;  %v7447_v9 = vld [vmem:[%s12999_s15 + $0x80] sm:$0xf] }
 0x437   : > { %v1674_v13 = vpack.c.bf16 %v1673_v11, %v1673_v11  ;;  %v7492_v11 = vor.u32 %v9862_v5, %v7489_v6  ;;  %v7456_v5 = vor.u32 %v9855_v58, %v7455_v57  ;;  %v7388_v6 = vor.u32 %v9836_v60, %v7385_v61  ;;  %v9874_v58 = vld [vmem:[%s12999_s15 + $0x134] sm:$0xf]  ;;  %v7567_v60 = vld [vmem:[%s12999_s15 + $0x130] sm:$0xf]  ;;  %v9875_v61 = vld [vmem:[%s12999_s15 + $0x134] sm:$0xf0] }
 0x438   : > { %2015 = vmatpush.bf16.msra.mxu1 %v7416_v21 }
 0x439   : > { %v1676_v14 = vsel %vm1112_vm2, %v1674_v13, 0  ;;  %v7488_v13 = vor.u32 %v9863_v10, %v7487_v7  ;;  %2056 = vmatpush.bf16.msrb.mxu2 %v7492_v11  ;;  %v9852_v7 = vld [vmem:[%s12999_s15 + $0x84] sm:$0xf]  ;;  %v9853_v10 = vld [vmem:[%s12999_s15 + $0x84] sm:$0xf0] }
 0x43a   : > { %v1667_v15 = vpop.f32.mrf.mxu1  ;;  %1685 = vmatpush.bf16.msra.mxu3 %v1676_v14  ;;  %v9860_v14 = vld [vmem:[%s12999_s15 + $0xc4] sm:$0xf]  ;;  %v9898_v11 = vld [vmem:[%s12999_s15 + $0x1f4] sm:$0xf]  ;;  %v7448_v27 = vor.u32 %v9853_v10, %v7447_v9  ;;  %v9873_v10 = vld [vmem:[%s12999_s15 + $0x124] sm:$0xf0] }
 0x43b   : > { %v7420_v15 = vor.u32 %v9844_v2, %v7417_v3  ;;  %v7484_v25 = vor.u32 %v9860_v14, %v7481_v18  ;;  %v7599_v3 = vld [vmem:[%s12999_s15 + $0x170] sm:$0xf] }
 0x43c   : > { %v7600_v22 = vor.u32 %v9883_v4, %v7599_v3  ;;  %v7639_v3 = vld [vmem:[%s12999_s15 + $0x1c0] sm:$0xf]  ;;  %v9893_v4 = vld [vmem:[%s12999_s15 + $0x1c4] sm:$0xf0] }
 0x43d   : > { %7316 = vmatmul.msk.bf16.vlgmr.msra.gmra.mxu3 %vm1108_vm3, %v11276_v12  ;;  %v7327_v12 = vld [vmem:[%s13079_s0 + $0x10] sm:$0xf]  ;;  %2057 = vmatpush.bf16.msrb.mxu2 %v7484_v25  ;;  %v7591_v25 = vld [vmem:[%s12999_s15 + $0x160] sm:$0xf] }
 0x43e   : > { %v7328_v26 = vor.u32 %v9823_v24, %v7327_v12  ;;  %2026 = vmatpush.bf16.msrb.mxu3 %v7504_v53  ;;  %v7407_v12 = vld [vmem:[%s12999_s15 + $0x30] sm:$0xf]  ;;  %v9843_v24 = vld [vmem:[%s12999_s15 + $0x34] sm:$0xf0]  ;;  %v9854_v53 = vld [vmem:[%s12999_s15 + $0x94] sm:$0xf] }
 0x43f   : > { %v7460_v2 = vor.u32 %v9854_v53, %v7457_v56  ;;  %v7652_v53 = vor.u32 %v9894_v42, %v7649_v43  ;;  %v7580_v56 = vor.u32 %v9876_v48, %v7577_v49  ;;  %v9887_v42 = vld [vmem:[%s12999_s15 + $0x194] sm:$0xf0]  ;;  %v9885_v48 = vld [vmem:[%s12999_s15 + $0x184] sm:$0xf0] }
 0x440   : > { %1795 = vmatpush.bf16.msra.mxu0 %v7328_v26  ;;  %v7480_v26 = vor.u32 %v9861_v20, %v7479_v19  ;;  %v7663_v19 = vld [vmem:[%s12999_s15 + $0x1f0] sm:$0xf]  ;;  %v9899_v20 = vld [vmem:[%s12999_s15 + $0x1f4] sm:$0xf0] }
 0x441   : > { %2058 = vmatpush.bf16.msrb.mxu2 %v7476_v37  ;;  %v7664_v29 = vor.u32 %v9899_v20, %v7663_v19  ;;  %v7585_v37 = vld [vmem:[%s12999_s15 + $0x158] sm:$0xf0]  ;;  %v9891_v19 = vld [vmem:[%s12999_s15 + $0x1b4] sm:$0xf0] }
 0x442   : > { %2027 = vmatpush.bf16.msrb.mxu3 %v7496_v1  ;;  %v7601_v1 = vld [vmem:[%s12999_s15 + $0x178] sm:$0xf0] }
 0x444   : > { %1796 = vmatpush.bf16.msra.mxu0 %v7320_v32  ;;  %v7408_v32 = vor.u32 %v9843_v24, %v7407_v12  ;;  %v7593_v12 = vld [vmem:[%s12999_s15 + $0x168] sm:$0xf0]  ;;  %v7452_v24 = vor.u32 %v9852_v7, %v7449_v8  ;;  %v7559_v8 = vld [vmem:[%s12999_s15 + $0x120] sm:$0xf] }
 0x445   : > { %2059 = vmatpush.bf16.msrb.mxu2 %v7468_v50  ;;  %v7575_v50 = vld [vmem:[%s12999_s15 + $0x140] sm:$0xf]  ;;  %v7561_v7 = vld [vmem:[%s12999_s15 + $0x128] sm:$0xf0] }
 0x446   : > { %2028 = vmatpush.bf16.msrb.mxu3 %v7488_v13  ;;  %2016 = vmatpush.bf16.msra.mxu1 %v7408_v32  ;;  %v7665_v13 = vld [vmem:[%s12999_s15 + $0x1f8] sm:$0xf0]  ;;  %v7596_v32 = vor.u32 %v9880_v23, %v7593_v12  ;;  %v7551_v12 = vld [vmem:[%s12999_s15 + $0x110] sm:$0xf] }
 0x448   : > { %2040 = vmatpush.bf16.msrb.mxu0 %v7444_v38  ;;  %v7472_v38 = vor.u32 %v9859_v31, %v7471_v30  ;;  %v9896_v30 = vld [vmem:[%s12999_s15 + $0x1e4] sm:$0xf]  ;;  %v7657_v31 = vld [vmem:[%s12999_s15 + $0x1e8] sm:$0xf0] }
 0x449   : > { %2060 = vmatpush.bf16.msrb.mxu2 %v7460_v2 }
 0x44a   : > { %2029 = vmatpush.bf16.msrb.mxu3 %v7480_v26  ;;  %2017 = vmatpush.bf16.msra.mxu1 %v7400_v44  ;;  %v9881_v26 = vld [vmem:[%s12999_s15 + $0x164] sm:$0xf0]  ;;  %v7588_v44 = vor.u32 %v9878_v36, %v7585_v37 }
 0x44b   : > { %v7592_v35 = vor.u32 %v9881_v26, %v7591_v25  ;;  %v9888_v26 = vld [vmem:[%s12999_s15 + $0x1a4] sm:$0xf]  ;;  %v9869_v36 = vld [vmem:[%s12999_s15 + $0x104] sm:$0xf0] }
 0x44c   : > { %2041 = vmatpush.bf16.msrb.mxu0 %v7436_v46  ;;  %v7393_v46 = vld [vmem:[%s12999_s15 + $0x18] sm:$0xf0] }
 0x44d   : > { %v7396_v54 = vor.u32 %v9838_v45, %v7393_v46  ;;  %2061 = vmatpush.bf16.msrb.mxu2 %v7452_v24  ;;  %v7647_v45 = vld [vmem:[%s12999_s15 + $0x1d0] sm:$0xf]  ;;  %v9895_v46 = vld [vmem:[%s12999_s15 + $0x1d4] sm:$0xf0] }
 0x44e   : > { %2030 = vmatpush.bf16.msrb.mxu3 %v7472_v38  ;;  %2018 = vmatpush.bf16.msra.mxu1 %v7392_v59  ;;  %v7583_v38 = vld [vmem:[%s12999_s15 + $0x150] sm:$0xf]  ;;  %v7569_v59 = vld [vmem:[%s12999_s15 + $0x138] sm:$0xf0]  ;;  %v9871_v24 = vld [vmem:[%s12999_s15 + $0x114] sm:$0xf0] }
 0x44f   : > { %v7552_v25 = vor.u32 %v9871_v24, %v7551_v12  ;;  %v9908_v24 = vld [vmem:[%s12999_s15 + $0x244] sm:$0xf] }
 0x450   : > { %2042 = vmatpush.bf16.msrb.mxu0 %v7428_v0  ;;  %v9882_v0 = vld [vmem:[%s12999_s15 + $0x174] sm:$0xf] }
 0x451   : > { %v7604_v18 = vor.u32 %v9882_v0, %v7601_v1  ;;  %v9892_v0 = vld [vmem:[%s12999_s15 + $0x1c4] sm:$0xf]  ;;  %v7641_v1 = vld [vmem:[%s12999_s15 + $0x1c8] sm:$0xf0] }
 0x452   : > { %2031 = vmatpush.bf16.msrb.mxu3 %v7464_v51  ;;  %v9877_v51 = vld [vmem:[%s12999_s15 + $0x144] sm:$0xf0]  ;;  %v7644_v2 = vor.u32 %v9892_v0, %v7641_v1  ;;  %v7751_v0 = vld [vmem:[%s12999_s15 + $0x260] sm:$0xf] }
 0x453   : > { %v7576_v57 = vor.u32 %v9877_v51, %v7575_v50  ;;  %v9914_v51 = vld [vmem:[%s12999_s15 + $0x274] sm:$0xf]  ;;  %v9913_v1 = vld [vmem:[%s12999_s15 + $0x264] sm:$0xf0] }
 0x454   : > { %2043 = vmatpush.bf16.msrb.mxu0 %v7420_v15  ;;  %v7384_v15 = vor.u32 %v9837_v63, %v7383_v62  ;;  %v7572_v62 = vor.u32 %v9874_v58, %v7569_v59  ;;  %v7568_v63 = vor.u32 %v9875_v61, %v7567_v60  ;;  %v9912_v61 = vld [vmem:[%s12999_s15 + $0x264] sm:$0xf] }
 0x456   : > { %2032 = vmatpush.bf16.msrb.mxu3 %v7456_v5  ;;  %2019 = vmatpush.bf16.msra.mxu1 %v7384_v15  ;;  %v7640_v5 = vor.u32 %v9893_v4, %v7639_v3  ;;  %v7825_v3 = vld [vmem:[%s12999_s15 + $0x2f8] sm:$0xf0]  ;;  %v7823_v4 = vld [vmem:[%s12999_s15 + $0x2f0] sm:$0xf] }
 0x458   : > { %2044 = vmatpush.bf16.msrb.mxu0 %v7412_v28  ;;  %v7668_v28 = vor.u32 %v9898_v11, %v7665_v13  ;;  %v9890_v11 = vld [vmem:[%s12999_s15 + $0x1b4] sm:$0xf]  ;;  %v7633_v13 = vld [vmem:[%s12999_s15 + $0x1b8] sm:$0xf0] }
 0x459   : > { %v7636_v15 = vor.u32 %v9890_v11, %v7633_v13  ;;  %v9911_v11 = vld [vmem:[%s12999_s15 + $0x254] sm:$0xf0] }
 0x45a   : > { %2261 = vmatpush.bf16.msrb.mxu1 %v7600_v22  ;;  %2033 = vmatpush.bf16.msrb.mxu3 %v7448_v27  ;;  %v7553_v22 = vld [vmem:[%s12999_s15 + $0x118] sm:$0xf0]  ;;  %v7625_v27 = vld [vmem:[%s12999_s15 + $0x1a8] sm:$0xf0] }
 0x45c   : > { %2045 = vmatpush.bf16.msrb.mxu0 %v7404_v40  ;;  %v7660_v40 = vor.u32 %v9896_v30, %v7657_v31  ;;  %v9889_v30 = vld [vmem:[%s12999_s15 + $0x1a4] sm:$0xf0] }
 0x45e   : > { %2275 = vmatpush.bf16.msra.mxu3 %v7664_v29  ;;  %2262 = vmatpush.bf16.msrb.mxu1 %v7592_v35  ;;  %v7623_v29 = vld [vmem:[%s12999_s15 + $0x1a0] sm:$0xf] }
 0x45f   : > { %v7624_v31 = vor.u32 %v9889_v30, %v7623_v29  ;;  %v7543_v35 = vld [vmem:[%s12999_s15 + $0x100] sm:$0xf]  ;;  %v9926_v30 = vld [vmem:[%s12999_s15 + $0x2d4] sm:$0xf] }
 0x460   : > { %2046 = vmatpush.bf16.msrb.mxu0 %v7396_v54  ;;  %v7648_v54 = vor.u32 %v9895_v46, %v7647_v45  ;;  %v7544_v37 = vor.u32 %v9869_v36, %v7543_v35  ;;  %v7609_v45 = vld [vmem:[%s12999_s15 + $0x188] sm:$0xf0]  ;;  %v9906_v36 = vld [vmem:[%s12999_s15 + $0x234] sm:$0xf] }
 0x462   : > { %2276 = vmatpush.bf16.msra.mxu3 %v7656_v41  ;;  %v7615_v41 = vld [vmem:[%s12999_s15 + $0x190] sm:$0xf] }
 0x463   : > { %v7616_v43 = vor.u32 %v9887_v42, %v7615_v41  ;;  %v9924_v42 = vld [vmem:[%s12999_s15 + $0x2c4] sm:$0xf] }
 0x464   : > { %2047 = vmatpush.bf16.msrb.mxu0 %v7388_v6  ;;  %v9872_v6 = vld [vmem:[%s12999_s15 + $0x124] sm:$0xf] }
 0x465   : > { %v7564_v9 = vor.u32 %v9872_v6, %v7561_v7  ;;  %v7752_v7 = vor.u32 %v9913_v1, %v7751_v0  ;;  %v7713_v0 = vld [vmem:[%s12999_s15 + $0x218] sm:$0xf0]  ;;  %v7711_v1 = vld [vmem:[%s12999_s15 + $0x210] sm:$0xf] }
 0x466   : > { %2277 = vmatpush.bf16.msra.mxu3 %v7648_v54  ;;  %v7759_v54 = vld [vmem:[%s12999_s15 + $0x270] sm:$0xf] }
 0x46a   : > { %2278 = vmatpush.bf16.msra.mxu3 %v7640_v5  ;;  %v9931_v5 = vld [vmem:[%s12999_s15 + $0x2f4] sm:$0xf0] }
 0x4c0   : > { %v1687_v47 = vpop.f32.mrf.mxu3 }
 0x4c8   : > { %v1689_v14 = vpop.f32.mrf.mxu3 }
 0x4c9   : > { %v1708_v21 = vpack.c.bf16 %v1689_v14, %v1687_v47  ;;  %v7584_v47 = vor.u32 %v9879_v39, %v7583_v38  ;;  %v7560_v14 = vor.u32 %v9873_v10, %v7559_v8  ;;  %v9886_v38 = vld [vmem:[%s12999_s15 + $0x194] sm:$0xf]  ;;  %v7617_v39 = vld [vmem:[%s12999_s15 + $0x198] sm:$0xf0]  ;;  %v7743_v10 = vld [vmem:[%s12999_s15 + $0x250] sm:$0xf] }
 0x4ca   : > { %v9910_v8 = vld [vmem:[%s12999_s15 + $0x254] sm:$0xf]  ;;  %v7744_v12 = vor.u32 %v9911_v11, %v7743_v10  ;;  %v9900_v11 = vld [vmem:[%s12999_s15 + $0x204] sm:$0xf] }
 0x4cb   : > { %1797 = vmatmul.bf16.vlgmr.msra.gmra.mxu0 %v1708_v21  ;;  %1811 = vmatmul.bf16.vlgmr.msra.gmra.mxu2 %v1708_v21  ;;  %v9870_v21 = vld [vmem:[%s12999_s15 + $0x114] sm:$0xf] }
 0x4cc   : > { %2289 = vmatpush.bf16.msra.mxu0 %v7604_v18  ;;  %2303 = vmatpush.bf16.msra.mxu2 %v7668_v28  ;;  %v7631_v18 = vld [vmem:[%s12999_s15 + $0x1b0] sm:$0xf]  ;;  %v7556_v23 = vor.u32 %v9870_v21, %v7553_v22  ;;  %v7628_v28 = vor.u32 %v9888_v26, %v7625_v27  ;;  %v7815_v21 = vld [vmem:[%s12999_s15 + $0x2e0] sm:$0xf]  ;;  %v9929_v22 = vld [vmem:[%s12999_s15 + $0x2e4] sm:$0xf0] }
 0x4cd   : > { %2263 = vmatpush.bf16.msrb.mxu1 %v7584_v47  ;;  %v7632_v20 = vor.u32 %v9891_v19, %v7631_v18  ;;  %v7607_v47 = vld [vmem:[%s12999_s15 + $0x180] sm:$0xf]  ;;  %v9928_v18 = vld [vmem:[%s12999_s15 + $0x2e4] sm:$0xf]  ;;  %v9909_v27 = vld [vmem:[%s12999_s15 + $0x244] sm:$0xf0]  ;;  %v7816_v29 = vor.u32 %v9929_v22, %v7815_v21 }
 0x4ce   : > { %v7608_v49 = vor.u32 %v9885_v48, %v7607_v47  ;;  %v7735_v26 = vld [vmem:[%s12999_s15 + $0x240] sm:$0xf]  ;;  %v9904_v48 = vld [vmem:[%s12999_s15 + $0x224] sm:$0xf]  ;;  %v9918_v21 = vld [vmem:[%s12999_s15 + $0x294] sm:$0xf] }
 0x4cf   : > { %2279 = vmatpush.bf16.msra.mxu3 %v7632_v20  ;;  %v7817_v20 = vld [vmem:[%s12999_s15 + $0x2e8] sm:$0xf0]  ;;  %v7736_v35 = vor.u32 %v9909_v27, %v7735_v26  ;;  %v7777_v22 = vld [vmem:[%s12999_s15 + $0x298] sm:$0xf0] }
 0x4d0   : > { %2290 = vmatpush.bf16.msra.mxu0 %v7596_v32  ;;  %2304 = vmatpush.bf16.msra.mxu2 %v7660_v40  ;;  %v9868_v32 = vld [vmem:[%s12999_s15 + $0x104] sm:$0xf]  ;;  %v7620_v40 = vor.u32 %v9886_v38, %v7617_v39  ;;  %v7727_v38 = vld [vmem:[%s12999_s15 + $0x230] sm:$0xf]  ;;  %v9907_v39 = vld [vmem:[%s12999_s15 + $0x234] sm:$0xf0]  ;;  %v7780_v27 = vor.u32 %v9918_v21, %v7777_v22 }
 0x4d1   : > { %2264 = vmatpush.bf16.msrb.mxu1 %v7576_v57  ;;  %v7548_v34 = vor.u32 %v9868_v32, %v7545_v33  ;;  %v7807_v32 = vld [vmem:[%s12999_s15 + $0x2d0] sm:$0xf]  ;;  %v9927_v33 = vld [vmem:[%s12999_s15 + $0x2d4] sm:$0xf0]  ;;  %v7728_v47 = vor.u32 %v9907_v39, %v7727_v38  ;;  %v9947_v39 = vld [vmem:[%s13001_s17 + $0x68] sm:$0xff] }
 0x4d2   : > { %v7808_v41 = vor.u32 %v9927_v33, %v7807_v32  ;;  %v9941_v26 = vld [vmem:[%s13001_s17 + $0x38] sm:$0xff]  ;;  %v9917_v32 = vld [vmem:[%s12999_s15 + $0x284] sm:$0xf0]  ;;  %v9940_v33 = vld [vmem:[%s13001_s17 + $0x30] sm:$0xff] }
 0x4d3   : > { %2280 = vmatpush.bf16.msra.mxu3 %v7624_v31  ;;  %v7809_v31 = vld [vmem:[%s12999_s15 + $0x2d8] sm:$0xf0]  ;;  %v9948_v38 = vld [vmem:[%s13001_s17 + $0x70] sm:$0xff]  ;;  %v12226_v21 = vld [vmem:[#allocation5] sm:$0xff] }
 0x4d4   : > { %2291 = vmatpush.bf16.msra.mxu0 %v7588_v44  ;;  %2305 = vmatpush.bf16.msra.mxu2 %v7652_v53  ;;  %v9884_v44 = vld [vmem:[%s12999_s15 + $0x184] sm:$0xf]  ;;  %v7761_v53 = vld [vmem:[%s12999_s15 + $0x278] sm:$0xf0] }
 0x4d5   : > { %2265 = vmatpush.bf16.msrb.mxu1 %v7568_v63  ;;  %v7612_v46 = vor.u32 %v9884_v44, %v7609_v45  ;;  %v7764_v59 = vor.u32 %v9914_v51, %v7761_v53  ;;  %v7753_v63 = vld [vmem:[%s12999_s15 + $0x268] sm:$0xf0]  ;;  %v7799_v44 = vld [vmem:[%s12999_s15 + $0x2c0] sm:$0xf]  ;;  %v9925_v45 = vld [vmem:[%s12999_s15 + $0x2c4] sm:$0xf0] }
 0x4d6   : > { %v7756_v6 = vor.u32 %v9912_v61, %v7753_v63  ;;  %v9905_v51 = vld [vmem:[%s12999_s15 + $0x224] sm:$0xf0]  ;;  %v9902_v63 = vld [vmem:[%s12999_s15 + $0x214] sm:$0xf] }
 0x4d7   : > { %2281 = vmatpush.bf16.msra.mxu3 %v7616_v43  ;;  %v7801_v43 = vld [vmem:[%s12999_s15 + $0x2c8] sm:$0xf0] }
 0x4d8   : > { %2292 = vmatpush.bf16.msra.mxu0 %v7580_v56  ;;  %2306 = vmatpush.bf16.msra.mxu2 %v7644_v2  ;;  %v9915_v56 = vld [vmem:[%s12999_s15 + $0x274] sm:$0xf0]  ;;  %v9930_v2 = vld [vmem:[%s12999_s15 + $0x2f4] sm:$0xf]  ;;  %v7804_v53 = vor.u32 %v9924_v42, %v7801_v43  ;;  %v9935_v43 = vld [vmem:[%s13001_s17 + $0x8] sm:$0xff] }
 0x4d9   : > { %2266 = vmatpush.bf16.msrb.mxu1 %v7560_v14  ;;  %v7760_v60 = vor.u32 %v9915_v56, %v7759_v54  ;;  %v7828_v14 = vor.u32 %v9930_v2, %v7825_v3  ;;  %v7800_v54 = vor.u32 %v9925_v45, %v7799_v44  ;;  %v9922_v56 = vld [vmem:[%s12999_s15 + $0x2b4] sm:$0xf]  ;;  %v9903_v2 = vld [vmem:[%s12999_s15 + $0x214] sm:$0xf0]  ;;  %v9934_v45 = vld [vmem:[%s13001_s17] sm:$0xff] }
 0x4da   : > { %v7712_v10 = vor.u32 %v9903_v2, %v7711_v1  ;;  %v9945_v42 = vld [vmem:[%s13001_s17 + $0x58] sm:$0xff]  ;;  %v9944_v44 = vld [vmem:[%s13001_s17 + $0x50] sm:$0xff]  ;;  %v12219_v1 = vpack.c.bf16 %v11414_v17, %v11412_v16  ;;  %v9966_v2 = vld [vmem:[%s13003_s19 + $0x40] sm:$0xff] }
 0x4db   : > { %2282 = vmatpush.bf16.msra.mxu3 %v7608_v49  ;;  %v7721_v49 = vld [vmem:[%s12999_s15 + $0x228] sm:$0xf0] }
 0x4dc   : > { %2293 = vmatpush.bf16.msra.mxu0 %v7572_v62  ;;  %2307 = vmatpush.bf16.msra.mxu2 %v7636_v15  ;;  %v7824_v15 = vor.u32 %v9931_v5, %v7823_v4  ;;  %v9920_v5 = vld [vmem:[%s12999_s15 + $0x2a4] sm:$0xf] }
 0x4dd   : > { %2267 = vmatpush.bf16.msrb.mxu1 %v7552_v25  ;;  %v7737_v25 = vld [vmem:[%s12999_s15 + $0x248] sm:$0xf0] }
 0x4e0   : > { %2294 = vmatpush.bf16.msra.mxu0 %v7564_v9  ;;  %2308 = vmatpush.bf16.msra.mxu2 %v7628_v28  ;;  %v7745_v9 = vld [vmem:[%s12999_s15 + $0x258] sm:$0xf0]  ;;  %v7820_v28 = vor.u32 %v9928_v18, %v7817_v20 }
 0x4e1   : > { %2268 = vmatpush.bf16.msrb.mxu1 %v7544_v37  ;;  %v7729_v37 = vld [vmem:[%s12999_s15 + $0x238] sm:$0xf0] }
 0x4e4   : > { %2295 = vmatpush.bf16.msra.mxu0 %v7556_v23  ;;  %2309 = vmatpush.bf16.msra.mxu2 %v7620_v40  ;;  %v7748_v23 = vor.u32 %v9910_v8, %v7745_v9  ;;  %v7812_v40 = vor.u32 %v9926_v30, %v7809_v31  ;;  %v9921_v8 = vld [vmem:[%s12999_s15 + $0x2a4] sm:$0xf0]  ;;  %v7716_v9 = vor.u32 %v9902_v63, %v7713_v0  ;;  %v7769_v30 = vld [vmem:[%s12999_s15 + $0x288] sm:$0xf0]  ;;  %v7767_v31 = vld [vmem:[%s12999_s15 + $0x280] sm:$0xf] }
 0x4e5   : > { %v9958_v63 = vld [vmem:[%s13003_s19] sm:$0xff]  ;;  %v9967_v0 = vld [vmem:[%s13003_s19 + $0x48] sm:$0xff] }
 0x4e8   : > { %2296 = vmatpush.bf16.msra.mxu0 %v7548_v34  ;;  %2310 = vmatpush.bf16.msra.mxu2 %v7612_v46  ;;  %v7740_v34 = vor.u32 %v9908_v24, %v7737_v25  ;;  %v7732_v46 = vor.u32 %v9906_v36, %v7729_v37  ;;  %v9949_v36 = vld [vmem:[%s13001_s17 + $0x78] sm:$0xff]  ;;  %v9939_v37 = vld [vmem:[%s13001_s17 + $0x28] sm:$0xff] }
 0x548   : > { %v1798_v50 = vpop.f32.mrf.mxu0 }
 0x54e   : > { %v1812_v57 = vpop.f32.mrf.mxu2 }
 0x550   : > { %v1800_v58 = vpop.f32.mrf.mxu0 }
 0x551   : > { %v11925_v62 = vpack.c.bf16 %v1800_v58, %v1798_v50  ;;  %v7719_v50 = vld [vmem:[%s12999_s15 + $0x220] sm:$0xf]  ;;  %v7791_v58 = vld [vmem:[%s12999_s15 + $0x2b0] sm:$0xf] }
 0x552   : > { %v7720_v61 = vor.u32 %v9905_v51, %v7719_v50  ;;  %v9942_v50 = vld [vmem:[%s13001_s17 + $0x40] sm:$0xff]  ;;  %v9973_v51 = vld [vmem:[%s13003_s19 + $0x78] sm:$0xff] }
 0x553   : > { %2020 = vmatmul.bf16.vlgmr.msra.gmra.mxu1 %v11925_v62  ;;  %2048 = vmatmul.bf16.vlgmr.msrb.gmra.mxu0 %v11925_v62 }
 0x554   : > { %2538 = vmatpush.bf16.msrb.mxu0 %v7764_v59  ;;  %2510 = vmatpush.bf16.msra.mxu1 %v7760_v60  ;;  %v9923_v59 = vld [vmem:[%s12999_s15 + $0x2b4] sm:$0xf0]  ;;  %v7724_v60 = vor.u32 %v9904_v48, %v7721_v49  ;;  %v12168_v48 = vpack.c.bf16 %v11360_v55, %v11352_v52  ;;  %v9964_v49 = vld [vmem:[%s13003_s19 + $0x30] sm:$0xff]  ;;  %v9963_v52 = vld [vmem:[%s13003_s19 + $0x28] sm:$0xff] }
 0x555   : > { %v7792_v4 = vor.u32 %v9923_v59, %v7791_v58  ;;  %v9972_v55 = vld [vmem:[%s13003_s19 + $0x70] sm:$0xff]  ;;  %v9969_v59 = vld [vmem:[%s13003_s19 + $0x58] sm:$0xff] }
 0x556   : > { %v1814_v13 = vpop.f32.mrf.mxu2  ;;  %v9960_v58 = vld [vmem:[%s13003_s19 + $0x10] sm:$0xff] }
 0x557   : > { %v11965_v19 = vpack.c.bf16 %v1814_v13, %v1812_v57  ;;  %v7793_v57 = vld [vmem:[%s12999_s15 + $0x2b8] sm:$0xf0]  ;;  %v7705_v13 = vld [vmem:[%s12999_s15 + $0x208] sm:$0xf0] }
 0x558   : > { %2539 = vmatpush.bf16.msrb.mxu0 %v7756_v6  ;;  %2511 = vmatpush.bf16.msra.mxu1 %v7752_v7  ;;  %v7796_v3 = vor.u32 %v9922_v56, %v7793_v57  ;;  %v7785_v6 = vld [vmem:[%s12999_s15 + $0x2a8] sm:$0xf0]  ;;  %v7783_v7 = vld [vmem:[%s12999_s15 + $0x2a0] sm:$0xf]  ;;  %v7708_v24 = vor.u32 %v9900_v11, %v7705_v13  ;;  %v9961_v56 = vld [vmem:[%s13003_s19 + $0x18] sm:$0xff] }
 0x559   : > { %2034 = vmatmul.bf16.vlgmr.msrb.gmra.mxu3 %v11965_v19  ;;  %2062 = vmatmul.bf16.vlgmr.msrb.gmra.mxu2 %v11965_v19  ;;  %v7788_v18 = vor.u32 %v9920_v5, %v7785_v6  ;;  %v7784_v20 = vor.u32 %v9921_v8, %v7783_v7  ;;  %v9970_v57 = vld [vmem:[%s13003_s19 + $0x60] sm:$0xff] }
 0x55a   : > { %2552 = vmatpush.bf16.msrb.mxu2 %v7828_v14  ;;  %2524 = vmatpush.bf16.msrb.mxu3 %v7824_v15  ;;  %v7703_v14 = vld [vmem:[%s12999_s15 + $0x200] sm:$0xf]  ;;  %v9901_v15 = vld [vmem:[%s12999_s15 + $0x204] sm:$0xf0] }
 0x55b   : > { %v7704_v25 = vor.u32 %v9901_v15, %v7703_v14 }
 0x55c   : > { %2540 = vmatpush.bf16.msrb.mxu0 %v7748_v23  ;;  %2512 = vmatpush.bf16.msra.mxu1 %v7744_v12  ;;  %v7775_v23 = vld [vmem:[%s12999_s15 + $0x290] sm:$0xf]  ;;  %v9919_v12 = vld [vmem:[%s12999_s15 + $0x294] sm:$0xf0] }
 0x55e   : > { %2553 = vmatpush.bf16.msrb.mxu2 %v7820_v28  ;;  %2525 = vmatpush.bf16.msrb.mxu3 %v7816_v29  ;;  %v7776_v28 = vor.u32 %v9919_v12, %v7775_v23  ;;  %v9916_v29 = vld [vmem:[%s12999_s15 + $0x284] sm:$0xf] }
 0x560   : > { %2541 = vmatpush.bf16.msrb.mxu0 %v7740_v34  ;;  %2513 = vmatpush.bf16.msra.mxu1 %v7736_v35  ;;  %v7772_v34 = vor.u32 %v9916_v29, %v7769_v30  ;;  %v7768_v35 = vor.u32 %v9917_v32, %v7767_v31 }
 0x562   : > { %2554 = vmatpush.bf16.msrb.mxu2 %v7812_v40  ;;  %2526 = vmatpush.bf16.msrb.mxu3 %v7808_v41  ;;  %v9937_v40 = vld [vmem:[%s13001_s17 + $0x18] sm:$0xff]  ;;  %v9946_v41 = vld [vmem:[%s13001_s17 + $0x60] sm:$0xff] }
 0x563   : > { %2269 = vmatmul.bf16.vlgmr.msrb.gmra.mxu1 %v11925_v62  ;;  %2297 = vmatmul.bf16.vlgmr.msra.gmra.mxu0 %v11925_v62 }
 0x564   : > { %2542 = vmatpush.bf16.msrb.mxu0 %v7732_v46  ;;  %2514 = vmatpush.bf16.msra.mxu1 %v7728_v47  ;;  %v9965_v46 = vld [vmem:[%s13003_s19 + $0x38] sm:$0xff]  ;;  %v9943_v47 = vld [vmem:[%s13001_s17 + $0x48] sm:$0xff] }
 0x566   : > { %2555 = vmatpush.bf16.msrb.mxu2 %v7804_v53  ;;  %2527 = vmatpush.bf16.msrb.mxu3 %v7800_v54  ;;  %v9962_v53 = vld [vmem:[%s13003_s19 + $0x20] sm:$0xff]  ;;  %v9971_v54 = vld [vmem:[%s13003_s19 + $0x68] sm:$0xff] }
 0x568   : > { %2543 = vmatpush.bf16.msrb.mxu0 %v7724_v60  ;;  %2515 = vmatpush.bf16.msra.mxu1 %v7720_v61  ;;  %v9959_v60 = vld [vmem:[%s13003_s19 + $0x8] sm:$0xff]  ;;  %v9968_v61 = vld [vmem:[%s13003_s19 + $0x50] sm:$0xff] }
 0x569   : > { %2283 = vmatmul.bf16.vlgmr.msra.gmra.mxu3 %v11965_v19  ;;  %2311 = vmatmul.bf16.vlgmr.msra.gmra.mxu2 %v11965_v19 }
 0x56a   : > { %2556 = vmatpush.bf16.msrb.mxu2 %v7796_v3  ;;  %2528 = vmatpush.bf16.msrb.mxu3 %v7792_v4 }
 0x56c   : > { %2544 = vmatpush.bf16.msrb.mxu0 %v7716_v9  ;;  %2516 = vmatpush.bf16.msra.mxu1 %v7712_v10 }
 0x56e   : > { %2557 = vmatpush.bf16.msrb.mxu2 %v7788_v18  ;;  %2529 = vmatpush.bf16.msrb.mxu3 %v7784_v20 }
 0x570   : > { %2545 = vmatpush.bf16.msrb.mxu0 %v7708_v24  ;;  %2517 = vmatpush.bf16.msra.mxu1 %v7704_v25 }
 0x572   : > { %2558 = vmatpush.bf16.msrb.mxu2 %v7780_v27  ;;  %2530 = vmatpush.bf16.msrb.mxu3 %v7776_v28 }
 0x573   : > { %2518 = vmatmul.bf16.vlgmr.msra.gmra.mxu1 %v11925_v62  ;;  %2546 = vmatmul.bf16.vlgmr.msrb.gmra.mxu0 %v11925_v62  ;;  %v9938_v62 = vld [vmem:[%s13001_s17 + $0x20] sm:$0xff] }
 0x574   : > { %2727 = vmatpush.bf16.msra.mxu0 %v9941_v26 }
 0x576   : > { %2559 = vmatpush.bf16.msrb.mxu2 %v7772_v34  ;;  %2531 = vmatpush.bf16.msrb.mxu3 %v7768_v35 }
 0x578   : > { %2728 = vmatpush.bf16.msra.mxu0 %v9940_v33 }
 0x579   : > { %2532 = vmatmul.bf16.vlgmr.msrb.gmra.mxu3 %v11965_v19  ;;  %2560 = vmatmul.bf16.vlgmr.msrb.gmra.mxu2 %v11965_v19  ;;  %v9936_v19 = vld [vmem:[%s13001_s17 + $0x10] sm:$0xff] }
 0x57a   : > { %2806 = vmatpush.bf16.msra.mxu2 %v9949_v36 }
 0x57c   : > { %2729 = vmatpush.bf16.msra.mxu0 %v9939_v37 }
 0x57e   : > { %2807 = vmatpush.bf16.msra.mxu2 %v9948_v38 }
 0x580   : > { %2730 = vmatpush.bf16.msra.mxu0 %v9938_v62 }
 0x582   : > { %2808 = vmatpush.bf16.msra.mxu2 %v9947_v39 }
 0x584   : > { %2731 = vmatpush.bf16.msra.mxu0 %v9937_v40  ;;  %v9957_v40 = vld [vmem:[%s13001_s17 + $0xb8] sm:$0xff] }
 0x586   : > { %2809 = vmatpush.bf16.msra.mxu2 %v9946_v41 }
 0x588   : > { %2732 = vmatpush.bf16.msra.mxu0 %v9936_v19 }
 0x58a   : > { %2810 = vmatpush.bf16.msra.mxu2 %v9945_v42  ;;  %v12247_v42 = vld [vmem:[#allocation5 + $0x8] sm:$0xff] }
 0x58c   : > { %2733 = vmatpush.bf16.msra.mxu0 %v9935_v43  ;;  %v9956_v43 = vld [vmem:[%s13001_s17 + $0xb0] sm:$0xff] }
 0x58e   : > { %2811 = vmatpush.bf16.msra.mxu2 %v9944_v44 }
 0x590   : > { %2734 = vmatpush.bf16.msra.mxu0 %v9934_v45  ;;  %v9955_v45 = vld [vmem:[%s13001_s17 + $0xa8] sm:$0xff] }
 0x592   : > { %2812 = vmatpush.bf16.msra.mxu2 %v9943_v47 }
 0x593   : > { %2735 = vmatmul.bf16.vlgmr.msra.gmra.mxu0 %v12168_v48 }
 0x594   : > { %3002 = vmatpush.bf16.msrb.mxu0 %v9965_v46  ;;  %v9954_v46 = vld [vmem:[%s13001_s17 + $0xa0] sm:$0xff] }
 0x596   : > { %2813 = vmatpush.bf16.msra.mxu2 %v9942_v50  ;;  %v9953_v50 = vld [vmem:[%s13001_s17 + $0x98] sm:$0xff] }
 0x598   : > { %3003 = vmatpush.bf16.msrb.mxu0 %v9964_v49 }
 0x599   : > { %2814 = vmatmul.bf16.vlgmr.msra.gmra.mxu2 %v12168_v48 }
 0x59a   : > { %3081 = vmatpush.bf16.msrb.mxu2 %v9973_v51  ;;  %v9952_v51 = vld [vmem:[%s13001_s17 + $0x90] sm:$0xff] }
 0x59c   : > { %3004 = vmatpush.bf16.msrb.mxu0 %v9963_v52  ;;  %v9951_v52 = vld [vmem:[%s13001_s17 + $0x88] sm:$0xff] }
 0x59e   : > { %3082 = vmatpush.bf16.msrb.mxu2 %v9972_v55  ;;  %v9950_v55 = vld [vmem:[%s13001_s17 + $0x80] sm:$0xff] }
 0x5a0   : > { %3005 = vmatpush.bf16.msrb.mxu0 %v9962_v53  ;;  %v9981_v53 = vld [vmem:[%s13003_s19 + $0xb8] sm:$0xff] }
 0x5a2   : > { %3083 = vmatpush.bf16.msrb.mxu2 %v9971_v54  ;;  %v9980_v54 = vld [vmem:[%s13003_s19 + $0xb0] sm:$0xff] }
 0x5a4   : > { %3006 = vmatpush.bf16.msrb.mxu0 %v9961_v56  ;;  %v9979_v56 = vld [vmem:[%s13003_s19 + $0xa8] sm:$0xff] }
 0x5a6   : > { %3084 = vmatpush.bf16.msrb.mxu2 %v9970_v57  ;;  %v9978_v57 = vld [vmem:[%s13003_s19 + $0xa0] sm:$0xff] }
 0x5a8   : > { %3007 = vmatpush.bf16.msrb.mxu0 %v9960_v58  ;;  %v9977_v58 = vld [vmem:[%s13003_s19 + $0x98] sm:$0xff] }
 0x5aa   : > { %3085 = vmatpush.bf16.msrb.mxu2 %v9969_v59  ;;  %v9975_v59 = vld [vmem:[%s13003_s19 + $0x88] sm:$0xff] }
 0x5ac   : > { %3008 = vmatpush.bf16.msrb.mxu0 %v9959_v60  ;;  %v9974_v60 = vld [vmem:[%s13003_s19 + $0x80] sm:$0xff] }
 0x5ae   : > { %3086 = vmatpush.bf16.msrb.mxu2 %v9968_v61  ;;  %v8283_v61 = vld [vmem:[#allocation14 + $0x168] sm:$0xf] }
 0x5b0   : > { %3009 = vmatpush.bf16.msrb.mxu0 %v9958_v63  ;;  %v10028_v63 = vld [vmem:[#allocation14 + $0x170] sm:$0xf0] }
 0x5b2   : > { %3087 = vmatpush.bf16.msrb.mxu2 %v9967_v0  ;;  %v8284_v0 = vor.u32 %v10028_v63, %v8283_v61  ;;  %v10031_v61 = vld [vmem:[#allocation14 + $0x188] sm:$0xf0]  ;;  %v10042_v63 = vld [vmem:[#allocation14 + $0x1e4] sm:$0xf] }
 0x5b3   : > { %3010 = vmatmul.bf16.vlgmr.msrb.gmra.mxu0 %v12219_v1 }
 0x5b6   : > { %3088 = vmatpush.bf16.msrb.mxu2 %v9966_v2  ;;  %v8271_v2 = vld [vmem:[#allocation14 + $0x150] sm:$0xf] }
 0x5b9   : > { %3089 = vmatmul.bf16.vlgmr.msrb.gmra.mxu2 %v12219_v1 }
 0x5ba   : > { %3732 = vmatpush.bf16.msra.mxu2 %v8284_v0 }
 0x5d0   : > { %v2021_v3 = vpop.f32.mrf.mxu1  ;;  %v2049_v4 = vpop.f32.mrf.mxu0 }
 0x5d8   : > { %v2023_v5 = vpop.f32.mrf.mxu1  ;;  %v2051_v8 = vpop.f32.mrf.mxu0 }
 0x5dc   : > { %v2035_v6 = vpop.f32.mrf.mxu3  ;;  %v2063_v7 = vpop.f32.mrf.mxu2 }
 0x5dd   : > { %v2036_v16 = vadd.f32 %v2035_v6, %v2021_v3  ;;  %v2064_v17 = vadd.f32 %v2063_v7, %v2049_v4  ;;  %v10025_v3 = vld [vmem:[#allocation14 + $0x158] sm:$0xf0]  ;;  %v8259_v4 = vld [vmem:[#allocation14 + $0x138] sm:$0xf]  ;;  %v10022_v6 = vld [vmem:[#allocation14 + $0x140] sm:$0xf0] }
 0x5de   : > { %v8379_v7 = vld [vmem:[#allocation14 + $0x228] sm:$0xf] }
 0x5e0   : > { %v2270_v14 = vpop.f32.mrf.mxu1  ;;  %v2298_v15 = vpop.f32.mrf.mxu0 }
 0x5e4   : > { %v2037_v9 = vpop.f32.mrf.mxu3  ;;  %v2065_v10 = vpop.f32.mrf.mxu2 }
 0x5e5   : > { %v2038_v11 = vadd.f32 %v2037_v9, %v2023_v5  ;;  %v2066_v13 = vadd.f32 %v2065_v10, %v2051_v8  ;;  %v8272_v5 = vor.u32 %v10025_v3, %v8271_v2  ;;  %v10052_v8 = vld [vmem:[#allocation14 + $0x230] sm:$0xf0]  ;;  %v8260_v9 = vor.u32 %v10022_v6, %v8259_v4  ;;  %v8345_v3 = vld [vmem:[#allocation14 + $0x1ec] sm:$0xf0]  ;;  %v8333_v6 = vld [vmem:[#allocation14 + $0x1d4] sm:$0xf0] }
 0x5e6   : > { %v8380_v10 = vor.u32 %v10052_v8, %v8379_v7  ;;  %v8348_v4 = vor.u32 %v10042_v63, %v8345_v3  ;;  %v8195_v63 = vld [vmem:[#allocation14 + $0xb0] sm:$0xf] }
 0x5e7   : > { %v2568_v18 = vpack.c.bf16 %v2038_v11, %v2036_v16  ;;  %v2569_v20 = vpack.c.bf16 %v2066_v13, %v2064_v17  ;;  %3733 = vmatpush.bf16.msra.mxu2 %v8272_v5  ;;  %v8367_v16 = vld [vmem:[#allocation14 + $0x210] sm:$0xf]  ;;  %v10049_v17 = vld [vmem:[#allocation14 + $0x218] sm:$0xf0]  ;;  %v8247_v11 = vld [vmem:[#allocation14 + $0x120] sm:$0xf] }
 0x5e8   : > { %v12236_v25 = vpop.f32.mrf.mxu1  ;;  %v12238_v26 = vpop.f32.mrf.mxu0  ;;  %v10019_v13 = vld [vmem:[#allocation14 + $0x128] sm:$0xf0] }
 0x5e9   : > { %2586 = vmatpush.bf16.msrb.mxu1 %v2568_v18  ;;  %2600 = vmatpush.bf16.msra.mxu3 %v2569_v20  ;;  %v10016_v18 = vld [vmem:[#allocation14 + $0x110] sm:$0xf0]  ;;  %v10039_v5 = vld [vmem:[#allocation14 + $0x1cc] sm:$0xf] }
 0x5ea   : > { %v8336_v8 = vor.u32 %v10039_v5, %v8333_v6  ;;  %v10076_v5 = vld [vmem:[#allocation14 + $0x2f0] sm:$0xf0] }
 0x5eb   : > { %3734 = vmatpush.bf16.msra.mxu2 %v8260_v9  ;;  %v10036_v9 = vld [vmem:[#allocation14 + $0x1b4] sm:$0xf] }
 0x5ec   : > { %v2284_v22 = vpop.f32.mrf.mxu3  ;;  %v2312_v23 = vpop.f32.mrf.mxu2  ;;  %7833 = vmatmul.msk.bf16.vlgmr.msrb.gmra.mxu1 %vm2575_vm6, %v12226_v21  ;;  %7834 = vmatmul.msk.bf16.vlgmr.msra.gmra.mxu3 %vm2575_vm6, %v12226_v21 }
 0x5ed   : > { %v12232_v12 = vadd.f32 %v2284_v22, %v2270_v14  ;;  %v12234_v24 = vadd.f32 %v2312_v23, %v2298_v15  ;;  %v8248_v14 = vor.u32 %v10019_v13, %v8247_v11  ;;  %v8235_v15 = vld [vmem:[#allocation14 + $0x108] sm:$0xf]  ;;  %v8223_v22 = vld [vmem:[#allocation14 + $0xf0] sm:$0xf]  ;;  %v10013_v23 = vld [vmem:[#allocation14 + $0xf8] sm:$0xf0] }
 0x5ee   : > { %v8236_v20 = vor.u32 %v10016_v18, %v8235_v15  ;;  %v10033_v11 = vld [vmem:[#allocation14 + $0x19c] sm:$0xf]  ;;  %v8309_v13 = vld [vmem:[#allocation14 + $0x1a4] sm:$0xf0]  ;;  %v1817_v15 = vld [vmem:[#allocation10] sm:$0x3] }
 0x5ef   : > { %3735 = vmatpush.bf16.msra.mxu2 %v8248_v14  ;;  %v8312_v14 = vor.u32 %v10033_v11, %v8309_v13  ;;  %v8463_v13 = vld [vmem:[#allocation14 + $0x2d0] sm:$0xf] }
 0x5f0   : > { %v2519_v29 = vpop.f32.mrf.mxu1  ;;  %v2547_v30 = vpop.f32.mrf.mxu0 }
 0x5f3   : > { %3736 = vmatpush.bf16.msra.mxu2 %v8236_v20  ;;  %v10030_v20 = vld [vmem:[#allocation14 + $0x184] sm:$0xf] }
 0x5f4   : > { %v12240_v27 = vpop.f32.mrf.mxu3  ;;  %v12242_v28 = vpop.f32.mrf.mxu2 }
 0x5f8   : > { %v2521_v33 = vpop.f32.mrf.mxu1  ;;  %v2549_v35 = vpop.f32.mrf.mxu0 }
 0x5fc   : > { %v2533_v31 = vpop.f32.mrf.mxu3  ;;  %v2561_v32 = vpop.f32.mrf.mxu2 }
 0x5fd   : > { %v2534_v36 = vadd.f32 %v2533_v31, %v2519_v29  ;;  %v2562_v62 = vadd.f32 %v2561_v32, %v2547_v30  ;;  %v8224_v29 = vor.u32 %v10013_v23, %v8223_v22  ;;  %v8355_v30 = vld [vmem:[#allocation14 + $0x1f8] sm:$0xf]  ;;  %v10046_v31 = vld [vmem:[#allocation14 + $0x200] sm:$0xf0]  ;;  %v8297_v22 = vld [vmem:[#allocation14 + $0x18c] sm:$0xf0] }
 0x5fe   : > { %v8356_v32 = vor.u32 %v10046_v31, %v8355_v30  ;;  %v8300_v23 = vor.u32 %v10030_v20, %v8297_v22  ;;  %v2653_v31 = vperm.slane %v1817_v15, 0  ;;  %v9997_v20 = vld [vmem:[#allocation14 + $0x7c] sm:$0xf] }
 0x5ff   : > { %3737 = vmatpush.bf16.msra.mxu2 %v8224_v29 }
 0x604   : > { %v2535_v34 = vpop.f32.mrf.mxu3  ;;  %v2563_v38 = vpop.f32.mrf.mxu2 }
 0x605   : > { %v2536_v37 = vadd.f32 %v2535_v34, %v2521_v33  ;;  %v2564_v39 = vadd.f32 %v2563_v38, %v2549_v35  ;;  %v8211_v33 = vld [vmem:[#allocation14 + $0xd8] sm:$0xf]  ;;  %v10010_v34 = vld [vmem:[#allocation14 + $0xe0] sm:$0xf0] }
 0x606   : > { %v8212_v35 = vor.u32 %v10010_v34, %v8211_v33 }
 0x607   : > { %v2610_v41 = vpack.c.bf16 %v2536_v37, %v2534_v36  ;;  %v2611_v19 = vpack.c.bf16 %v2564_v39, %v2562_v62  ;;  %v8343_v36 = vld [vmem:[#allocation14 + $0x1e0] sm:$0xf]  ;;  %v10043_v37 = vld [vmem:[#allocation14 + $0x1e8] sm:$0xf0] }
 0x608   : > { %v8344_v38 = vor.u32 %v10043_v37, %v8343_v36  ;;  %3738 = vmatpush.bf16.msra.mxu2 %v8212_v35  ;;  %v8199_v62 = vld [vmem:[#allocation14 + $0xc0] sm:$0xf]  ;;  %v10007_v39 = vld [vmem:[#allocation14 + $0xc8] sm:$0xf0]  ;;  %v2287_v35 = vadd.f32 %v12240_v27, %v12236_v25 }
 0x609   : > { %2627 = vmatpush.bf16.msra.mxu1 %v2610_v41  ;;  %2641 = vmatpush.bf16.msrb.mxu3 %v2611_v19  ;;  %v8331_v41 = vld [vmem:[#allocation14 + $0x1c8] sm:$0xf]  ;;  %v10040_v19 = vld [vmem:[#allocation14 + $0x1d0] sm:$0xf0] }
 0x60c   : > { %7839 = vmatmul.msk.bf16.vlgmr.msra.gmra.mxu1 %vm2575_vm6, %v12247_v42  ;;  %7840 = vmatmul.msk.bf16.vlgmr.msrb.gmra.mxu3 %vm2575_vm6, %v12247_v42 }
 0x60d   : > { %2885 = vmatpush.bf16.msrb.mxu1 %v9957_v40  ;;  %v8200_v40 = vor.u32 %v10007_v39, %v8199_v62 }
 0x60f   : > { %3739 = vmatpush.bf16.msra.mxu2 %v8200_v40 }
 0x610   : > { %v2736_v44 = vpop.f32.mrf.mxu0 }
 0x611   : > { %2886 = vmatpush.bf16.msrb.mxu1 %v9956_v43  ;;  %v8332_v43 = vor.u32 %v10040_v19, %v8331_v41 }
 0x615   : > { %2887 = vmatpush.bf16.msrb.mxu1 %v9955_v45  ;;  %v8381_v45 = vld [vmem:[#allocation14 + $0x234] sm:$0xf0] }
 0x618   : > { %v2738_v47 = vpop.f32.mrf.mxu0 }
 0x619   : > { %v2899_v49 = vpack.c.bf16 %v2738_v47, %v2736_v44  ;;  %2888 = vmatpush.bf16.msrb.mxu1 %v9954_v46  ;;  %v10051_v44 = vld [vmem:[#allocation14 + $0x22c] sm:$0xf]  ;;  %v8319_v47 = vld [vmem:[#allocation14 + $0x1b0] sm:$0xf] }
 0x61a   : > { %v8384_v46 = vor.u32 %v10051_v44, %v8381_v45 }
 0x61b   : > { %2907 = vmatpush.bf16.msra.mxu3 %v2899_v49  ;;  %v10037_v49 = vld [vmem:[#allocation14 + $0x1b8] sm:$0xf0] }
 0x61c   : > { %3788 = vmatpush.bf16.msrb.mxu2 %v8384_v46 }
 0x61d   : > { %2889 = vmatpush.bf16.msrb.mxu1 %v9953_v50  ;;  %v10048_v50 = vld [vmem:[#allocation14 + $0x214] sm:$0xf] }
 0x61e   : > { %7969 = vmatmul.msk.bf16.vlgmr.msra.gmra.mxu3 %vm2575_vm6, %v12226_v21 }
 0x621   : > { %2890 = vmatpush.bf16.msrb.mxu1 %v9952_v51  ;;  %v8320_v51 = vor.u32 %v10037_v49, %v8319_v47 }
 0x625   : > { %2891 = vmatpush.bf16.msrb.mxu1 %v9951_v52  ;;  %v8369_v52 = vld [vmem:[#allocation14 + $0x21c] sm:$0xf0] }
 0x629   : > { %2892 = vmatpush.bf16.msrb.mxu1 %v9950_v55  ;;  %v8372_v55 = vor.u32 %v10048_v50, %v8369_v52 }
 0x62b   : > { %3789 = vmatpush.bf16.msrb.mxu2 %v8372_v55 }
 0x62c   : > { %2893 = vmatmul.bf16.vlgmr.msrb.gmra.mxu1 %v12168_v48  ;;  %v9976_v48 = vld [vmem:[%s13003_s19 + $0x90] sm:$0xff] }
 0x62d   : > { %3160 = vmatpush.bf16.msra.mxu1 %v9981_v53 }
 0x631   : > { %3161 = vmatpush.bf16.msra.mxu1 %v9980_v54  ;;  %v8307_v54 = vld [vmem:[#allocation14 + $0x198] sm:$0xf] }
 0x635   : > { %3162 = vmatpush.bf16.msra.mxu1 %v9979_v56  ;;  %v10034_v56 = vld [vmem:[#allocation14 + $0x1a0] sm:$0xf0] }
 0x639   : > { %3163 = vmatpush.bf16.msra.mxu1 %v9978_v57  ;;  %v10045_v57 = vld [vmem:[#allocation14 + $0x1fc] sm:$0xf] }
 0x63d   : > { %3164 = vmatpush.bf16.msra.mxu1 %v9977_v58  ;;  %v8308_v58 = vor.u32 %v10034_v56, %v8307_v54 }
 0x641   : > { %3165 = vmatpush.bf16.msra.mxu1 %v9976_v48  ;;  %v8357_v48 = vld [vmem:[#allocation14 + $0x204] sm:$0xf0] }
 0x645   : > { %3166 = vmatpush.bf16.msra.mxu1 %v9975_v59  ;;  %v8360_v59 = vor.u32 %v10045_v57, %v8357_v48  ;;  %v10004_v48 = vld [vmem:[#allocation14 + $0xb0] sm:$0xf0] }
 0x647   : > { %3790 = vmatpush.bf16.msrb.mxu2 %v8360_v59  ;;  %v10003_v59 = vld [vmem:[#allocation14 + $0xac] sm:$0xf] }
 0x649   : > { %3167 = vmatpush.bf16.msra.mxu1 %v9974_v60  ;;  %v8295_v60 = vld [vmem:[#allocation14 + $0x180] sm:$0xf] }
 0x64a   : > { %v8296_v2 = vor.u32 %v10031_v61, %v8295_v60  ;;  %v8189_v61 = vld [vmem:[#allocation14 + $0xb4] sm:$0xf0] }
 0x64b   : > { %3791 = vmatpush.bf16.msrb.mxu2 %v8348_v4  ;;  %v8475_v4 = vld [vmem:[#allocation14 + $0x2e8] sm:$0xf] }
 0x64c   : > { %3168 = vmatmul.bf16.vlgmr.msra.gmra.mxu1 %v12219_v1  ;;  %v8368_v1 = vor.u32 %v10049_v17, %v8367_v16  ;;  %v8476_v6 = vor.u32 %v10076_v5, %v8475_v4  ;;  %v10061_v4 = vld [vmem:[#allocation14 + $0x278] sm:$0xf0]  ;;  %v8115_v5 = vld [vmem:[#allocation14 + $0x18] sm:$0xf] }
 0x64d   : > { %3746 = vmatpush.bf16.msrb.mxu1 %v8380_v10  ;;  %v8321_v10 = vld [vmem:[#allocation14 + $0x1bc] sm:$0xf0] }
 0x64e   : > { %v8324_v16 = vor.u32 %v10036_v9, %v8321_v10  ;;  %v8177_v9 = vld [vmem:[#allocation14 + $0x9c] sm:$0xf0]  ;;  %v8183_v10 = vld [vmem:[#allocation14 + $0x98] sm:$0xf] }
 0x64f   : > { %3792 = vmatpush.bf16.msrb.mxu2 %v8336_v8  ;;  %v10000_v8 = vld [vmem:[#allocation14 + $0x94] sm:$0xf] }
 0x651   : > { %3747 = vmatpush.bf16.msrb.mxu1 %v8368_v1 }
 0x653   : > { %3793 = vmatpush.bf16.msrb.mxu2 %v8324_v16  ;;  %v10002_v16 = vld [vmem:[#allocation14 + $0xa0] sm:$0xf0] }
 0x654   : > { %v8184_v11 = vor.u32 %v10002_v16, %v8183_v10  ;;  %v8123_v10 = vld [vmem:[#allocation14 + $0x20] sm:$0xf]  ;;  %v9987_v16 = vld [vmem:[#allocation14 + $0x28] sm:$0xf0] }
 0x655   : > { %3748 = vmatpush.bf16.msrb.mxu1 %v8356_v32  ;;  %v2654_v32 = vperm.slane %v1817_v15, 1  ;;  %v8163_v15 = vld [vmem:[#allocation14 + $0x78] sm:$0xf] }
 0x657   : > { %3794 = vmatpush.bf16.msrb.mxu2 %v8312_v14 }
 0x659   : > { %3749 = vmatpush.bf16.msrb.mxu1 %v8344_v38 }
 0x65b   : > { %3795 = vmatpush.bf16.msrb.mxu2 %v8300_v23  ;;  %v8165_v23 = vld [vmem:[#allocation14 + $0x84] sm:$0xf0] }
 0x65d   : > { %3750 = vmatpush.bf16.msrb.mxu1 %v8332_v43 }
 0x661   : > { %3751 = vmatpush.bf16.msrb.mxu1 %v8320_v51  ;;  %v3011_v51 = vpop.f32.mrf.mxu0 }
 0x665   : > { %3752 = vmatpush.bf16.msrb.mxu1 %v8308_v58  ;;  %v8187_v58 = vld [vmem:[#allocation14 + $0xa8] sm:$0xf] }
 0x666   : > { %v8188_v60 = vor.u32 %v10004_v48, %v8187_v58  ;;  %v9989_v58 = vld [vmem:[#allocation14 + $0x38] sm:$0xf0]  ;;  %v9988_v48 = vld [vmem:[#allocation14 + $0x34] sm:$0xf] }
 0x668   : > { %3718 = vmatpush.bf16.msra.mxu0 %v8188_v60  ;;  %v8129_v60 = vld [vmem:[#allocation14 + $0x3c] sm:$0xf0] }
 0x669   : > { %v2588_v53 = vpop.f32.mrf.mxu1  ;;  %3753 = vmatpush.bf16.msrb.mxu1 %v8296_v2  ;;  %v8192_v2 = vor.u32 %v10003_v59, %v8189_v61  ;;  %v8135_v61 = vld [vmem:[#allocation14 + $0x38] sm:$0xf] }
 0x66a   : > { %v2589_v18 = vadd.f32 %v2588_v53, %v12232_v12  ;;  %v2315_v12 = vadd.f32 %v12242_v28, %v12238_v26  ;;  %v3013_v28 = vpop.f32.mrf.mxu0 }
 0x66b   : > { %v3174_v53 = vpack.c.bf16 %v3013_v28, %v3011_v51  ;;  %v8147_v51 = vld [vmem:[#allocation14 + $0x50] sm:$0xf] }
 0x66f   : > { %v2602_v0 = vpop.f32.mrf.mxu3 }
 0x670   : > { %v2603_v29 = vadd.f32 %v2602_v0, %v12234_v24  ;;  %v10005_v0 = vld [vmem:[#allocation14 + $0xb8] sm:$0xf0] }
 0x671   : > { %v2590_v7 = vpop.f32.mrf.mxu1  ;;  %v8196_v3 = vor.u32 %v10005_v0, %v8195_v63  ;;  %v9990_v63 = vld [vmem:[#allocation14 + $0x40] sm:$0xf0]  ;;  %v8132_v0 = vor.u32 %v9988_v48, %v8129_v60  ;;  %v8261_v48 = vld [vmem:[#allocation14 + $0x144] sm:$0xf0] }
 0x672   : > { %v2591_v62 = vadd.f32 %v2590_v7, %v2287_v35  ;;  %v10001_v7 = vld [vmem:[#allocation14 + $0x98] sm:$0xf0] }
 0x673   : > { %3802 = vmatpush.bf16.msra.mxu1 %v8196_v3  ;;  %v8415_v3 = vld [vmem:[#allocation14 + $0x270] sm:$0xf] }
 0x677   : > { %v2604_v17 = vpop.f32.mrf.mxu3  ;;  %3803 = vmatpush.bf16.msra.mxu1 %v8184_v11  ;;  %v8124_v11 = vor.u32 %v9987_v16, %v8123_v10  ;;  %v8535_v10 = vld [vmem:[#allocation14 + $0x360] sm:$0xf] }
 0x678   : > { %v2605_v40 = vadd.f32 %v2604_v17, %v2315_v12  ;;  %v8180_v17 = vor.u32 %v10000_v8, %v8177_v9  ;;  %v8117_v8 = vld [vmem:[#allocation14 + $0x24] sm:$0xf0] }
 0x689   : > { %v2629_v1 = vpop.f32.mrf.mxu1 }
 0x68a   : > { %v2648_v30 = vadd.f32 %v2629_v1, %v2589_v18  ;;  %v10073_v1 = vld [vmem:[#allocation14 + $0x2d8] sm:$0xf0]  ;;  %v9998_v18 = vld [vmem:[#allocation14 + $0x80] sm:$0xf0] }
 0x68b   : > { %v8464_v14 = vor.u32 %v10073_v1, %v8463_v13  ;;  %v8164_v22 = vor.u32 %v9998_v18, %v8163_v15  ;;  %v10058_v13 = vld [vmem:[#allocation14 + $0x260] sm:$0xf0]  ;;  %v9983_v15 = vld [vmem:[#allocation14 + $0x8] sm:$0xf0] }
 0x68c   : > { %v2657_v36 = vadd.f32 %v2653_v31, %v2648_v30  ;;  %v9999_v30 = vld [vmem:[#allocation14 + $0x88] sm:$0xf0]  ;;  %v9982_v18 = vld [vmem:[#allocation14 + $0x4] sm:$0xf] }
 0x68f   : > { %v2643_v33 = vpop.f32.mrf.mxu3 }
 0x690   : > { %v2649_v34 = vadd.f32 %v2643_v33, %v2603_v29  ;;  %v8171_v29 = vld [vmem:[#allocation14 + $0x80] sm:$0xf]  ;;  %v8451_v33 = vld [vmem:[#allocation14 + $0x2b8] sm:$0xf] }
 0x691   : > { %v2631_v38 = vpop.f32.mrf.mxu1 }
 0x692   : > { %v2658_v37 = vadd.f32 %v2654_v32, %v2649_v34  ;;  %v2650_v41 = vadd.f32 %v2631_v38, %v2591_v62  ;;  %v10070_v34 = vld [vmem:[#allocation14 + $0x2c0] sm:$0xf0]  ;;  %v8153_v62 = vld [vmem:[#allocation14 + $0x6c] sm:$0xf0] }
 0x693   : > { %v8452_v35 = vor.u32 %v10070_v34, %v8451_v33  ;;  %v9994_v38 = vld [vmem:[#allocation14 + $0x64] sm:$0xf]  ;;  %v8391_v33 = vld [vmem:[#allocation14 + $0x240] sm:$0xf]  ;;  %v10055_v34 = vld [vmem:[#allocation14 + $0x248] sm:$0xf0] }
 0x694   : > { %v3219_v39 = vpack.c.bf16 %v2658_v37, %v2657_v36  ;;  %v2659_v43 = vadd.f32 %v2653_v31, %v2650_v41  ;;  %v8168_v31 = vor.u32 %v9997_v20, %v8165_v23  ;;  %v8151_v36 = vld [vmem:[#allocation14 + $0x60] sm:$0xf]  ;;  %v9995_v37 = vld [vmem:[#allocation14 + $0x68] sm:$0xf0]  ;;  %v8156_v41 = vor.u32 %v9994_v38, %v8153_v62  ;;  %v8105_v23 = vld [vmem:[#allocation14 + $0xc] sm:$0xf0] }
 0x695   : > { %v8152_v12 = vor.u32 %v9995_v37, %v8151_v36  ;;  %v8392_v36 = vor.u32 %v10055_v34, %v8391_v33  ;;  %v8285_v37 = vld [vmem:[#allocation14 + $0x174] sm:$0xf0]  ;;  %v8291_v38 = vld [vmem:[#allocation14 + $0x170] sm:$0xf]  ;;  %v12329_v33 = vpop.f32.mrf.mxu2 }
 0x696   : > { %v3229_v46 = vunpack.c.l.b16 %v3219_v39  ;;  %v3230_v47 = vunpack.c.h.b16 %v3219_v39  ;;  %v8159_v39 = vld [vmem:[#allocation14 + $0x68] sm:$0xf] }
 0x697   : > { %v2645_v24 = vpop.f32.mrf.mxu3 }
 0x698   : > { %v2651_v19 = vadd.f32 %v2645_v24, %v2605_v40  ;;  %v9996_v40 = vld [vmem:[#allocation14 + $0x70] sm:$0xf0] }
 0x699   : > { %v8160_v24 = vor.u32 %v9996_v40, %v8159_v39  ;;  %v8571_v40 = vld [vmem:[#allocation14 + $0x3a8] sm:$0xf] }
 0x69a   : > { %v2660_v44 = vadd.f32 %v2654_v32, %v2651_v19  ;;  %v8172_v32 = vor.u32 %v9999_v30, %v8171_v29  ;;  %v8439_v19 = vld [vmem:[#allocation14 + $0x2a0] sm:$0xf]  ;;  %v8111_v29 = vld [vmem:[#allocation14 + $0x8] sm:$0xf]  ;;  %v9984_v30 = vld [vmem:[#allocation14 + $0x10] sm:$0xf0] }
 0x69c   : > { %v3220_v45 = vpack.c.bf16 %v2660_v44, %v2659_v43  ;;  %3804 = vmatpush.bf16.msra.mxu1 %v8172_v32  ;;  %v10067_v43 = vld [vmem:[#allocation14 + $0x2a8] sm:$0xf0]  ;;  %v8112_v32 = vor.u32 %v9984_v30, %v8111_v29  ;;  %v10017_v30 = vld [vmem:[#allocation14 + $0x118] sm:$0xf0] }
 0x69d   : > { %v8440_v44 = vor.u32 %v10067_v43, %v8439_v19  ;;  %v8573_v43 = vld [vmem:[#allocation14 + $0x3b4] sm:$0xf0] }
 0x69e   : > { %v3231_v49 = vunpack.c.l.b16 %v3220_v45  ;;  %v3232_v50 = vunpack.c.h.b16 %v3220_v45  ;;  %v8139_v45 = vld [vmem:[#allocation14 + $0x48] sm:$0xf] }
 0x6a0   : > { %v12308_v25 = vpack.c.b16 %v3231_v49, %v3229_v46  ;;  %v12310_v27 = vpack.c.b16 %v3232_v50, %v3230_v47  ;;  %3805 = vmatpush.bf16.msra.mxu1 %v8160_v24  ;;  %v9992_v46 = vld [vmem:[#allocation14 + $0x50] sm:$0xf0]  ;;  %v9991_v47 = vld [vmem:[#allocation14 + $0x4c] sm:$0xf]  ;;  %v8141_v50 = vld [vmem:[#allocation14 + $0x54] sm:$0xf0] }
 0x6a1   : > { %v8140_v49 = vor.u32 %v9992_v46, %v8139_v45  ;;  %v8144_v28 = vor.u32 %v9991_v47, %v8141_v50  ;;  %v10099_v24 = vld [vmem:[#allocation14 + $0x3ac] sm:$0xf]  ;;  %v8273_v45 = vld [vmem:[#allocation14 + $0x15c] sm:$0xf0]  ;;  %v10026_v50 = vld [vmem:[#allocation14 + $0x160] sm:$0xf0] }
 0x6a2   : > { %3740 = vmatmul.bf16.vlgmr.msra.gmra.mxu2 %v12308_v25  ;;  %3754 = vmatmul.bf16.vlgmr.msrb.gmra.mxu1 %v12310_v27  ;;  %v8576_v46 = vor.u32 %v10099_v24, %v8573_v43  ;;  %v8511_v24 = vld [vmem:[#allocation14 + $0x330] sm:$0xf]  ;;  %v10085_v43 = vld [vmem:[#allocation14 + $0x338] sm:$0xf0] }
 0x6a3   : > { %4325 = vmatpush.bf16.msra.mxu2 %v8476_v6  ;;  %v8416_v6 = vor.u32 %v10061_v4, %v8415_v3  ;;  %v10093_v3 = vld [vmem:[#allocation14 + $0x37c] sm:$0xf]  ;;  %v8549_v4 = vld [vmem:[#allocation14 + $0x384] sm:$0xf0] }
 0x6a7   : > { %4326 = vmatpush.bf16.msra.mxu2 %v8464_v14  ;;  %v8103_v14 = vld [vmem:[#allocation14] sm:$0xf] }
 0x6a9   : > { %v2894_v26 = vpop.f32.mrf.mxu1 }
 0x6ab   : > { %4327 = vmatpush.bf16.msra.mxu2 %v8452_v35  ;;  %v10027_v35 = vld [vmem:[#allocation14 + $0x16c] sm:$0xf] }
 0x6ac   : > { %v8288_v62 = vor.u32 %v10027_v35, %v8285_v37  ;;  %v8525_v37 = vld [vmem:[#allocation14 + $0x354] sm:$0xf0] }
 0x6af   : > { %4328 = vmatpush.bf16.msra.mxu2 %v8440_v44  ;;  %v10024_v44 = vld [vmem:[#allocation14 + $0x154] sm:$0xf] }
 0x6b0   : > { %v8276_v47 = vor.u32 %v10024_v44, %v8273_v45  ;;  %v10084_v44 = vld [vmem:[#allocation14 + $0x334] sm:$0xf]  ;;  %v8513_v45 = vld [vmem:[#allocation14 + $0x33c] sm:$0xf0] }
 0x6b1   : > { %v2896_v52 = vpop.f32.mrf.mxu1 }
 0x6b2   : > { %v2914_v55 = vpack.c.bf16 %v2896_v52, %v2894_v26  ;;  %3796 = vmatmul.bf16.vlgmr.msrb.gmra.mxu2 %v12310_v27  ;;  %v9993_v26 = vld [vmem:[#allocation14 + $0x58] sm:$0xf0] }
 0x6b3   : > { %v8148_v52 = vor.u32 %v9993_v26, %v8147_v51  ;;  %v8559_v51 = vld [vmem:[#allocation14 + $0x390] sm:$0xf] }
 0x6b4   : > { %2922 = vmatpush.bf16.msrb.mxu3 %v2914_v55  ;;  %v8427_v55 = vld [vmem:[#allocation14 + $0x288] sm:$0xf] }
 0x6b5   : > { %3806 = vmatpush.bf16.msra.mxu1 %v8148_v52  ;;  %v10096_v52 = vld [vmem:[#allocation14 + $0x394] sm:$0xf] }
 0x6b7   : > { %7970 = vmatmul.msk.bf16.vlgmr.msrb.gmra.mxu3 %vm2575_vm6, %v12247_v42 }
 0x6b8   : > { %3182 = vmatpush.bf16.msra.mxu3 %v3174_v53  ;;  %v10064_v53 = vld [vmem:[#allocation14 + $0x290] sm:$0xf0] }
 0x6c7   : > { %8099 = vmatmul.msk.bf16.vlgmr.msra.gmra.mxu3 %vm2575_vm6, %v12226_v21  ;;  %v8175_v21 = vld [vmem:[#allocation14 + $0x90] sm:$0xf] }
 0x6c9   : > { %v3169_v54 = vpop.f32.mrf.mxu1 }
 0x6d1   : > { %v3171_v56 = vpop.f32.mrf.mxu1 }
 0x6d2   : > { %v3189_v57 = vpack.c.bf16 %v3171_v56, %v3169_v54  ;;  %v12321_v54 = vpop.f32.mrf.mxu3  ;;  %v8428_v56 = vor.u32 %v10064_v53, %v8427_v55  ;;  %v8561_v55 = vld [vmem:[#allocation14 + $0x39c] sm:$0xf0] }
 0x6d4   : > { %3197 = vmatpush.bf16.msrb.mxu3 %v3189_v57  ;;  %v8127_v57 = vld [vmem:[#allocation14 + $0x30] sm:$0xf]  ;;  %4329 = vmatpush.bf16.msra.mxu2 %v8428_v56  ;;  %v8564_v56 = vor.u32 %v10096_v52, %v8561_v55  ;;  %v10011_v52 = vld [vmem:[#allocation14 + $0xe8] sm:$0xf0]  ;;  %v8499_v55 = vld [vmem:[#allocation14 + $0x318] sm:$0xf] }
 0x6d5   : > { %v8128_v59 = vor.u32 %v9989_v58, %v8127_v57  ;;  %v10021_v58 = vld [vmem:[#allocation14 + $0x13c] sm:$0xf] }
 0x6d6   : > { %v8264_v60 = vor.u32 %v10021_v58, %v8261_v48  ;;  %v10081_v48 = vld [vmem:[#allocation14 + $0x31c] sm:$0xf] }
 0x6d7   : > { %8100 = vmatmul.msk.bf16.vlgmr.msrb.gmra.mxu3 %vm2575_vm6, %v12247_v42  ;;  %v8176_v42 = vor.u32 %v10001_v7, %v8175_v21  ;;  %v9986_v21 = vld [vmem:[#allocation14 + $0x20] sm:$0xf0]  ;;  %v9985_v7 = vld [vmem:[#allocation14 + $0x1c] sm:$0xf] }
 0x6d8   : > { %3760 = vmatpush.bf16.msra.mxu3 %v8192_v2  ;;  %v8136_v2 = vor.u32 %v9990_v63, %v8135_v61  ;;  %v8120_v9 = vor.u32 %v9985_v7, %v8117_v8  ;;  %4330 = vmatpush.bf16.msra.mxu2 %v8416_v6  ;;  %v10023_v61 = vld [vmem:[#allocation14 + $0x148] sm:$0xf0]  ;;  %v8547_v63 = vld [vmem:[#allocation14 + $0x378] sm:$0xf]  ;;  %v8552_v6 = vor.u32 %v10093_v3, %v8549_v4  ;;  %v8249_v7 = vld [vmem:[#allocation14 + $0x12c] sm:$0xf0] }
 0x6d9   : > { %3719 = vmatpush.bf16.msra.mxu0 %v8176_v42  ;;  %v8116_v42 = vor.u32 %v9986_v21, %v8115_v5  ;;  %v10018_v21 = vld [vmem:[#allocation14 + $0x124] sm:$0xf]  ;;  %v8255_v8 = vld [vmem:[#allocation14 + $0x128] sm:$0xf]  ;;  %v10008_v4 = vld [vmem:[#allocation14 + $0xd0] sm:$0xf0] }
 0x6da   : > { %3807 = vmatpush.bf16.msra.mxu1 %v8136_v2  ;;  %v12323_v20 = vpop.f32.mrf.mxu3  ;;  %v10094_v2 = vld [vmem:[#allocation14 + $0x380] sm:$0xf0] }
 0x6db   : > { %v8548_v5 = vor.u32 %v10094_v2, %v8547_v63  ;;  %v10006_v63 = vld [vmem:[#allocation14 + $0xc4] sm:$0xf]  ;;  %v8207_v2 = vld [vmem:[#allocation14 + $0xc8] sm:$0xf] }
 0x6dc   : > { %3761 = vmatpush.bf16.msra.mxu3 %v8180_v17  ;;  %v8403_v17 = vld [vmem:[#allocation14 + $0x258] sm:$0xf] }
 0x6dd   : > { %3720 = vmatpush.bf16.msra.mxu0 %v8164_v22  ;;  %v8404_v1 = vor.u32 %v10058_v13, %v8403_v17  ;;  %v8104_v22 = vor.u32 %v9983_v15, %v8103_v14  ;;  %v10091_v17 = vld [vmem:[#allocation14 + $0x368] sm:$0xf0]  ;;  %v8537_v13 = vld [vmem:[#allocation14 + $0x36c] sm:$0xf0] }
 0x6de   : > { %3808 = vmatpush.bf16.msra.mxu1 %v8124_v11  ;;  %v10090_v11 = vld [vmem:[#allocation14 + $0x364] sm:$0xf] }
 0x6df   : > { %4331 = vmatpush.bf16.msra.mxu2 %v8404_v1  ;;  %v8536_v1 = vor.u32 %v10091_v17, %v8535_v10  ;;  %v8540_v14 = vor.u32 %v10090_v11, %v8537_v13  ;;  %v2910_v17 = vadd.f32 %v12321_v54, %v12329_v33  ;;  %v10503_v13 = vld [vmem:[#allocation13] ss:$0 sm:$0xff] }
 0x6e0   : > { %3762 = vmatpush.bf16.msra.mxu3 %v8168_v31  ;;  %v8108_v31 = vor.u32 %v9982_v18, %v8105_v23  ;;  %v10015_v18 = vld [vmem:[#allocation14 + $0x10c] sm:$0xf]  ;;  %v8243_v23 = vld [vmem:[#allocation14 + $0x110] sm:$0xf] }
 0x6e1   : > { %3721 = vmatpush.bf16.msra.mxu0 %v8152_v12  ;;  %v10029_v12 = vld [vmem:[#allocation14 + $0x178] sm:$0xf0]  ;;  %v8244_v34 = vor.u32 %v10017_v30, %v8243_v23 }
 0x6e2   : > { %3809 = vmatpush.bf16.msra.mxu1 %v8112_v32  ;;  %v8292_v39 = vor.u32 %v10029_v12, %v8291_v38  ;;  %v10088_v32 = vld [vmem:[#allocation14 + $0x350] sm:$0xf0] }
 0x6e3   : > { %4332 = vmatpush.bf16.msra.mxu2 %v8392_v36  ;;  %v10087_v36 = vld [vmem:[#allocation14 + $0x34c] sm:$0xf]  ;;  %v10012_v12 = vld [vmem:[#allocation14 + $0xf4] sm:$0xf] }
 0x6e4   : > { %3763 = vmatpush.bf16.msra.mxu3 %v8156_v41  ;;  %v10100_v41 = vld [vmem:[#allocation14 + $0x3b0] sm:$0xf0]  ;;  %v8528_v38 = vor.u32 %v10087_v36, %v8525_v37 }
 0x6e5   : > { %3722 = vmatpush.bf16.msra.mxu0 %v8140_v49  ;;  %v8572_v19 = vor.u32 %v10100_v41, %v8571_v40  ;;  %v8279_v49 = vld [vmem:[#allocation14 + $0x158] sm:$0xf]  ;;  %v10014_v41 = vld [vmem:[#allocation14 + $0x100] sm:$0xf0] }
 0x6e6   : > { %v8280_v26 = vor.u32 %v10026_v50, %v8279_v49  ;;  %v10009_v50 = vld [vmem:[#allocation14 + $0xdc] sm:$0xf] }
 0x6e7   : > { %4339 = vmatpush.bf16.msrb.mxu1 %v8572_v19  ;;  %4381 = vmatpush.bf16.msrb.mxu2 %v8576_v46  ;;  %v8512_v46 = vor.u32 %v10085_v43, %v8511_v24  ;;  %v10053_v24 = vld [vmem:[#allocation14 + $0x238] sm:$0xf0]  ;;  %v10124_v43 = vld [vmem:[#allocation14 + $0x470] sm:$0xf0] }
 0x6e8   : > { %3764 = vmatpush.bf16.msra.mxu3 %v8144_v28  ;;  %v10097_v28 = vld [vmem:[#allocation14 + $0x398] sm:$0xf0] }
 0x6e9   : > { %3723 = vmatpush.bf16.msra.mxu0 %v8128_v59  ;;  %v8560_v53 = vor.u32 %v10097_v28, %v8559_v51  ;;  %v8267_v59 = vld [vmem:[#allocation14 + $0x140] sm:$0xf]  ;;  %v8213_v51 = vld [vmem:[#allocation14 + $0xe4] sm:$0xf0] }
 0x6ea   : > { %v8216_v28 = vor.u32 %v10009_v50, %v8213_v51 }
 0x6eb   : > { %4340 = vmatpush.bf16.msrb.mxu1 %v8560_v53  ;;  %4382 = vmatpush.bf16.msrb.mxu2 %v8564_v56  ;;  %v10082_v53 = vld [vmem:[#allocation14 + $0x320] sm:$0xf0] }
 0x6ec   : > { %3765 = vmatpush.bf16.msra.mxu3 %v8132_v0  ;;  %v8268_v0 = vor.u32 %v10023_v61, %v8267_v59  ;;  %v8500_v58 = vor.u32 %v10082_v53, %v8499_v55  ;;  %v8501_v59 = vld [vmem:[#allocation14 + $0x324] sm:$0xf0]  ;;  %v2817_v61 = vpop.f32.mrf.mxu2 }
 0x6ed   : > { %3724 = vmatpush.bf16.msra.mxu0 %v8116_v42  ;;  %v8252_v42 = vor.u32 %v10018_v21, %v8249_v7  ;;  %v8208_v21 = vor.u32 %v10008_v4, %v8207_v2  ;;  %v8363_v2 = vld [vmem:[#allocation14 + $0x200] sm:$0xf] }
 0x6ef   : > { %4341 = vmatpush.bf16.msrb.mxu1 %v8548_v5  ;;  %4383 = vmatpush.bf16.msrb.mxu2 %v8552_v6  ;;  %v8487_v5 = vld [vmem:[#allocation14 + $0x300] sm:$0xf]  ;;  %v10079_v6 = vld [vmem:[#allocation14 + $0x308] sm:$0xf0] }
 0x6f0   : > { %3766 = vmatpush.bf16.msra.mxu3 %v8120_v9  ;;  %v10020_v9 = vld [vmem:[#allocation14 + $0x130] sm:$0xf0]  ;;  %v8488_v7 = vor.u32 %v10079_v6, %v8487_v5  ;;  %v8643_v6 = vld [vmem:[#allocation14 + $0x438] sm:$0xf] }
 0x6f1   : > { %3725 = vmatpush.bf16.msra.mxu0 %v8104_v22  ;;  %v8256_v16 = vor.u32 %v10020_v9, %v8255_v8  ;;  %v8237_v22 = vld [vmem:[#allocation14 + $0x114] sm:$0xf0]  ;;  %v10078_v8 = vld [vmem:[#allocation14 + $0x304] sm:$0xf] }
 0x6f2   : > { %v8240_v29 = vor.u32 %v10015_v18, %v8237_v22  ;;  %v10502_v18 = vld [vmem:[#allocation11] ss:$0 sm:$0xff] }
 0x6f3   : > { %4342 = vmatpush.bf16.msrb.mxu1 %v8536_v1  ;;  %4384 = vmatpush.bf16.msrb.mxu2 %v8540_v14 }
 0x6f4   : > { %3767 = vmatpush.bf16.msra.mxu3 %v8108_v31  ;;  %v8523_v31 = vld [vmem:[#allocation14 + $0x348] sm:$0xf] }
 0x6f5   : > { %3774 = vmatpush.bf16.msrb.mxu0 %v8288_v62  ;;  %v8524_v35 = vor.u32 %v10088_v32, %v8523_v31  ;;  %v8225_v62 = vld [vmem:[#allocation14 + $0xfc] sm:$0xf0] }
 0x6f6   : > { %v8228_v40 = vor.u32 %v10012_v12, %v8225_v62  ;;  %v3214_v12 = vld [vmem:[%s1028_s2 + $0x8] sm:$0xff] }
 0x6f7   : > { %4343 = vmatpush.bf16.msrb.mxu1 %v8524_v35  ;;  %4385 = vmatpush.bf16.msrb.mxu2 %v8528_v38 }
 0x6f8   : > { %3816 = vmatpush.bf16.msrb.mxu3 %v8292_v39  ;;  %v8231_v39 = vld [vmem:[#allocation14 + $0xf8] sm:$0xf] }
 0x6f9   : > { %3775 = vmatpush.bf16.msrb.mxu0 %v8276_v47  ;;  %v8232_v19 = vor.u32 %v10014_v41, %v8231_v39  ;;  %v8516_v47 = vor.u32 %v10084_v44, %v8513_v45  ;;  %v8387_v41 = vld [vmem:[#allocation14 + $0x230] sm:$0xf]  ;;  %v10123_v44 = vld [vmem:[#allocation14 + $0x46c] sm:$0xf] }
 0x6fa   : > { %v8388_v50 = vor.u32 %v10053_v24, %v8387_v41  ;;  %v10038_v41 = vld [vmem:[#allocation14 + $0x1c0] sm:$0xf0] }
 0x6fb   : > { %4344 = vmatpush.bf16.msrb.mxu1 %v8512_v46  ;;  %4386 = vmatpush.bf16.msrb.mxu2 %v8516_v47  ;;  %v8669_v46 = vld [vmem:[#allocation14 + $0x474] sm:$0xf0]  ;;  %v8675_v47 = vld [vmem:[#allocation14 + $0x470] sm:$0xf] }
 0x6fc   : > { %3817 = vmatpush.bf16.msrb.mxu3 %v8280_v26  ;;  %v8219_v26 = vld [vmem:[#allocation14 + $0xe0] sm:$0xf]  ;;  %v8672_v55 = vor.u32 %v10123_v44, %v8669_v46  ;;  %v10109_v44 = vld [vmem:[#allocation14 + $0x3f8] sm:$0xf0]  ;;  %v8615_v46 = vld [vmem:[#allocation14 + $0x3f8] sm:$0xf] }
 0x6fd   : > { %3776 = vmatpush.bf16.msrb.mxu0 %v8264_v60  ;;  %v8220_v56 = vor.u32 %v10011_v52, %v8219_v26  ;;  %v8504_v60 = vor.u32 %v10081_v48, %v8501_v59  ;;  %v10050_v52 = vld [vmem:[#allocation14 + $0x220] sm:$0xf0]  ;;  %v10120_v48 = vld [vmem:[#allocation14 + $0x454] sm:$0xf]  ;;  %v8657_v59 = vld [vmem:[#allocation14 + $0x45c] sm:$0xf0] }
 0x6fe   : > { %v8660_v4 = vor.u32 %v10120_v48, %v8657_v59  ;;  %v8597_v48 = vld [vmem:[#allocation14 + $0x3e4] sm:$0xf0]  ;;  %v8603_v59 = vld [vmem:[#allocation14 + $0x3e0] sm:$0xf] }
 0x6ff   : > { %4345 = vmatpush.bf16.msrb.mxu1 %v8500_v58  ;;  %4387 = vmatpush.bf16.msrb.mxu2 %v8504_v60  ;;  %v10121_v58 = vld [vmem:[#allocation14 + $0x458] sm:$0xf0]  ;;  %v8663_v60 = vld [vmem:[#allocation14 + $0x458] sm:$0xf] }
 0x700   : > { %3818 = vmatpush.bf16.msrb.mxu3 %v8268_v0  ;;  %v8201_v0 = vld [vmem:[#allocation14 + $0xcc] sm:$0xf0] }
 0x701   : > { %3777 = vmatpush.bf16.msrb.mxu0 %v8252_v42  ;;  %v8204_v3 = vor.u32 %v10006_v63, %v8201_v0  ;;  %v8489_v42 = vld [vmem:[#allocation14 + $0x30c] sm:$0xf0] }
 0x702   : > { %v8492_v9 = vor.u32 %v10078_v8, %v8489_v42  ;;  %v8645_v8 = vld [vmem:[#allocation14 + $0x444] sm:$0xf0]  ;;  %v8651_v42 = vld [vmem:[#allocation14 + $0x440] sm:$0xf] }
 0x703   : > { %4346 = vmatpush.bf16.msrb.mxu1 %v8488_v7  ;;  %v10117_v7 = vld [vmem:[#allocation14 + $0x43c] sm:$0xf] }
 0x704   : > { %3819 = vmatpush.bf16.msrb.mxu3 %v8256_v16  ;;  %4388 = vmatpush.bf16.msrb.mxu2 %v8492_v9  ;;  %v3090_v16 = vpop.f32.mrf.mxu2  ;;  %v10119_v9 = vld [vmem:[#allocation14 + $0x448] sm:$0xf0] }
 0x705   : > { %3778 = vmatpush.bf16.msrb.mxu0 %v8240_v29  ;;  %v2912_v29 = vadd.f32 %v12323_v20, %v2817_v61  ;;  %v10122_v61 = vld [vmem:[#allocation14 + $0x460] sm:$0xf0] }
 0x706   : > { %v8664_v5 = vor.u32 %v10122_v61, %v8663_v60  ;;  %v10107_v60 = vld [vmem:[#allocation14 + $0x3e8] sm:$0xf0] }
 0x708   : > { %3820 = vmatpush.bf16.msrb.mxu3 %v8244_v34  ;;  %v3213_v34 = vld [vmem:[%s1028_s2] sm:$0xff]  ;;  %s10829_s2 = sshra.s32 %s6806_s4, 4  ;;  %s10830_s2 = int_to_ptr.hbm [resolvable:$true] %s10829_s2 }
 0x709   : > { %3779 = vmatpush.bf16.msrb.mxu0 %v8228_v40  ;;  %s10831_s28 = scalar_lea.hbm %s10830_s2, 16  ;;  %p10836_p3 = scmp.lt.s32.totalorder %s10830_s2, %s13085_s29 }
 0x70a   : > { %p10832_p0 = scmp.ne.s32.totalorder %s10830_s2, %s10831_s28  ;;  %p10837_p4 = scmp.lt.s32.totalorder %s10835_s11, %s10831_s28 }
 0x70c   : > { %3821 = vmatpush.bf16.msrb.mxu3 %v8232_v19  ;;  %v3092_v31 = vpop.f32.mrf.mxu2  ;;  %v8667_v19 = vld [vmem:[#allocation14 + $0x468] sm:$0xf]  ;;  %p10833_p1 = pnand %p10832_p0, %p11129_p5  ;;  %p10838_p7 = por %p10837_p4, %p10836_p3 }
 0x70d   : > { %3780 = vmatpush.bf16.msrb.mxu0 %v8216_v28  ;;  %v8668_v26 = vor.u32 %v10124_v43, %v8667_v19  ;;  %v8375_v28 = vld [vmem:[#allocation14 + $0x218] sm:$0xf]  ;;  %v8607_v43 = vld [vmem:[#allocation14 + $0x3f0] sm:$0xf] }
 0x70e   : > { %v8376_v63 = vor.u32 %v10050_v52, %v8375_v28  ;;  %v10035_v28 = vld [vmem:[#allocation14 + $0x1a8] sm:$0xf0]  ;;  %p10834_p2 = pneg %p10833_p1 }
 0x710   : > { %3822 = vmatpush.bf16.msrb.mxu3 %v8220_v56  ;;  %v8655_v56 = vld [vmem:[#allocation14 + $0x450] sm:$0xf]  ;;  %p10839_p8 = pnand %p10838_p7, %p10834_p2 }
 0x711   : > { %3781 = vmatpush.bf16.msrb.mxu0 %v8204_v3  ;;  %v8656_v0 = vor.u32 %v10121_v58, %v8655_v56  ;;  %v10047_v3 = vld [vmem:[#allocation14 + $0x208] sm:$0xf0]  ;;  %v10106_v56 = vld [vmem:[#allocation14 + $0x3e0] sm:$0xf0]  ;;  %v10105_v58 = vld [vmem:[#allocation14 + $0x3dc] sm:$0xf] }
 0x714   : > { %3823 = vmatpush.bf16.msrb.mxu3 %v8208_v21  ;;  %v10118_v21 = vld [vmem:[#allocation14 + $0x440] sm:$0xf0] }
 0x73a   : > { %v12325_v57 = vpop.f32.mrf.mxu3 }
 0x73b   : > { %v2929_v14 = vadd.f32 %v12325_v57, %v2910_v17  ;;  %v8351_v17 = vld [vmem:[#allocation14 + $0x1e8] sm:$0xf] }
 0x73d   : > { %v2934_v30 = vadd.f32 %v10502_v18, %v2929_v14  ;;  %v8631_v14 = vld [vmem:[#allocation14 + $0x420] sm:$0xf] }
 0x742   : > { %v12327_v15 = vpop.f32.mrf.mxu3 }
 0x743   : > { %v2930_v32 = vadd.f32 %v12327_v15, %v2912_v29  ;;  %v8639_v29 = vld [vmem:[#allocation14 + $0x428] sm:$0xf] }
 0x745   : > { %v2935_v57 = vadd.f32 %v10502_v18, %v2930_v32  ;;  %v10115_v18 = vld [vmem:[#allocation14 + $0x428] sm:$0xf0] }
 0x746   : > { %v8632_v32 = vor.u32 %v10115_v18, %v8631_v14 }
 0x74a   : > { %v3184_v49 = vpop.f32.mrf.mxu3 }
 0x74b   : > { %v3185_v11 = vadd.f32 %v3184_v49, %v3090_v16  ;;  %v10125_v49 = vld [vmem:[#allocation14 + $0x478] sm:$0xf0]  ;;  %v8644_v16 = vor.u32 %v10118_v21, %v8643_v6  ;;  %v8600_v6 = vor.u32 %v10105_v58, %v8597_v48  ;;  %v8604_v21 = vor.u32 %v10107_v60, %v8603_v59  ;;  %v10139_v58 = vld [vmem:[#allocation14 + $0x4e8] sm:$0xf0]  ;;  %v10138_v48 = vld [vmem:[#allocation14 + $0x4e4] sm:$0xf] }
 0x74c   : > { %v8676_v53 = vor.u32 %v10125_v49, %v8675_v47  ;;  %v10110_v47 = vld [vmem:[#allocation14 + $0x400] sm:$0xf0]  ;;  %v8729_v59 = vld [vmem:[#allocation14 + $0x4ec] sm:$0xf0] }
 0x752   : > { %v3186_v10 = vpop.f32.mrf.mxu3 }
 0x753   : > { %v3187_v54 = vadd.f32 %v3186_v10, %v3092_v31  ;;  %v8364_v10 = vor.u32 %v10047_v3, %v8363_v2  ;;  %v8583_v3 = vld [vmem:[#allocation14 + $0x3c0] sm:$0xf] }
 0x75a   : > { %v3199_v1 = vpop.f32.mrf.mxu3 }
 0x75b   : > { %v3204_v22 = vadd.f32 %v3199_v1, %v3185_v11  ;;  %v10044_v11 = vld [vmem:[#allocation14 + $0x1f0] sm:$0xf0]  ;;  %v8652_v1 = vor.u32 %v10119_v9, %v8651_v42  ;;  %v8477_v42 = vld [vmem:[#allocation14 + $0x2f4] sm:$0xf0]  ;;  %v8591_v9 = vld [vmem:[#allocation14 + $0x3c8] sm:$0xf] }
 0x75c   : > { %v8352_v31 = vor.u32 %v10044_v11, %v8351_v17  ;;  %v10077_v11 = vld [vmem:[#allocation14 + $0x2f8] sm:$0xf0] }
 0x75d   : > { %v3209_v23 = vadd.f32 %v10503_v13, %v3204_v22  ;;  %v10114_v22 = vld [vmem:[#allocation14 + $0x424] sm:$0xf] }
 0x75f   : > { %v3211_v33 = vmul.f32 %v3209_v23, %v2934_v30  ;;  %v8633_v23 = vld [vmem:[#allocation14 + $0x42c] sm:$0xf0]  ;;  %v10116_v30 = vld [vmem:[#allocation14 + $0x430] sm:$0xf0] }
 0x761   : > { %v3215_v37 = vmul.f32 %v3213_v34, %v3211_v33  ;;  %v10041_v33 = vld [vmem:[#allocation14 + $0x1d8] sm:$0xf0]  ;;  %v8636_v34 = vor.u32 %v10114_v22, %v8633_v23  ;;  %v10147_v22 = vld [vmem:[#allocation14 + $0x52c] sm:$0xf]  ;;  %v8765_v23 = vld [vmem:[#allocation14 + $0x534] sm:$0xf0] }
 0x762   : > { %v3201_v35 = vpop.f32.mrf.mxu3 }
 0x763   : > { %v3205_v36 = vadd.f32 %v3201_v35, %v3187_v54  ;;  %v3217_v39 = vpack.c.bf16 %v3215_v37, %v3215_v37  ;;  %v8339_v54 = vld [vmem:[#allocation14 + $0x1d0] sm:$0xf]  ;;  %v8640_v35 = vor.u32 %v10116_v30, %v8639_v29  ;;  %v10111_v37 = vld [vmem:[#allocation14 + $0x40c] sm:$0xf] }
 0x765   : > { %v3210_v38 = vadd.f32 %v10503_v13, %v3205_v36  ;;  %v3223_v45 = vunpack.c.l.b16 %v3217_v39  ;;  %v8648_v13 = vor.u32 %v10117_v7, %v8645_v8  ;;  %v8619_v36 = vld [vmem:[#allocation14 + $0x408] sm:$0xf]  ;;  %v8340_v39 = vor.u32 %v10041_v33, %v8339_v54  ;;  %v8585_v7 = vld [vmem:[#allocation14 + $0x3cc] sm:$0xf0]  ;;  %v10075_v8 = vld [vmem:[#allocation14 + $0x2ec] sm:$0xf] }
 0x766   : > { %v8480_v18 = vor.u32 %v10075_v8, %v8477_v42  ;;  %v10072_v54 = vld [vmem:[#allocation14 + $0x2d4] sm:$0xf]  ;;  %v8465_v33 = vld [vmem:[#allocation14 + $0x2dc] sm:$0xf0]  ;;  %v8717_v8 = vld [vmem:[#allocation14 + $0x4d4] sm:$0xf0] }
 0x767   : > { %v3212_v62 = vmul.f32 %v3210_v38, %v2935_v57  ;;  %v10112_v57 = vld [vmem:[#allocation14 + $0x410] sm:$0xf0]  ;;  %v8621_v38 = vld [vmem:[#allocation14 + $0x414] sm:$0xf0] }
 0x768   : > { %v8624_v24 = vor.u32 %v10111_v37, %v8621_v38  ;;  %v10145_v37 = vld [vmem:[#allocation14 + $0x518] sm:$0xf0]  ;;  %v10144_v38 = vld [vmem:[#allocation14 + $0x514] sm:$0xf] }
 0x769   : > { %v3216_v20 = vmul.f32 %v3214_v12, %v3212_v62  ;;  %v8627_v12 = vld [vmem:[#allocation14 + $0x410] sm:$0xf]  ;;  %v10113_v62 = vld [vmem:[#allocation14 + $0x418] sm:$0xf0] }
 0x76a   : > { %v8628_v19 = vor.u32 %v10113_v62, %v8627_v12  ;;  %v8753_v12 = vld [vmem:[#allocation14 + $0x51c] sm:$0xf0]  ;;  %v8468_v62 = vor.u32 %v10072_v54, %v8465_v33  ;;  %v8405_v54 = vld [vmem:[#allocation14 + $0x264] sm:$0xf0] }
 0x76b   : > { %v3218_v40 = vpack.c.bf16 %v3216_v20, %v3216_v20  ;;  %v8620_v20 = vor.u32 %v10112_v57, %v8619_v36  ;;  %v10074_v36 = vld [vmem:[#allocation14 + $0x2e0] sm:$0xf0]  ;;  %v8751_v57 = vld [vmem:[#allocation14 + $0x510] sm:$0xf]  ;;  %v8411_v33 = vld [vmem:[#allocation14 + $0x260] sm:$0xf] }
 0x76d   : > { %v3224_v15 = vunpack.c.l.b16 %v3218_v40  ;;  %v8327_v40 = vld [vmem:[#allocation14 + $0x1b8] sm:$0xf] }
 0x76e   : > { %v8328_v49 = vor.u32 %v10038_v41, %v8327_v40  ;;  %v10069_v40 = vld [vmem:[#allocation14 + $0x2bc] sm:$0xf]  ;;  %v8453_v41 = vld [vmem:[#allocation14 + $0x2c4] sm:$0xf0] }
 0x76f   : > { %v12340_v51 = vpack.c.b16 %v3224_v15, %v3223_v45  ;;  %v10108_v45 = vld [vmem:[#allocation14 + $0x3f4] sm:$0xf]  ;;  %v8609_v15 = vld [vmem:[#allocation14 + $0x3fc] sm:$0xf0] }
 0x770   : > { %v8612_v52 = vor.u32 %v10108_v45, %v8609_v15  ;;  %v10142_v45 = vld [vmem:[#allocation14 + $0x500] sm:$0xf0]  ;;  %v10141_v15 = vld [vmem:[#allocation14 + $0x4fc] sm:$0xf] }
 0x771   : > { %3726 = vmatmul.bf16.vlgmr.msra.gmra.mxu0 %v12340_v51  ;;  %3768 = vmatmul.bf16.vlgmr.msra.gmra.mxu3 %v12340_v51 }
 0x772   : > { %3810 = vmatmul.bf16.vlgmr.msra.gmra.mxu1 %v12340_v51  ;;  %3830 = vmatpush.bf16.msra.mxu0 %v8388_v50  ;;  %v8608_v50 = vor.u32 %v10109_v44, %v8607_v43  ;;  %v10071_v43 = vld [vmem:[#allocation14 + $0x2c8] sm:$0xf0]  ;;  %v8739_v44 = vld [vmem:[#allocation14 + $0x4f8] sm:$0xf] }
 0x773   : > { %4333 = vmatmul.bf16.vlgmr.msra.gmra.mxu2 %v12340_v51  ;;  %4353 = vmatpush.bf16.msra.mxu3 %v8668_v26  ;;  %v8315_v26 = vld [vmem:[#allocation14 + $0x1a0] sm:$0xf] }
 0x774   : > { %4395 = vmatpush.bf16.msra.mxu1 %v8672_v55  ;;  %4437 = vmatpush.bf16.msra.mxu2 %v8676_v53  ;;  %v8616_v55 = vor.u32 %v10110_v47, %v8615_v46  ;;  %v8595_v53 = vld [vmem:[#allocation14 + $0x3d8] sm:$0xf]  ;;  %v8316_v61 = vor.u32 %v10035_v28, %v8315_v26  ;;  %v8741_v46 = vld [vmem:[#allocation14 + $0x504] sm:$0xf0]  ;;  %v8456_v47 = vor.u32 %v10069_v40, %v8453_v41  ;;  %v10066_v26 = vld [vmem:[#allocation14 + $0x2a4] sm:$0xf] }
 0x775   : > { %v8596_v2 = vor.u32 %v10106_v56, %v8595_v53  ;;  %v8441_v28 = vld [vmem:[#allocation14 + $0x2ac] sm:$0xf0]  ;;  %v10068_v53 = vld [vmem:[#allocation14 + $0x2b0] sm:$0xf0]  ;;  %v8727_v56 = vld [vmem:[#allocation14 + $0x4e0] sm:$0xf] }
 0x776   : > { %3831 = vmatpush.bf16.msra.mxu0 %v8376_v63  ;;  %v8303_v63 = vld [vmem:[#allocation14 + $0x188] sm:$0xf]  ;;  %v8444_v60 = vor.u32 %v10066_v26, %v8441_v28  ;;  %v10172_v26 = vld [vmem:[#allocation14 + $0x5f0] sm:$0xf0]  ;;  %v10171_v28 = vld [vmem:[#allocation14 + $0x5ec] sm:$0xf] }
 0x777   : > { %4354 = vmatpush.bf16.msra.mxu3 %v8656_v0  ;;  %v10032_v0 = vld [vmem:[#allocation14 + $0x190] sm:$0xf0]  ;;  %v8399_v41 = vld [vmem:[#allocation14 + $0x248] sm:$0xf] }
 0x778   : > { %4396 = vmatpush.bf16.msra.mxu1 %v8660_v4  ;;  %4438 = vmatpush.bf16.msra.mxu2 %v8664_v5  ;;  %v10103_v4 = vld [vmem:[#allocation14 + $0x3c8] sm:$0xf0]  ;;  %v10102_v5 = vld [vmem:[#allocation14 + $0x3c4] sm:$0xf]  ;;  %v8304_v17 = vor.u32 %v10032_v0, %v8303_v63  ;;  %v8728_v63 = vor.u32 %v10139_v58, %v8727_v56  ;;  %v8867_v56 = vld [vmem:[#allocation14 + $0x5f0] sm:$0xf] }
 0x779   : > { %v8584_v14 = vor.u32 %v10103_v4, %v8583_v3  ;;  %v8588_v29 = vor.u32 %v10102_v5, %v8585_v7  ;;  %v10063_v0 = vld [vmem:[#allocation14 + $0x28c] sm:$0xf]  ;;  %v8435_v3 = vld [vmem:[#allocation14 + $0x290] sm:$0xf]  ;;  %v8732_v4 = vor.u32 %v10138_v48, %v8729_v59  ;;  %v10065_v5 = vld [vmem:[#allocation14 + $0x298] sm:$0xf0] }
 0x77a   : > { %3832 = vmatpush.bf16.msra.mxu0 %v8364_v10  ;;  %v10104_v10 = vld [vmem:[#allocation14 + $0x3d0] sm:$0xf0]  ;;  %v10135_v7 = vld [vmem:[#allocation14 + $0x4cc] sm:$0xf]  ;;  %v10173_v58 = vld [vmem:[#allocation14 + $0x5f8] sm:$0xf0] }
 0x77b   : > { %4355 = vmatpush.bf16.msra.mxu3 %v8644_v16  ;;  %v8483_v16 = vld [vmem:[#allocation14 + $0x2f0] sm:$0xf]  ;;  %v8592_v30 = vor.u32 %v10104_v10, %v8591_v9  ;;  %v8436_v9 = vor.u32 %v10065_v5, %v8435_v3  ;;  %v8868_v3 = vor.u32 %v10173_v58, %v8867_v56  ;;  %v10168_v5 = vld [vmem:[#allocation14 + $0x5d4] sm:$0xf]  ;;  %v8807_v56 = vld [vmem:[#allocation14 + $0x578] sm:$0xf] }
 0x77c   : > { %4397 = vmatpush.bf16.msra.mxu1 %v8648_v13  ;;  %4439 = vmatpush.bf16.msra.mxu2 %v8652_v1  ;;  %v8763_v13 = vld [vmem:[#allocation14 + $0x528] sm:$0xf]  ;;  %v10148_v1 = vld [vmem:[#allocation14 + $0x530] sm:$0xf0]  ;;  %v10158_v58 = vld [vmem:[#allocation14 + $0x580] sm:$0xf0] }
 0x77e   : > { %3833 = vmatpush.bf16.msra.mxu0 %v8352_v31  ;;  %v8484_v31 = vor.u32 %v10077_v11, %v8483_v16  ;;  %v10060_v16 = vld [vmem:[#allocation14 + $0x274] sm:$0xf]  ;;  %v8423_v11 = vld [vmem:[#allocation14 + $0x278] sm:$0xf] }
 0x77f   : > { %4356 = vmatpush.bf16.msra.mxu3 %v8632_v32  ;;  %v8764_v32 = vor.u32 %v10148_v1, %v8763_v13  ;;  %v8720_v13 = vor.u32 %v10135_v7, %v8717_v8  ;;  %v10062_v1 = vld [vmem:[#allocation14 + $0x280] sm:$0xf0] }
 0x780   : > { %4398 = vmatpush.bf16.msra.mxu1 %v8636_v34  ;;  %4440 = vmatpush.bf16.msra.mxu2 %v8640_v35  ;;  %v8471_v34 = vld [vmem:[#allocation14 + $0x2d8] sm:$0xf]  ;;  %v8768_v35 = vor.u32 %v10147_v22, %v8765_v23  ;;  %v10132_v22 = vld [vmem:[#allocation14 + $0x4b4] sm:$0xf]  ;;  %v8705_v23 = vld [vmem:[#allocation14 + $0x4bc] sm:$0xf0] }
 0x781   : > { %3782 = vmatmul.bf16.vlgmr.msrb.gmra.mxu0 %v12308_v25  ;;  %3824 = vmatmul.bf16.vlgmr.msrb.gmra.mxu3 %v12308_v25  ;;  %v10170_v7 = vld [vmem:[#allocation14 + $0x5e0] sm:$0xf0] }
 0x782   : > { %3834 = vmatpush.bf16.msra.mxu0 %v8340_v39  ;;  %4347 = vmatmul.bf16.vlgmr.msrb.gmra.mxu1 %v12308_v25  ;;  %v8472_v39 = vor.u32 %v10074_v36, %v8471_v34  ;;  %v8708_v34 = vor.u32 %v10132_v22, %v8705_v23  ;;  %v8691_v36 = vld [vmem:[#allocation14 + $0x498] sm:$0xf]  ;;  %v10167_v22 = vld [vmem:[#allocation14 + $0x5c8] sm:$0xf0] }
 0x783   : > { %4357 = vmatpush.bf16.msra.mxu3 %v8620_v20  ;;  %4389 = vmatmul.bf16.vlgmr.msrb.gmra.mxu2 %v12308_v25  ;;  %v8752_v20 = vor.u32 %v10145_v37, %v8751_v57  ;;  %v10130_v57 = vld [vmem:[#allocation14 + $0x4a0] sm:$0xf0]  ;;  %v10129_v37 = vld [vmem:[#allocation14 + $0x49c] sm:$0xf] }
 0x784   : > { %4399 = vmatpush.bf16.msra.mxu1 %v8624_v24  ;;  %4441 = vmatpush.bf16.msra.mxu2 %v8628_v19  ;;  %v8459_v24 = vld [vmem:[#allocation14 + $0x2c0] sm:$0xf]  ;;  %v8756_v19 = vor.u32 %v10144_v38, %v8753_v12  ;;  %v8693_v38 = vld [vmem:[#allocation14 + $0x4a4] sm:$0xf0]  ;;  %v8692_v40 = vor.u32 %v10130_v57, %v8691_v36  ;;  %v8825_v36 = vld [vmem:[#allocation14 + $0x5ac] sm:$0xf0] }
 0x785   : > { %v8831_v57 = vld [vmem:[#allocation14 + $0x5a8] sm:$0xf] }
 0x786   : > { %3835 = vmatpush.bf16.msra.mxu0 %v8328_v49  ;;  %v8460_v49 = vor.u32 %v10071_v43, %v8459_v24  ;;  %v10056_v24 = vld [vmem:[#allocation14 + $0x250] sm:$0xf0]  ;;  %v8696_v43 = vor.u32 %v10129_v37, %v8693_v38 }
 0x787   : > { %4358 = vmatpush.bf16.msra.mxu3 %v8608_v50  ;;  %v8740_v50 = vor.u32 %v10142_v45, %v8739_v44  ;;  %v10127_v44 = vld [vmem:[#allocation14 + $0x488] sm:$0xf0]  ;;  %v10126_v45 = vld [vmem:[#allocation14 + $0x484] sm:$0xf]  ;;  %v10164_v37 = vld [vmem:[#allocation14 + $0x5b0] sm:$0xf0] }
 0x788   : > { %4400 = vmatpush.bf16.msra.mxu1 %v8612_v52  ;;  %4442 = vmatpush.bf16.msra.mxu2 %v8616_v55  ;;  %v8447_v52 = vld [vmem:[#allocation14 + $0x2a8] sm:$0xf]  ;;  %v8744_v55 = vor.u32 %v10141_v15, %v8741_v46  ;;  %v8681_v15 = vld [vmem:[#allocation14 + $0x48c] sm:$0xf0] }
 0x789   : > { %v8579_v46 = vld [vmem:[#allocation14 + $0x3b0] sm:$0xf]  ;;  %v8684_v48 = vor.u32 %v10126_v45, %v8681_v15  ;;  %v10161_v45 = vld [vmem:[#allocation14 + $0x598] sm:$0xf0] }
 0x78a   : > { %3836 = vmatpush.bf16.msra.mxu0 %v8316_v61  ;;  %v8448_v61 = vor.u32 %v10068_v53, %v8447_v52  ;;  %v8861_v52 = vld [vmem:[#allocation14 + $0x5f4] sm:$0xf0] }
 0x78b   : > { %4359 = vmatpush.bf16.msra.mxu3 %v8596_v2  ;;  %v8429_v2 = vld [vmem:[#allocation14 + $0x294] sm:$0xf0] }
 0x78c   : > { %4401 = vmatpush.bf16.msra.mxu1 %v8600_v6  ;;  %4443 = vmatpush.bf16.msra.mxu2 %v8604_v21  ;;  %v8715_v6 = vld [vmem:[#allocation14 + $0x4c8] sm:$0xf]  ;;  %v10136_v21 = vld [vmem:[#allocation14 + $0x4d0] sm:$0xf0]  ;;  %v8432_v42 = vor.u32 %v10063_v0, %v8429_v2  ;;  %v10098_v0 = vld [vmem:[#allocation14 + $0x3a0] sm:$0xf0] }
 0x78d   : > { %v8716_v10 = vor.u32 %v10136_v21, %v8715_v6  ;;  %v8847_v2 = vld [vmem:[#allocation14 + $0x5d0] sm:$0xf]  ;;  %v8849_v6 = vld [vmem:[#allocation14 + $0x5dc] sm:$0xf0]  ;;  %v8855_v21 = vld [vmem:[#allocation14 + $0x5d8] sm:$0xf] }
 0x78e   : > { %3837 = vmatpush.bf16.msra.mxu0 %v8304_v17  ;;  %v8417_v17 = vld [vmem:[#allocation14 + $0x27c] sm:$0xf0] }
 0x78f   : > { %4360 = vmatpush.bf16.msra.mxu3 %v8584_v14  ;;  %v8703_v14 = vld [vmem:[#allocation14 + $0x4b0] sm:$0xf] }
 0x790   : > { %4402 = vmatpush.bf16.msra.mxu1 %v8588_v29  ;;  %4444 = vmatpush.bf16.msra.mxu2 %v8592_v30  ;;  %v8420_v29 = vor.u32 %v10060_v16, %v8417_v17  ;;  %v8424_v30 = vor.u32 %v10062_v1, %v8423_v11  ;;  %v10095_v16 = vld [vmem:[#allocation14 + $0x388] sm:$0xf0]  ;;  %v8835_v17 = vld [vmem:[#allocation14 + $0x5b8] sm:$0xf]  ;;  %v8856_v11 = vor.u32 %v10170_v7, %v8855_v21  ;;  %v10165_v1 = vld [vmem:[#allocation14 + $0x5bc] sm:$0xf] }
 0x791   : > { %3838 = vmatmul.bf16.vlgmr.msra.gmra.mxu0 %v12310_v27  ;;  %v10155_v21 = vld [vmem:[#allocation14 + $0x568] sm:$0xf0] }
 0x792   : > { %4367 = vmatpush.bf16.msrb.mxu0 %v8480_v18  ;;  %4361 = vmatmul.bf16.vlgmr.msra.gmra.mxu3 %v12310_v27  ;;  %v10133_v18 = vld [vmem:[#allocation14 + $0x4b8] sm:$0xf0] }
 0x793   : > { %4409 = vmatpush.bf16.msrb.mxu3 %v8484_v31  ;;  %4403 = vmatmul.bf16.vlgmr.msra.gmra.mxu1 %v12310_v27  ;;  %v8704_v31 = vor.u32 %v10133_v18, %v8703_v14  ;;  %v8837_v14 = vld [vmem:[#allocation14 + $0x5c4] sm:$0xf0]  ;;  %v8843_v18 = vld [vmem:[#allocation14 + $0x5c0] sm:$0xf] }
 0x794   : > { %4932 = vmatpush.bf16.msrb.mxu1 %v8764_v32  ;;  %4974 = vmatpush.bf16.msrb.mxu2 %v8768_v35  ;;  %v10057_v32 = vld [vmem:[#allocation14 + $0x25c] sm:$0xf]  ;;  %v10059_v35 = vld [vmem:[#allocation14 + $0x268] sm:$0xf0] }
 0x795   : > { %4445 = vmatmul.bf16.vlgmr.msra.gmra.mxu2 %v12310_v27  ;;  %v8408_v12 = vor.u32 %v10057_v32, %v8405_v54  ;;  %v10092_v32 = vld [vmem:[#allocation14 + $0x370] sm:$0xf0]  ;;  %v8823_v54 = vld [vmem:[#allocation14 + $0x5a0] sm:$0xf] }
 0x796   : > { %4368 = vmatpush.bf16.msrb.mxu0 %v8468_v62  ;;  %v10054_v62 = vld [vmem:[#allocation14 + $0x244] sm:$0xf] }
 0x797   : > { %4410 = vmatpush.bf16.msrb.mxu3 %v8472_v39  ;;  %v8393_v39 = vld [vmem:[#allocation14 + $0x24c] sm:$0xf0] }
 0x798   : > { %4933 = vmatpush.bf16.msrb.mxu1 %v8752_v20  ;;  %4975 = vmatpush.bf16.msrb.mxu2 %v8756_v19  ;;  %v8412_v20 = vor.u32 %v10059_v35, %v8411_v33  ;;  %v8679_v19 = vld [vmem:[#allocation14 + $0x480] sm:$0xf]  ;;  %v8844_v33 = vor.u32 %v10167_v22, %v8843_v18  ;;  %v10162_v35 = vld [vmem:[#allocation14 + $0x5a4] sm:$0xf]  ;;  %v10152_v18 = vld [vmem:[#allocation14 + $0x550] sm:$0xf0] }
 0x799   : > { %v8680_v53 = vor.u32 %v10127_v44, %v8679_v19  ;;  %v10159_v19 = vld [vmem:[#allocation14 + $0x58c] sm:$0xf]  ;;  %v8819_v44 = vld [vmem:[#allocation14 + $0x590] sm:$0xf]  ;;  %v8955_v22 = vld [vmem:[#allocation14 + $0x6a8] sm:$0xf] }
 0x79a   : > { %4369 = vmatpush.bf16.msrb.mxu0 %v8456_v47  ;;  %v10101_v47 = vld [vmem:[#allocation14 + $0x3b8] sm:$0xf0] }
 0x79b   : > { %4411 = vmatpush.bf16.msrb.mxu3 %v8460_v49  ;;  %v8859_v49 = vld [vmem:[#allocation14 + $0x5e8] sm:$0xf]  ;;  %v8580_v59 = vor.u32 %v10101_v47, %v8579_v46 }
 0x79c   : > { %4934 = vmatpush.bf16.msrb.mxu1 %v8740_v50  ;;  %4976 = vmatpush.bf16.msrb.mxu2 %v8744_v55  ;;  %v8396_v50 = vor.u32 %v10054_v62, %v8393_v39  ;;  %v8400_v55 = vor.u32 %v10056_v24, %v8399_v41  ;;  %v8828_v62 = vor.u32 %v10162_v35, %v8825_v36  ;;  %v8531_v39 = vld [vmem:[#allocation14 + $0x350] sm:$0xf]  ;;  %v10160_v24 = vld [vmem:[#allocation14 + $0x590] sm:$0xf0] }
 0x79d   : > { %v8832_v41 = vor.u32 %v10164_v37, %v8831_v57 }
 0x79e   : > { %4370 = vmatpush.bf16.msrb.mxu0 %v8444_v60  ;;  %v8860_v60 = vor.u32 %v10172_v26, %v8859_v49  ;;  %v8519_v49 = vld [vmem:[#allocation14 + $0x338] sm:$0xf]  ;;  %v8799_v26 = vld [vmem:[#allocation14 + $0x570] sm:$0xf] }
 0x79f   : > { %4412 = vmatpush.bf16.msrb.mxu3 %v8448_v61  ;;  %v8864_v61 = vor.u32 %v10171_v28, %v8861_v52  ;;  %v8820_v28 = vor.u32 %v10161_v45, %v8819_v44  ;;  %v10157_v52 = vld [vmem:[#allocation14 + $0x578] sm:$0xf0]  ;;  %v10190_v44 = vld [vmem:[#allocation14 + $0x680] sm:$0xf0] }
 0x7a0   : > { %4935 = vmatpush.bf16.msrb.mxu1 %v8728_v63  ;;  %4977 = vmatpush.bf16.msrb.mxu2 %v8732_v4  ;;  %v8567_v63 = vld [vmem:[#allocation14 + $0x398] sm:$0xf]  ;;  %v10169_v4 = vld [vmem:[#allocation14 + $0x5d8] sm:$0xf0] }
 0x7a1   : > { %v8568_v8 = vor.u32 %v10098_v0, %v8567_v63  ;;  %v10083_v63 = vld [vmem:[#allocation14 + $0x328] sm:$0xf0]  ;;  %v8787_v0 = vld [vmem:[#allocation14 + $0x558] sm:$0xf]  ;;  %v10189_v45 = vld [vmem:[#allocation14 + $0x67c] sm:$0xf] }
 0x7a2   : > { %4371 = vmatpush.bf16.msrb.mxu0 %v8432_v42  ;;  %v8848_v42 = vor.u32 %v10169_v4, %v8847_v2  ;;  %v8808_v2 = vor.u32 %v10158_v58, %v8807_v56  ;;  %v10153_v4 = vld [vmem:[#allocation14 + $0x55c] sm:$0xf]  ;;  %v8927_v56 = vld [vmem:[#allocation14 + $0x668] sm:$0xf]  ;;  %v10188_v58 = vld [vmem:[#allocation14 + $0x670] sm:$0xf0] }
 0x7a3   : > { %4413 = vmatpush.bf16.msrb.mxu3 %v8436_v9  ;;  %v8852_v9 = vor.u32 %v10168_v5, %v8849_v6  ;;  %v8789_v5 = vld [vmem:[#allocation14 + $0x564] sm:$0xf0]  ;;  %v8795_v6 = vld [vmem:[#allocation14 + $0x560] sm:$0xf] }
 0x7a4   : > { %4936 = vmatpush.bf16.msrb.mxu1 %v8716_v10  ;;  %4978 = vmatpush.bf16.msrb.mxu2 %v8720_v13  ;;  %v8555_v10 = vld [vmem:[#allocation14 + $0x380] sm:$0xf]  ;;  %v10166_v13 = vld [vmem:[#allocation14 + $0x5c0] sm:$0xf0] }
 0x7a5   : > { %v8556_v23 = vor.u32 %v10095_v16, %v8555_v10  ;;  %v8792_v10 = vor.u32 %v10153_v4, %v8789_v5  ;;  %v8775_v16 = vld [vmem:[#allocation14 + $0x540] sm:$0xf]  ;;  %v12362_v5 = vpop.f32.mrf.mxu2 }
 0x7a6   : > { %4372 = vmatpush.bf16.msrb.mxu0 %v8420_v29  ;;  %v8836_v29 = vor.u32 %v10166_v13, %v8835_v17  ;;  %v10151_v17 = vld [vmem:[#allocation14 + $0x548] sm:$0xf0]  ;;  %v8796_v13 = vor.u32 %v10155_v21, %v8795_v6 }
 0x7a7   : > { %4414 = vmatpush.bf16.msrb.mxu3 %v8424_v30  ;;  %v8840_v30 = vor.u32 %v10165_v1, %v8837_v14  ;;  %v8777_v1 = vld [vmem:[#allocation14 + $0x54c] sm:$0xf0]  ;;  %v8783_v14 = vld [vmem:[#allocation14 + $0x548] sm:$0xf] }
 0x7a8   : > { %4937 = vmatpush.bf16.msrb.mxu1 %v8704_v31  ;;  %4979 = vmatpush.bf16.msrb.mxu2 %v8708_v34  ;;  %v8543_v31 = vld [vmem:[#allocation14 + $0x368] sm:$0xf]  ;;  %v10163_v34 = vld [vmem:[#allocation14 + $0x5a8] sm:$0xf0]  ;;  %v8784_v35 = vor.u32 %v10152_v18, %v8783_v14  ;;  %v8883_v14 = vld [vmem:[#allocation14 + $0x618] sm:$0xf] }
 0x7a9   : > { %v8544_v38 = vor.u32 %v10092_v32, %v8543_v31  ;;  %v8957_v31 = vld [vmem:[#allocation14 + $0x6b4] sm:$0xf0]  ;;  %v8963_v32 = vld [vmem:[#allocation14 + $0x6b0] sm:$0xf]  ;;  %v10178_v18 = vld [vmem:[#allocation14 + $0x620] sm:$0xf0] }
 0x7aa   : > { %4373 = vmatpush.bf16.msrb.mxu0 %v8408_v12  ;;  %v8824_v12 = vor.u32 %v10163_v34, %v8823_v54  ;;  %v10197_v54 = vld [vmem:[#allocation14 + $0x6b8] sm:$0xf0] }
 0x7ab   : > { %4415 = vmatpush.bf16.msrb.mxu3 %v8412_v20  ;;  %v10089_v20 = vld [vmem:[#allocation14 + $0x358] sm:$0xf0]  ;;  %v8964_v37 = vor.u32 %v10197_v54, %v8963_v32 }
 0x7ac   : > { %4938 = vmatpush.bf16.msrb.mxu1 %v8692_v40  ;;  %4980 = vmatpush.bf16.msrb.mxu2 %v8696_v43  ;;  %v8811_v40 = vld [vmem:[#allocation14 + $0x588] sm:$0xf]  ;;  %v8813_v43 = vld [vmem:[#allocation14 + $0x594] sm:$0xf0]  ;;  %v8532_v15 = vor.u32 %v10089_v20, %v8531_v39  ;;  %v8945_v39 = vld [vmem:[#allocation14 + $0x69c] sm:$0xf0] }
 0x7ad   : > { %v8812_v46 = vor.u32 %v10160_v24, %v8811_v40  ;;  %v8816_v47 = vor.u32 %v10159_v19, %v8813_v43  ;;  %v8951_v20 = vld [vmem:[#allocation14 + $0x698] sm:$0xf]  ;;  %v10194_v40 = vld [vmem:[#allocation14 + $0x6a0] sm:$0xf0] }
 0x7ae   : > { %4374 = vmatpush.bf16.msrb.mxu0 %v8396_v50  ;;  %v10086_v50 = vld [vmem:[#allocation14 + $0x340] sm:$0xf0]  ;;  %v8952_v19 = vor.u32 %v10194_v40, %v8951_v20  ;;  %v8931_v43 = vld [vmem:[#allocation14 + $0x678] sm:$0xf] }
 0x7af   : > { %4416 = vmatpush.bf16.msrb.mxu3 %v8400_v55  ;;  %v10156_v55 = vld [vmem:[#allocation14 + $0x574] sm:$0xf] }
 0x7b0   : > { %4939 = vmatpush.bf16.msrb.mxu1 %v8680_v53  ;;  %4981 = vmatpush.bf16.msrb.mxu2 %v8684_v48  ;;  %v8801_v53 = vld [vmem:[#allocation14 + $0x57c] sm:$0xf0]  ;;  %v8520_v48 = vor.u32 %v10086_v50, %v8519_v49  ;;  %v8932_v49 = vor.u32 %v10190_v44, %v8931_v43  ;;  %v10146_v43 = vld [vmem:[#allocation14 + $0x520] sm:$0xf0] }
 0x7b1   : > { %4375 = vmatmul.bf16.vlgmr.msrb.gmra.mxu0 %v12340_v51 }
 0x7b2   : > { %4423 = vmatpush.bf16.msra.mxu0 %v8580_v59  ;;  %4417 = vmatmul.bf16.vlgmr.msrb.gmra.mxu3 %v12340_v51  ;;  %v8800_v59 = vor.u32 %v10157_v52, %v8799_v26  ;;  %v10187_v52 = vld [vmem:[#allocation14 + $0x668] sm:$0xf0] }
 0x7b3   : > { %4946 = vmatpush.bf16.msra.mxu3 %v8860_v60  ;;  %4940 = vmatmul.bf16.vlgmr.msrb.gmra.mxu1 %v12340_v51  ;;  %v8804_v60 = vor.u32 %v10156_v55, %v8801_v53  ;;  %v10186_v55 = vld [vmem:[#allocation14 + $0x664] sm:$0xf]  ;;  %v8921_v53 = vld [vmem:[#allocation14 + $0x66c] sm:$0xf0] }
 0x7b4   : > { %4988 = vmatpush.bf16.msra.mxu1 %v8864_v61  ;;  %5030 = vmatpush.bf16.msra.mxu2 %v8868_v3  ;;  %v8507_v61 = vld [vmem:[#allocation14 + $0x320] sm:$0xf]  ;;  %v10154_v3 = vld [vmem:[#allocation14 + $0x560] sm:$0xf0] }
 0x7b5   : > { %4982 = vmatmul.bf16.vlgmr.msrb.gmra.mxu2 %v12340_v51  ;;  %v8508_v7 = vor.u32 %v10083_v63, %v8507_v61  ;;  %v8907_v61 = vld [vmem:[#allocation14 + $0x648] sm:$0xf]  ;;  %v10183_v63 = vld [vmem:[#allocation14 + $0x64c] sm:$0xf] }
 0x7b6   : > { %4424 = vmatpush.bf16.msra.mxu0 %v8568_v8  ;;  %v8495_v8 = vld [vmem:[#allocation14 + $0x308] sm:$0xf] }
 0x7b7   : > { %4947 = vmatpush.bf16.msra.mxu3 %v8848_v42  ;;  %v10080_v42 = vld [vmem:[#allocation14 + $0x310] sm:$0xf0] }
 0x7b8   : > { %4989 = vmatpush.bf16.msra.mxu1 %v8852_v9  ;;  %5031 = vmatpush.bf16.msra.mxu2 %v8856_v11  ;;  %v8788_v9 = vor.u32 %v10154_v3, %v8787_v0  ;;  %v10150_v11 = vld [vmem:[#allocation14 + $0x544] sm:$0xf]  ;;  %v8909_v0 = vld [vmem:[#allocation14 + $0x654] sm:$0xf0]  ;;  %v10185_v3 = vld [vmem:[#allocation14 + $0x658] sm:$0xf0] }
 0x7b9   : > { %v8780_v34 = vor.u32 %v10150_v11, %v8777_v1  ;;  %v8912_v6 = vor.u32 %v10183_v63, %v8909_v0  ;;  %v12364_v11 = vpop.f32.mrf.mxu1  ;;  %v10134_v63 = vld [vmem:[#allocation14 + $0x4c0] sm:$0xf0] }
 0x7ba   : > { %4425 = vmatpush.bf16.msra.mxu0 %v8556_v23  ;;  %v10196_v23 = vld [vmem:[#allocation14 + $0x6b0] sm:$0xf0] }
 0x7bb   : > { %4948 = vmatpush.bf16.msra.mxu3 %v8836_v29  ;;  %v10195_v29 = vld [vmem:[#allocation14 + $0x6ac] sm:$0xf]  ;;  %v8956_v36 = vor.u32 %v10196_v23, %v8955_v22  ;;  %v10177_v22 = vld [vmem:[#allocation14 + $0x61c] sm:$0xf]  ;;  %v8885_v23 = vld [vmem:[#allocation14 + $0x624] sm:$0xf0] }
 0x7bc   : > { %4990 = vmatpush.bf16.msra.mxu1 %v8840_v30  ;;  %5032 = vmatpush.bf16.msra.mxu2 %v8844_v33  ;;  %v8496_v30 = vor.u32 %v10080_v42, %v8495_v8  ;;  %v8776_v33 = vor.u32 %v10151_v17, %v8775_v16  ;;  %v8960_v57 = vor.u32 %v10195_v29, %v8957_v31  ;;  %v10181_v8 = vld [vmem:[#allocation14 + $0x638] sm:$0xf0]  ;;  %v10180_v42 = vld [vmem:[#allocation14 + $0x634] sm:$0xf]  ;;  %v10182_v16 = vld [vmem:[#allocation14 + $0x640] sm:$0xf0] }
 0x7bd   : > { %v8891_v29 = vld [vmem:[#allocation14 + $0x620] sm:$0xf]  ;;  %v8884_v31 = vor.u32 %v10178_v18, %v8883_v14  ;;  %v8888_v32 = vor.u32 %v10177_v22, %v8885_v23 }
 0x7be   : > { %4426 = vmatpush.bf16.msra.mxu0 %v8544_v38  ;;  %v8943_v38 = vld [vmem:[#allocation14 + $0x690] sm:$0xf] }
 0x7bf   : > { %4949 = vmatpush.bf16.msra.mxu3 %v8824_v12  ;;  %v10193_v12 = vld [vmem:[#allocation14 + $0x698] sm:$0xf0] }
 0x7c0   : > { %4991 = vmatpush.bf16.msra.mxu1 %v8828_v62  ;;  %5033 = vmatpush.bf16.msra.mxu2 %v8832_v41  ;;  %v10192_v62 = vld [vmem:[#allocation14 + $0x694] sm:$0xf]  ;;  %v8944_v41 = vor.u32 %v10193_v12, %v8943_v38  ;;  %v3743_v38 = vpop.f32.mrf.mxu2  ;;  %v8771_v12 = vld [vmem:[#allocation14 + $0x530] sm:$0xf] }
 0x7c1   : > { %v8948_v24 = vor.u32 %v10192_v62, %v8945_v39  ;;  %v10149_v62 = vld [vmem:[#allocation14 + $0x538] sm:$0xf0] }
 0x7c2   : > { %4427 = vmatpush.bf16.msra.mxu0 %v8532_v15  ;;  %v8933_v15 = vld [vmem:[#allocation14 + $0x684] sm:$0xf0] }
 0x7c3   : > { %4950 = vmatpush.bf16.msra.mxu3 %v8812_v46  ;;  %v8939_v46 = vld [vmem:[#allocation14 + $0x680] sm:$0xf]  ;;  %v8936_v50 = vor.u32 %v10189_v45, %v8933_v15  ;;  %v10143_v15 = vld [vmem:[#allocation14 + $0x508] sm:$0xf0] }
 0x7c4   : > { %4992 = vmatpush.bf16.msra.mxu1 %v8816_v47  ;;  %5034 = vmatpush.bf16.msra.mxu2 %v8820_v28  ;;  %v10191_v47 = vld [vmem:[#allocation14 + $0x688] sm:$0xf0]  ;;  %v8919_v28 = vld [vmem:[#allocation14 + $0x660] sm:$0xf] }
 0x7c5   : > { %v8940_v26 = vor.u32 %v10191_v47, %v8939_v46  ;;  %v8747_v45 = vld [vmem:[#allocation14 + $0x500] sm:$0xf] }
 0x7c6   : > { %4428 = vmatpush.bf16.msra.mxu0 %v8520_v48  ;;  %v8920_v48 = vor.u32 %v10187_v52, %v8919_v28  ;;  %v8748_v47 = vor.u32 %v10143_v15, %v8747_v45  ;;  %v10140_v28 = vld [vmem:[#allocation14 + $0x4f0] sm:$0xf0] }
 0x7c7   : > { %4951 = vmatpush.bf16.msra.mxu3 %v8800_v59  ;;  %v8924_v59 = vor.u32 %v10186_v55, %v8921_v53  ;;  %v8723_v55 = vld [vmem:[#allocation14 + $0x4d0] sm:$0xf]  ;;  %v10137_v53 = vld [vmem:[#allocation14 + $0x4d8] sm:$0xf0] }
 0x7c8   : > { %4993 = vmatpush.bf16.msra.mxu1 %v8804_v60  ;;  %5035 = vmatpush.bf16.msra.mxu2 %v8808_v2  ;;  %v8928_v60 = vor.u32 %v10188_v58, %v8927_v56  ;;  %v8915_v2 = vld [vmem:[#allocation14 + $0x650] sm:$0xf]  ;;  %v3797_v46 = vpop.f32.mrf.mxu2 }
 0x7c9   : > { %v8916_v21 = vor.u32 %v10185_v3, %v8915_v2 }
 0x7ca   : > { %4429 = vmatpush.bf16.msra.mxu0 %v8508_v7  ;;  %v8895_v7 = vld [vmem:[#allocation14 + $0x630] sm:$0xf] }
 0x7cb   : > { %4952 = vmatpush.bf16.msra.mxu3 %v8788_v9  ;;  %v8897_v9 = vld [vmem:[#allocation14 + $0x63c] sm:$0xf0]  ;;  %v8896_v17 = vor.u32 %v10181_v8, %v8895_v7 }
 0x7cc   : > { %4994 = vmatpush.bf16.msra.mxu1 %v8792_v10  ;;  %5036 = vmatpush.bf16.msra.mxu2 %v8796_v13  ;;  %v8903_v10 = vld [vmem:[#allocation14 + $0x638] sm:$0xf]  ;;  %v8900_v13 = vor.u32 %v10180_v42, %v8897_v9 }
 0x7cd   : > { %v8904_v1 = vor.u32 %v10182_v16, %v8903_v10  ;;  %v8687_v10 = vld [vmem:[#allocation14 + $0x488] sm:$0xf]  ;;  %v10128_v16 = vld [vmem:[#allocation14 + $0x490] sm:$0xf0] }
 0x7ce   : > { %4430 = vmatpush.bf16.msra.mxu0 %v8496_v30  ;;  %v10179_v30 = vld [vmem:[#allocation14 + $0x628] sm:$0xf0] }
 0x7cf   : > { %4953 = vmatpush.bf16.msra.mxu3 %v8776_v33  ;;  %v8892_v54 = vor.u32 %v10179_v30, %v8891_v29  ;;  %v8871_v33 = vld [vmem:[#allocation14 + $0x600] sm:$0xf] }
 0x7d0   : > { %4995 = vmatpush.bf16.msra.mxu1 %v8780_v34  ;;  %5037 = vmatpush.bf16.msra.mxu2 %v8784_v35  ;;  %v10175_v34 = vld [vmem:[#allocation14 + $0x608] sm:$0xf0]  ;;  %v10174_v35 = vld [vmem:[#allocation14 + $0x604] sm:$0xf] }
 0x7d1   : > { %4431 = vmatmul.bf16.vlgmr.msra.gmra.mxu0 %v12308_v25  ;;  %v8872_v39 = vor.u32 %v10175_v34, %v8871_v33 }
 0x7d2   : > { %4960 = vmatpush.bf16.msrb.mxu0 %v8956_v36  ;;  %4954 = vmatmul.bf16.vlgmr.msra.gmra.mxu3 %v12308_v25  ;;  %v8873_v36 = vld [vmem:[#allocation14 + $0x60c] sm:$0xf0] }
 0x7d3   : > { %5002 = vmatpush.bf16.msrb.mxu3 %v8960_v57  ;;  %4996 = vmatmul.bf16.vlgmr.msra.gmra.mxu1 %v12308_v25  ;;  %v8879_v57 = vld [vmem:[#allocation14 + $0x608] sm:$0xf]  ;;  %v8876_v20 = vor.u32 %v10174_v35, %v8873_v36 }
 0x7d4   : > { %5044 = vmatpush.bf16.msrb.mxu1 %v8964_v37  ;;  %5038 = vmatmul.bf16.vlgmr.msra.gmra.mxu2 %v12308_v25  ;;  %v10184_v25 = vld [vmem:[#allocation14 + $0x650] sm:$0xf0] }
 0x7d5   : > { %v8908_v4 = vor.u32 %v10184_v25, %v8907_v61  ;;  %v10176_v37 = vld [vmem:[#allocation14 + $0x610] sm:$0xf0]  ;;  %v8711_v25 = vld [vmem:[#allocation14 + $0x4b8] sm:$0xf] }
 0x7d6   : > { %4961 = vmatpush.bf16.msrb.mxu0 %v8944_v41  ;;  %v8880_v40 = vor.u32 %v10176_v37, %v8879_v57  ;;  %v8772_v41 = vor.u32 %v10149_v62, %v8771_v12  ;;  %v8712_v3 = vor.u32 %v10134_v63, %v8711_v25 }
 0x7d7   : > { %5003 = vmatpush.bf16.msrb.mxu3 %v8948_v24  ;;  %v3757_v24 = vpop.f32.mrf.mxu1 }
 0x7d8   : > { %5045 = vmatpush.bf16.msrb.mxu1 %v8952_v19  ;;  %v8759_v19 = vld [vmem:[#allocation14 + $0x518] sm:$0xf] }
 0x7d9   : > { %v8760_v44 = vor.u32 %v10146_v43, %v8759_v19 }
 0x7da   : > { %4962 = vmatpush.bf16.msrb.mxu0 %v8932_v49 }
 0x7db   : > { %5004 = vmatpush.bf16.msrb.mxu3 %v8936_v50 }
 0x7dc   : > { %5046 = vmatpush.bf16.msrb.mxu1 %v8940_v26  ;;  %v8735_v26 = vld [vmem:[#allocation14 + $0x4e8] sm:$0xf] }
 0x7dd   : > { %v8736_v52 = vor.u32 %v10140_v28, %v8735_v26 }
 0x7de   : > { %4963 = vmatpush.bf16.msrb.mxu0 %v8920_v48  ;;  %v8724_v48 = vor.u32 %v10137_v53, %v8723_v55 }
 0x7df   : > { %5005 = vmatpush.bf16.msrb.mxu3 %v8924_v59 }
 0x7e0   : > { %5047 = vmatpush.bf16.msrb.mxu1 %v8928_v60  ;;  %v3799_v60 = vpop.f32.mrf.mxu2 }
 0x7e2   : > { %4964 = vmatpush.bf16.msrb.mxu0 %v8908_v4 }
 0x7e3   : > { %5006 = vmatpush.bf16.msrb.mxu3 %v8912_v6  ;;  %v8699_v6 = vld [vmem:[#allocation14 + $0x4a0] sm:$0xf] }
 0x7e4   : > { %5048 = vmatpush.bf16.msrb.mxu1 %v8916_v21  ;;  %v10131_v21 = vld [vmem:[#allocation14 + $0x4a8] sm:$0xf0] }
 0x7e6   : > { %4965 = vmatpush.bf16.msrb.mxu0 %v8896_v17 }
 0x7e7   : > { %5007 = vmatpush.bf16.msrb.mxu3 %v8900_v13  ;;  %v12371_v13 = vld [vmem:[#allocation5] sm:$0xff] }
 0x7e8   : > { %5049 = vmatpush.bf16.msrb.mxu1 %v8904_v1 }
 0x7ea   : > { %4966 = vmatpush.bf16.msrb.mxu0 %v8884_v31 }
 0x7eb   : > { %5008 = vmatpush.bf16.msrb.mxu3 %v8888_v32 }
 0x7ec   : > { %5050 = vmatpush.bf16.msrb.mxu1 %v8892_v54 }
 0x7ee   : > { %4967 = vmatpush.bf16.msrb.mxu0 %v8872_v39  ;;  %v3727_v49 = vpop.f32.mrf.mxu0 }
 0x7ef   : > { %5009 = vmatpush.bf16.msrb.mxu3 %v8876_v20  ;;  %v3811_v50 = vpop.f32.mrf.mxu1  ;;  %v3742_v58 = vadd.f32 %v12362_v5, %v3727_v49  ;;  %v8700_v5 = vor.u32 %v10131_v21, %v8699_v6 }
 0x7f0   : > { %5051 = vmatpush.bf16.msrb.mxu1 %v8880_v40 }
 0x7f1   : > { %4968 = vmatmul.bf16.vlgmr.msrb.gmra.mxu0 %v12310_v27  ;;  %v3756_v0 = vadd.f32 %v12364_v11, %v3742_v58  ;;  %v8688_v11 = vor.u32 %v10128_v16, %v8687_v10 }
 0x7f2   : > { %5016 = vmatpush.bf16.msra.mxu0 %v8772_v41  ;;  %5010 = vmatmul.bf16.vlgmr.msrb.gmra.mxu3 %v12310_v27 }
 0x7f3   : > { %5052 = vmatmul.bf16.vlgmr.msrb.gmra.mxu1 %v12310_v27 }
 0x7f4   : > { %v3769_v56 = vpop.f32.mrf.mxu3 }
 0x7f6   : > { %5017 = vmatpush.bf16.msra.mxu0 %v8760_v44  ;;  %v3729_v59 = vpop.f32.mrf.mxu0  ;;  %v4334_v42 = vpop.f32.mrf.mxu2 }
 0x7f7   : > { %v3744_v61 = vadd.f32 %v3743_v38, %v3729_v59  ;;  %v3813_v27 = vpop.f32.mrf.mxu1 }
 0x7f9   : > { %v3758_v2 = vadd.f32 %v3757_v24, %v3744_v61 }
 0x7fa   : > { %5018 = vmatpush.bf16.msra.mxu0 %v8748_v47 }
 0x7fb   : > { %v5058_v4 = vpack.c.bf16 %v3758_v2, %v3756_v0 }
 0x7fc   : > { %v3771_v7 = vpop.f32.mrf.mxu3 }
 0x7fd   : > { %5068 = vmatpush.bf16.msra.mxu3 %v5058_v4 }
 0x7fe   : > { %5019 = vmatpush.bf16.msra.mxu0 %v8736_v52  ;;  %v3783_v8 = vpop.f32.mrf.mxu0 }
 0x7ff   : > { %v4348_v9 = vpop.f32.mrf.mxu1  ;;  %v3784_v14 = vadd.f32 %v3783_v8, %v3769_v56 }
 0x800   : > { %v4349_v17 = vadd.f32 %v4348_v9, %v4334_v42 }
 0x801   : > { %v3798_v23 = vadd.f32 %v3797_v46, %v3784_v14  ;;  %v10205_v14 = vld [vmem:[%s13007_s23 + $0x38] sm:$0xff] }
 0x802   : > { %5020 = vmatpush.bf16.msra.mxu0 %v8724_v48  ;;  %8965 = vmatmul.msk.bf16.vlgmr.msra.gmra.mxu3 %vm2575_vm6, %v12371_v13 }
 0x804   : > { %v3825_v1 = vpop.f32.mrf.mxu3 }
 0x805   : > { %v3826_v54 = vadd.f32 %v3825_v1, %v3811_v50 }
 0x806   : > { %5021 = vmatpush.bf16.msra.mxu0 %v8712_v3  ;;  %v3785_v18 = vpop.f32.mrf.mxu0 }
 0x807   : > { %v3786_v22 = vadd.f32 %v3785_v18, %v3771_v7  ;;  %v12384_v12 = vpop.f32.mrf.mxu1 }
 0x809   : > { %v3800_v29 = vadd.f32 %v3799_v60, %v3786_v22 }
 0x80a   : > { %5022 = vmatpush.bf16.msra.mxu0 %v8700_v5 }
 0x80b   : > { %v5059_v30 = vpack.c.bf16 %v3800_v29, %v3798_v23  ;;  %v10204_v23 = vld [vmem:[%s13007_s23 + $0x30] sm:$0xff]  ;;  %v10213_v29 = vld [vmem:[%s13007_s23 + $0x78] sm:$0xff] }
 0x80c   : > { %v3827_v31 = vpop.f32.mrf.mxu3 }
 0x80d   : > { %5082 = vmatpush.bf16.msrb.mxu3 %v5059_v30  ;;  %v3828_v33 = vadd.f32 %v3827_v31, %v3813_v27  ;;  %v10212_v30 = vld [vmem:[%s13007_s23 + $0x70] sm:$0xff]  ;;  %v10203_v31 = vld [vmem:[%s13007_s23 + $0x28] sm:$0xff] }
 0x80e   : > { %5023 = vmatpush.bf16.msra.mxu0 %v8688_v11  ;;  %v3839_v32 = vpop.f32.mrf.mxu0 }
 0x80f   : > { %v3840_v57 = vadd.f32 %v3839_v32, %v3826_v54 }
 0x810   : > { %v4404_v39 = vpop.f32.mrf.mxu1 }
 0x811   : > { %5024 = vmatmul.bf16.vlgmr.msra.gmra.mxu0 %v12340_v51  ;;  %v12382_v51 = vpop.f32.mrf.mxu2 }
 0x812   : > { %8966 = vmatmul.msk.bf16.vlgmr.msrb.gmra.mxu3 %vm2575_vm6, %v12371_v13 }
 0x815   : > { %v4362_v34 = vpop.f32.mrf.mxu3 }
 0x816   : > { %v12378_v35 = vadd.f32 %v4362_v34, %v4349_v17  ;;  %v3841_v36 = vpop.f32.mrf.mxu0  ;;  %v12396_v17 = vld [vmem:[#allocation5 + $0x8] sm:$0xff]  ;;  %v10211_v34 = vld [vmem:[%s13007_s23 + $0x68] sm:$0xff] }
 0x817   : > { %v3842_v37 = vadd.f32 %v3841_v36, %v3828_v33 }
 0x818   : > { %v4406_v44 = vpop.f32.mrf.mxu1 }
 0x819   : > { %v5060_v38 = vpack.c.bf16 %v3842_v37, %v3840_v57  ;;  %v4390_v62 = vpop.f32.mrf.mxu2  ;;  %v10202_v57 = vld [vmem:[%s13007_s23 + $0x20] sm:$0xff] }
 0x81b   : > { %5096 = vmatpush.bf16.msrb.mxu0 %v5060_v38 }
 0x81d   : > { %v12390_v15 = vpop.f32.mrf.mxu3 }
 0x81f   : > { %5363 = vmatpush.bf16.msra.mxu0 %v10205_v14  ;;  %v10244_v14 = vld [vmem:[%s13007_s23 + $0x170] sm:$0xff] }
 0x821   : > { %8967 = vmatmul.msk.bf16.vlgmr.msrb.gmra.mxu0 %vm2575_vm6, %v12371_v13  ;;  %v4392_v24 = vpop.f32.mrf.mxu2 }
 0x823   : > { %5364 = vmatpush.bf16.msra.mxu0 %v10204_v23  ;;  %v10216_v23 = vld [vmem:[%s13007_s23 + $0x90] sm:$0xff] }
 0x827   : > { %5365 = vmatpush.bf16.msra.mxu0 %v10203_v31  ;;  %v10215_v31 = vld [vmem:[%s13007_s23 + $0x88] sm:$0xff] }
 0x829   : > { %v4446_v47 = vpop.f32.mrf.mxu2 }
 0x82b   : > { %5366 = vmatpush.bf16.msra.mxu0 %v10202_v57  ;;  %v10253_v57 = vld [vmem:[%s13007_s23 + $0x1b8] sm:$0xff] }
 0x82e   : > { %v4376_v20 = vpop.f32.mrf.mxu0 }
 0x82f   : > { %v4391_v40 = vadd.f32 %v4390_v62, %v4376_v20  ;;  %v10210_v20 = vld [vmem:[%s13007_s23 + $0x60] sm:$0xff] }
 0x830   : > { %v4941_v58 = vpop.f32.mrf.mxu1 }
 0x831   : > { %v12386_v41 = vadd.f32 %v4404_v39, %v4391_v40  ;;  %v4448_v53 = vpop.f32.mrf.mxu2  ;;  %v10229_v39 = vld [vmem:[%s13007_s23 + $0xf8] sm:$0xff] }
 0x835   : > { %v4418_v46 = vpop.f32.mrf.mxu3 }
 0x836   : > { %v4378_v19 = vpop.f32.mrf.mxu0 }
 0x837   : > { %v4393_v43 = vadd.f32 %v4392_v24, %v4378_v19  ;;  %v10201_v24 = vld [vmem:[%s13007_s23 + $0x18] sm:$0xff]  ;;  %v10228_v19 = vld [vmem:[%s13007_s23 + $0xf0] sm:$0xff] }
 0x838   : > { %v4943_v59 = vpop.f32.mrf.mxu1  ;;  %5367 = vmatpush.bf16.msra.mxu0 %v10201_v24 }
 0x839   : > { %v12388_v45 = vadd.f32 %v4406_v44, %v4393_v43  ;;  %v4983_v25 = vpop.f32.mrf.mxu2  ;;  %v10200_v43 = vld [vmem:[%s13007_s23 + $0x10] sm:$0xff]  ;;  %v10227_v44 = vld [vmem:[%s13007_s23 + $0xe8] sm:$0xff] }
 0x83c   : > { %5368 = vmatpush.bf16.msra.mxu0 %v10200_v43 }
 0x83d   : > { %v4420_v28 = vpop.f32.mrf.mxu3 }
 0x841   : > { %v4985_v5 = vpop.f32.mrf.mxu2 }
 0x84e   : > { %v4432_v49 = vpop.f32.mrf.mxu0 }
 0x84f   : > { %v4433_v50 = vadd.f32 %v4432_v49, %v4418_v46  ;;  %v10199_v46 = vld [vmem:[%s13007_s23 + $0x8] sm:$0xff]  ;;  %v10198_v49 = vld [vmem:[%s13007_s23] sm:$0xff] }
 0x850   : > { %v4997_v27 = vpop.f32.mrf.mxu1  ;;  %5369 = vmatpush.bf16.msra.mxu0 %v10199_v46  ;;  %v10239_v46 = vld [vmem:[%s13007_s23 + $0x148] sm:$0xff] }
 0x851   : > { %v12392_v26 = vadd.f32 %v4446_v47, %v4433_v50  ;;  %v4998_v8 = vadd.f32 %v4997_v27, %v4983_v25  ;;  %v10226_v47 = vld [vmem:[%s13007_s23 + $0xe0] sm:$0xff]  ;;  %v10237_v50 = vld [vmem:[%s13007_s23 + $0x138] sm:$0xff] }
 0x852   : > { %v10221_v27 = vld [vmem:[%s13007_s23 + $0xb8] sm:$0xff] }
 0x853   : > { %v10233_v25 = vld [vmem:[%s13007_s23 + $0x118] sm:$0xff] }
 0x854   : > { %5370 = vmatpush.bf16.msra.mxu0 %v10198_v49 }
 0x855   : > { %v4955_v48 = vpop.f32.mrf.mxu3 }
 0x856   : > { %v4434_v52 = vpop.f32.mrf.mxu0  ;;  %v4956_v63 = vadd.f32 %v4955_v48, %v4941_v58  ;;  %v10223_v58 = vld [vmem:[%s13007_s23 + $0xc8] sm:$0xff]  ;;  %v10234_v48 = vld [vmem:[%s13007_s23 + $0x120] sm:$0xff] }
 0x857   : > { %v4435_v55 = vadd.f32 %v4434_v52, %v4420_v28  ;;  %v5039_v1 = vpop.f32.mrf.mxu2  ;;  %v10225_v28 = vld [vmem:[%s13007_s23 + $0xd8] sm:$0xff]  ;;  %v10236_v52 = vld [vmem:[%s13007_s23 + $0x130] sm:$0xff] }
 0x858   : > { %v4999_v21 = vpop.f32.mrf.mxu1  ;;  %5612 = vmatpush.bf16.msrb.mxu0 %v10237_v50 }
 0x859   : > { %v12394_v56 = vadd.f32 %v4448_v53, %v4435_v55  ;;  %v5000_v42 = vadd.f32 %v4999_v21, %v4985_v5  ;;  %v10224_v55 = vld [vmem:[%s13007_s23 + $0xd0] sm:$0xff]  ;;  %v10235_v53 = vld [vmem:[%s13007_s23 + $0x128] sm:$0xff] }
 0x85a   : > { %v10259_v21 = vld [vmem:[%s13007_s23 + $0x1e8] sm:$0xff] }
 0x85b   : > { %v10231_v5 = vld [vmem:[%s13007_s23 + $0x108] sm:$0xff] }
 0x85c   : > { %5613 = vmatpush.bf16.msrb.mxu0 %v10236_v52 }
 0x85d   : > { %v4957_v60 = vpop.f32.mrf.mxu3 }
 0x85e   : > { %v4958_v0 = vadd.f32 %v4957_v60, %v4943_v59  ;;  %v10222_v59 = vld [vmem:[%s13007_s23 + $0xc0] sm:$0xff]  ;;  %v10209_v60 = vld [vmem:[%s13007_s23 + $0x58] sm:$0xff] }
 0x85f   : > { %v5041_v54 = vpop.f32.mrf.mxu2 }
 0x860   : > { %5614 = vmatpush.bf16.msrb.mxu0 %v10235_v53  ;;  %v10238_v53 = vld [vmem:[%s13007_s23 + $0x140] sm:$0xff] }
 0x864   : > { %5615 = vmatpush.bf16.msrb.mxu0 %v10234_v48 }
 0x868   : > { %5616 = vmatpush.bf16.msrb.mxu0 %v10233_v25 }
 0x86e   : > { %v4969_v61 = vpop.f32.mrf.mxu0 }
 0x86f   : > { %v4970_v4 = vadd.f32 %v4969_v61, %v4956_v63  ;;  %v10261_v61 = vld [vmem:[%s13007_s23 + $0x1f8] sm:$0xff]  ;;  %v10208_v63 = vld [vmem:[%s13007_s23 + $0x50] sm:$0xff] }
 0x870   : > { %v5053_v18 = vpop.f32.mrf.mxu1 }
 0x875   : > { %v5011_v2 = vpop.f32.mrf.mxu3 }
 0x876   : > { %v4971_v3 = vpop.f32.mrf.mxu0  ;;  %v5012_v10 = vadd.f32 %v5011_v2, %v4998_v8  ;;  %v10220_v2 = vld [vmem:[%s13007_s23 + $0xb0] sm:$0xff]  ;;  %v10206_v8 = vld [vmem:[%s13007_s23 + $0x40] sm:$0xff] }
 0x877   : > { %v4972_v6 = vadd.f32 %v4971_v3, %v4958_v0  ;;  %v10260_v0 = vld [vmem:[%s13007_s23 + $0x1f0] sm:$0xff] }
 0x878   : > { %v5055_v37 = vpop.f32.mrf.mxu1  ;;  %v10232_v3 = vld [vmem:[%s13007_s23 + $0x110] sm:$0xff] }
 0x879   : > { %v5103_v7 = vpack.c.bf16 %v4972_v6, %v4970_v4  ;;  %v10207_v6 = vld [vmem:[%s13007_s23 + $0x48] sm:$0xff]  ;;  %5617 = vmatpush.bf16.msrb.mxu0 %v10232_v3 }
 0x87a   : > { %v10267_v3 = vld [vmem:[%s13007_s23 + $0x228] sm:$0xff] }
 0x87b   : > { %5113 = vmatpush.bf16.msrb.mxu2 %v5103_v7  ;;  %v10219_v7 = vld [vmem:[%s13007_s23 + $0xa8] sm:$0xff] }
 0x87d   : > { %v5013_v9 = vpop.f32.mrf.mxu3  ;;  %5618 = vmatpush.bf16.msrb.mxu0 %v10231_v5  ;;  %v10265_v5 = vld [vmem:[%s13007_s23 + $0x218] sm:$0xff] }
 0x87e   : > { %v5014_v16 = vadd.f32 %v5013_v9, %v5000_v42  ;;  %8968 = vmatmul.msk.bf16.vlgmr.msrb.gmra.mxu2 %vm2575_vm6, %v12396_v17  ;;  %v10258_v42 = vld [vmem:[%s13007_s23 + $0x1e0] sm:$0xff] }
 0x87f   : > { %5377 = vmatpush.bf16.msra.mxu2 %v10213_v29  ;;  %v10218_v9 = vld [vmem:[%s13007_s23 + $0xa0] sm:$0xff]  ;;  %v10243_v29 = vld [vmem:[%s13007_s23 + $0x168] sm:$0xff] }
 0x880   : > { %v5104_v11 = vpack.c.bf16 %v5014_v16, %v5012_v10  ;;  %v10230_v10 = vld [vmem:[%s13007_s23 + $0x100] sm:$0xff]  ;;  %v10245_v16 = vld [vmem:[%s13007_s23 + $0x178] sm:$0xff] }
 0x881   : > { %5619 = vmatpush.bf16.msrb.mxu0 %v10230_v10  ;;  %v10263_v10 = vld [vmem:[%s13007_s23 + $0x208] sm:$0xff] }
 0x882   : > { %5127 = vmatpush.bf16.msra.mxu1 %v5104_v11  ;;  %v10257_v11 = vld [vmem:[%s13007_s23 + $0x1d8] sm:$0xff] }
 0x883   : > { %5378 = vmatpush.bf16.msra.mxu2 %v10212_v30  ;;  %v10255_v30 = vld [vmem:[%s13007_s23 + $0x1c8] sm:$0xff] }
 0x885   : > { %8969 = vmatmul.msk.bf16.vlgmr.msra.gmra.mxu1 %vm2575_vm6, %v12396_v17  ;;  %v5070_v4 = vpop.f32.mrf.mxu3 }
 0x886   : > { %5391 = vmatpush.bf16.msrb.mxu1 %v10221_v27 }
 0x887   : > { %5379 = vmatpush.bf16.msra.mxu2 %v10211_v34  ;;  %v10214_v34 = vld [vmem:[%s13007_s23 + $0x80] sm:$0xff] }
 0x88a   : > { %5392 = vmatpush.bf16.msrb.mxu1 %v10220_v2  ;;  %v10248_v2 = vld [vmem:[%s13007_s23 + $0x190] sm:$0xff] }
 0x88b   : > { %5380 = vmatpush.bf16.msra.mxu2 %v10210_v20  ;;  %v4351_v20 = vadd.f32 %v12384_v12, %v12382_v51  ;;  %v10251_v51 = vld [vmem:[%s13007_s23 + $0x1a8] sm:$0xff] }
 0x88d   : > { %v4365_v24 = vadd.f32 %v12390_v15, %v4351_v20 }
 0x88e   : > { %v5025_v22 = vpop.f32.mrf.mxu0  ;;  %5393 = vmatpush.bf16.msrb.mxu1 %v10219_v7 }
 0x88f   : > { %v5040_v32 = vadd.f32 %v5039_v1, %v5025_v22  ;;  %5381 = vmatpush.bf16.msra.mxu2 %v10209_v60  ;;  %v10217_v1 = vld [vmem:[%s13007_s23 + $0x98] sm:$0xff]  ;;  %v10256_v22 = vld [vmem:[%s13007_s23 + $0x1d0] sm:$0xff] }
 0x891   : > { %v5054_v38 = vadd.f32 %v5053_v18, %v5040_v32  ;;  %v5072_v18 = vpop.f32.mrf.mxu3  ;;  %v10242_v32 = vld [vmem:[%s13007_s23 + $0x160] sm:$0xff] }
 0x892   : > { %5394 = vmatpush.bf16.msrb.mxu1 %v10218_v9  ;;  %v5073_v12 = vadd.f32 %v5072_v18, %v4365_v24 }
 0x893   : > { %5382 = vmatpush.bf16.msra.mxu2 %v10208_v63  ;;  %v10249_v63 = vld [vmem:[%s13007_s23 + $0x198] sm:$0xff] }
 0x896   : > { %v5027_v33 = vpop.f32.mrf.mxu0  ;;  %5395 = vmatpush.bf16.msrb.mxu1 %v10217_v1 }
 0x897   : > { %v5042_v36 = vadd.f32 %v5041_v54, %v5027_v33  ;;  %5383 = vmatpush.bf16.msra.mxu2 %v10207_v6  ;;  %v10254_v54 = vld [vmem:[%s13007_s23 + $0x1c0] sm:$0xff] }
 0x898   : > { %v10266_v6 = vld [vmem:[%s13007_s23 + $0x220] sm:$0xff] }
 0x899   : > { %v5056_v62 = vadd.f32 %v5055_v37, %v5042_v36  ;;  %v5084_v33 = vpop.f32.mrf.mxu3  ;;  %v10241_v36 = vld [vmem:[%s13007_s23 + $0x158] sm:$0xff] }
 0x89a   : > { %5396 = vmatpush.bf16.msrb.mxu1 %v10216_v23 }
 0x89b   : > { %v5105_v40 = vpack.c.bf16 %v5056_v62, %v5054_v38  ;;  %5384 = vmatpush.bf16.msra.mxu2 %v10206_v8  ;;  %v10240_v62 = vld [vmem:[%s13007_s23 + $0x150] sm:$0xff] }
 0x89d   : > { %5141 = vmatpush.bf16.msra.mxu3 %v5105_v40  ;;  %v12577_v40 = vld [vmem:[%s13006_s22] sm:$0x7] }
 0x89e   : > { %5397 = vmatpush.bf16.msrb.mxu1 %v10215_v31  ;;  %v5155_v49 = vperm.slane %v12577_v40, 0  ;;  %v5098_v7 = vpop.f32.mrf.mxu0 }
 0x89f   : > { %5626 = vmatpush.bf16.msrb.mxu2 %v10245_v16  ;;  %v5099_v16 = vadd.f32 %v5098_v7, %v12392_v26 }
 0x8a0   : > { %8970 = vmatmul.msk.bf16.vlgmr.msra.gmra.mxu3 %vm2575_vm6, %v12396_v17 }
 0x8a1   : > { %5598 = vmatpush.bf16.msrb.mxu3 %v10229_v39  ;;  %v10252_v39 = vld [vmem:[%s13007_s23 + $0x1b0] sm:$0xff]  ;;  %v5086_v43 = vpop.f32.mrf.mxu3 }
 0x8a2   : > { %5398 = vmatpush.bf16.msrb.mxu1 %v10214_v34  ;;  %v5087_v50 = vadd.f32 %v5086_v43, %v12388_v45 }
 0x8a3   : > { %5627 = vmatpush.bf16.msrb.mxu2 %v10244_v14  ;;  %v5157_v14 = vperm.slane %v12577_v40, 2 }
 0x8a5   : > { %5599 = vmatpush.bf16.msrb.mxu3 %v10228_v19  ;;  %v5071_v19 = vadd.f32 %v5070_v4, %v12378_v35  ;;  %v5156_v35 = vperm.slane %v12577_v40, 1  ;;  %v10247_v4 = vld [vmem:[%s13007_s23 + $0x188] sm:$0xff] }
 0x8a6   : > { %5833 = vmatpush.bf16.msra.mxu1 %v10253_v57  ;;  %v5100_v9 = vpop.f32.mrf.mxu0 }
 0x8a7   : > { %5628 = vmatpush.bf16.msrb.mxu2 %v10243_v29 }
 0x8a9   : > { %5600 = vmatpush.bf16.msrb.mxu3 %v10227_v44  ;;  %v5085_v44 = vadd.f32 %v5084_v33, %v12386_v41 }
 0x8aa   : > { %5834 = vmatpush.bf16.msra.mxu1 %v10252_v39 }
 0x8ab   : > { %5629 = vmatpush.bf16.msrb.mxu2 %v10242_v32 }
 0x8ad   : > { %5601 = vmatpush.bf16.msrb.mxu3 %v10226_v47 }
 0x8ae   : > { %5835 = vmatpush.bf16.msra.mxu1 %v10251_v51 }
 0x8af   : > { %5630 = vmatpush.bf16.msrb.mxu2 %v10241_v36 }
 0x8b1   : > { %5602 = vmatpush.bf16.msrb.mxu3 %v10225_v28 }
 0x8b3   : > { %5631 = vmatpush.bf16.msrb.mxu2 %v10240_v62 }
 0x8b5   : > { %5603 = vmatpush.bf16.msrb.mxu3 %v10224_v55 }
 0x8b7   : > { %5632 = vmatpush.bf16.msrb.mxu2 %v10239_v46 }
 0x8b9   : > { %5604 = vmatpush.bf16.msrb.mxu3 %v10223_v58  ;;  %v10250_v58 = vld [vmem:[%s13007_s23 + $0x1a0] sm:$0xff] }
 0x8ba   : > { %5836 = vmatpush.bf16.msra.mxu1 %v10250_v58 }
 0x8bb   : > { %5633 = vmatpush.bf16.msrb.mxu2 %v10238_v53 }
 0x8bd   : > { %5605 = vmatpush.bf16.msrb.mxu3 %v10222_v59 }
 0x8be   : > { %5837 = vmatpush.bf16.msra.mxu1 %v10249_v63 }
 0x8c1   : > { %5847 = vmatpush.bf16.msra.mxu3 %v10261_v61  ;;  %v10269_v61 = vld [vmem:[%s13007_s23 + $0x238] sm:$0xff] }
 0x8c2   : > { %5838 = vmatpush.bf16.msra.mxu1 %v10248_v2 }
 0x8c5   : > { %5848 = vmatpush.bf16.msra.mxu3 %v10260_v0  ;;  %v10268_v0 = vld [vmem:[%s13007_s23 + $0x230] sm:$0xff] }
 0x8c6   : > { %5839 = vmatpush.bf16.msra.mxu1 %v10247_v4  ;;  %v10271_v4 = vld [vmem:[#allocation17 + $0x8] sm:$0xf0] }
 0x8c9   : > { %5849 = vmatpush.bf16.msra.mxu3 %v10259_v21  ;;  %v10246_v21 = vld [vmem:[%s13007_s23 + $0x180] sm:$0xff] }
 0x8ca   : > { %5840 = vmatpush.bf16.msra.mxu1 %v10246_v21  ;;  %v9363_v21 = vld [vmem:[#allocation17 + $0xc] sm:$0xf0] }
 0x8cd   : > { %5850 = vmatpush.bf16.msra.mxu3 %v10258_v42  ;;  %v10264_v42 = vld [vmem:[%s13007_s23 + $0x210] sm:$0xff] }
 0x8d1   : > { %5851 = vmatpush.bf16.msra.mxu3 %v10257_v11  ;;  %v5101_v11 = vadd.f32 %v5100_v9, %v12394_v56  ;;  %v10272_v9 = vld [vmem:[#allocation17 + $0x10] sm:$0xf0] }
 0x8d5   : > { %5852 = vmatpush.bf16.msra.mxu3 %v10256_v22  ;;  %v10262_v22 = vld [vmem:[%s13007_s23 + $0x200] sm:$0xff] }
 0x8d9   : > { %5853 = vmatpush.bf16.msra.mxu3 %v10255_v30 }
 0x8dd   : > { %5854 = vmatpush.bf16.msra.mxu3 %v10254_v54 }
 0x901   : > { %v5115_v37 = vpop.f32.mrf.mxu2 }
 0x902   : > { %v5129_v38 = vpop.f32.mrf.mxu1  ;;  %v5148_v47 = vadd.f32 %v5115_v37, %v5071_v19 }
 0x903   : > { %v5149_v15 = vadd.f32 %v5129_v38, %v5085_v44 }
 0x904   : > { %v12597_v48 = vadd.f32 %v5155_v49, %v5148_v47 }
 0x905   : > { %v12601_v59 = vadd.f32 %v5156_v35, %v5149_v15 }
 0x909   : > { %v5117_v28 = vpop.f32.mrf.mxu2 }
 0x90a   : > { %v5151_v41 = vadd.f32 %v5117_v28, %v5073_v12  ;;  %v5131_v52 = vpop.f32.mrf.mxu1 }
 0x90b   : > { %v5152_v55 = vadd.f32 %v5131_v52, %v5087_v50 }
 0x90c   : > { %v12599_v45 = vadd.f32 %v5155_v49, %v5151_v41 }
 0x90d   : > { %v12603_v60 = vadd.f32 %v5156_v35, %v5152_v55 }
 0x90e   : > { %v5168_v27 = vpack.c.bf16 %v12599_v45, %v12597_v48 }
 0x90f   : > { %v5169_v25 = vpack.c.bf16 %v12603_v60, %v12601_v59 }
 0x910   : > { %5371 = vmatmul.bf16.vlgmr.msra.gmra.mxu0 %v5168_v27  ;;  %5606 = vmatmul.bf16.vlgmr.msrb.gmra.mxu3 %v5168_v27 }
 0x911   : > { %5385 = vmatmul.bf16.vlgmr.msra.gmra.mxu2 %v5169_v25  ;;  %5861 = vmatpush.bf16.msra.mxu0 %v10269_v61  ;;  %v12662_v61 = vld [vmem:[#allocation16] ss:$0 sm:$0xff] }
 0x915   : > { %5862 = vmatpush.bf16.msra.mxu0 %v10268_v0 }
 0x919   : > { %5863 = vmatpush.bf16.msra.mxu0 %v10267_v3  ;;  %v9361_v3 = vld [vmem:[#allocation17] sm:$0xf] }
 0x91d   : > { %5864 = vmatpush.bf16.msra.mxu0 %v10266_v6  ;;  %v10270_v6 = vld [vmem:[#allocation17 + $0x4] sm:$0xf] }
 0x920   : > { %5620 = vmatmul.bf16.vlgmr.msrb.gmra.mxu0 %v5169_v25  ;;  %5855 = vmatmul.bf16.vlgmr.msra.gmra.mxu3 %v5169_v25 }
 0x921   : > { %5865 = vmatpush.bf16.msra.mxu0 %v10265_v5  ;;  %v9362_v5 = vor.u32 %v10271_v4, %v9361_v3  ;;  %v10282_v4 = vld [vmem:[%s13007_s23 + $0x48] sm:$0xff] }
 0x923   : > { %v5143_v8 = vpop.f32.mrf.mxu3  ;;  %5983 = vmatpush.bf16.msrb.mxu3 %v9362_v5 }
 0x924   : > { %v5150_v1 = vadd.f32 %v5143_v8, %v5099_v16  ;;  %v9366_v8 = vor.u32 %v10270_v6, %v9363_v21  ;;  %v10298_v6 = vld [vmem:[%s13007_s23 + $0xc8] sm:$0xff] }
 0x925   : > { %5866 = vmatpush.bf16.msra.mxu0 %v10264_v42  ;;  %v9369_v42 = vld [vmem:[#allocation17 + $0x8] sm:$0xf] }
 0x926   : > { %v12648_v29 = vadd.f32 %v5157_v14, %v5150_v1  ;;  %v9370_v16 = vor.u32 %v10272_v9, %v9369_v42  ;;  %v10273_v42 = vld [vmem:[%s13007_s23] sm:$0xff] }
 0x927   : > { %v10289_v9 = vld [vmem:[%s13007_s23 + $0x80] sm:$0xff] }
 0x929   : > { %5867 = vmatpush.bf16.msra.mxu0 %v10263_v10 }
 0x92b   : > { %v5145_v18 = vpop.f32.mrf.mxu3 }
 0x92c   : > { %v5153_v23 = vadd.f32 %v5145_v18, %v5101_v11  ;;  %v10296_v18 = vld [vmem:[%s13007_s23 + $0xb8] sm:$0xff] }
 0x92d   : > { %5868 = vmatpush.bf16.msra.mxu0 %v10262_v22 }
 0x92e   : > { %v12650_v30 = vadd.f32 %v5157_v14, %v5153_v23  ;;  %v10280_v14 = vld [vmem:[%s13007_s23 + $0x38] sm:$0xff] }
 0x92f   : > { %6219 = vmatpush.bf16.msra.mxu3 %v10280_v14 }
 0x930   : > { %v5170_v26 = vpack.c.bf16 %v12650_v30, %v12648_v29 }
 0x932   : > { %5399 = vmatmul.bf16.vlgmr.msrb.gmra.mxu1 %v5170_v26  ;;  %5634 = vmatmul.bf16.vlgmr.msrb.gmra.mxu2 %v5170_v26 }
 0x933   : > { %5869 = vmatmul.bf16.vlgmr.msra.gmra.mxu0 %v5170_v26  ;;  %v10279_v26 = vld [vmem:[%s13007_s23 + $0x30] sm:$0xff] }
 0x934   : > { %6220 = vmatpush.bf16.msra.mxu3 %v10279_v26  ;;  %v10327_v26 = vld [vmem:[%s13007_s23 + $0x1b0] sm:$0xff] }
 0x942   : > { %5841 = vmatmul.bf16.vlgmr.msra.gmra.mxu1 %v5168_v27 }
 0x98d   : > { %v5372_v56 = vpop.f32.mrf.mxu0 }
 0x993   : > { %v5607_v32 = vpop.f32.mrf.mxu3 }
 0x994   : > { %v5386_v37 = vpop.f32.mrf.mxu2 }
 0x995   : > { %v5374_v31 = vpop.f32.mrf.mxu0  ;;  %v5387_v39 = vadd.f32 %v5386_v37, %v5372_v56  ;;  %v10286_v37 = vld [vmem:[%s13007_s23 + $0x68] sm:$0xff] }
 0x99b   : > { %v5609_v34 = vpop.f32.mrf.mxu3 }
 0x99c   : > { %v5388_v62 = vpop.f32.mrf.mxu2 }
 0x99d   : > { %v5621_v54 = vpop.f32.mrf.mxu0  ;;  %v5389_v20 = vadd.f32 %v5388_v62, %v5374_v31  ;;  %v10295_v31 = vld [vmem:[%s13007_s23 + $0xb0] sm:$0xff] }
 0x99e   : > { %v5622_v33 = vadd.f32 %v5621_v54, %v5607_v32  ;;  %v10288_v32 = vld [vmem:[%s13007_s23 + $0x78] sm:$0xff] }
 0x99f   : > { %v10304_v54 = vld [vmem:[%s13007_s23 + $0xf8] sm:$0xff]  ;;  %6233 = vmatpush.bf16.msrb.mxu0 %v10288_v32  ;;  %v10309_v32 = vld [vmem:[%s13007_s23 + $0x120] sm:$0xff] }
 0x9a3   : > { %v5856_v44 = vpop.f32.mrf.mxu3 }
 0x9a5   : > { %v5623_v36 = vpop.f32.mrf.mxu0 }
 0x9a6   : > { %v5624_v57 = vadd.f32 %v5623_v36, %v5609_v34  ;;  %v10303_v34 = vld [vmem:[%s13007_s23 + $0xf0] sm:$0xff]  ;;  %v10278_v36 = vld [vmem:[%s13007_s23 + $0x28] sm:$0xff] }
 0x9a7   : > { %6221 = vmatpush.bf16.msra.mxu3 %v10278_v36  ;;  %v10308_v36 = vld [vmem:[%s13007_s23 + $0x118] sm:$0xff] }
 0x9ab   : > { %v5858_v47 = vpop.f32.mrf.mxu3 }
 0x9af   : > { %v5400_v38 = vpop.f32.mrf.mxu1 }
 0x9b0   : > { %v5401_v24 = vadd.f32 %v5400_v38, %v5387_v39  ;;  %v5870_v46 = vpop.f32.mrf.mxu0  ;;  %v10302_v38 = vld [vmem:[%s13007_s23 + $0xe8] sm:$0xff] }
 0x9b5   : > { %v5635_v52 = vpop.f32.mrf.mxu2 }
 0x9b7   : > { %v5402_v40 = vpop.f32.mrf.mxu1 }
 0x9b8   : > { %v5403_v19 = vadd.f32 %v5402_v40, %v5389_v20  ;;  %v5872_v15 = vpop.f32.mrf.mxu0  ;;  %v10277_v40 = vld [vmem:[%s13007_s23 + $0x20] sm:$0xff] }
 0x9b9   : > { %6222 = vmatpush.bf16.msra.mxu3 %v10277_v40  ;;  %v10324_v40 = vld [vmem:[%s13007_s23 + $0x198] sm:$0xff] }
 0x9ba   : > { %v5875_v43 = vpack.c.bf16 %v5403_v19, %v5401_v24  ;;  %v10293_v24 = vld [vmem:[%s13007_s23 + $0xa0] sm:$0xff] }
 0x9bc   : > { %5883 = vmatpush.bf16.msra.mxu2 %v5875_v43  ;;  %v10285_v43 = vld [vmem:[%s13007_s23 + $0x60] sm:$0xff] }
 0x9bd   : > { %v5637_v55 = vpop.f32.mrf.mxu2 }
 0x9be   : > { %v5638_v2 = vadd.f32 %v5637_v55, %v5624_v57  ;;  %v10294_v57 = vld [vmem:[%s13007_s23 + $0xa8] sm:$0xff]  ;;  %v10299_v55 = vld [vmem:[%s13007_s23 + $0xd0] sm:$0xff] }
 0x9bf   : > { %v5842_v51 = vpop.f32.mrf.mxu1  ;;  %9355 = vmatmul.msk.bf16.vlgmr.msra.gmra.mxu2 %vm2575_vm6, %v12371_v13  ;;  %v5636_v13 = vadd.f32 %v5635_v52, %v5622_v33  ;;  %v10287_v33 = vld [vmem:[%s13007_s23 + $0x70] sm:$0xff] }
 0x9c0   : > { %v5857_v12 = vadd.f32 %v5856_v44, %v5842_v51  ;;  %5997 = vmatpush.bf16.msrb.mxu2 %v9366_v8  ;;  %6234 = vmatpush.bf16.msrb.mxu0 %v10287_v33  ;;  %v10301_v44 = vld [vmem:[%s13007_s23 + $0xe0] sm:$0xff]  ;;  %v10276_v51 = vld [vmem:[%s13007_s23 + $0x18] sm:$0xff]  ;;  %v10283_v52 = vld [vmem:[%s13007_s23 + $0x50] sm:$0xff] }
 0x9c1   : > { %6223 = vmatpush.bf16.msra.mxu3 %v10276_v51  ;;  %v10336_v33 = vld [vmem:[%s13007_s23 + $0x1f8] sm:$0xff] }
 0x9c2   : > { %v5871_v35 = vadd.f32 %v5870_v46, %v5857_v12  ;;  %v10292_v12 = vld [vmem:[%s13007_s23 + $0x98] sm:$0xff] }
 0x9c3   : > { %v10316_v51 = vld [vmem:[%s13007_s23 + $0x158] sm:$0xff] }
 0x9c4   : > { %6247 = vmatpush.bf16.msra.mxu2 %v10296_v18  ;;  %6235 = vmatpush.bf16.msrb.mxu0 %v10286_v37  ;;  %v10328_v18 = vld [vmem:[%s13007_s23 + $0x1b8] sm:$0xff]  ;;  %v10335_v37 = vld [vmem:[%s13007_s23 + $0x1f0] sm:$0xff] }
 0x9c7   : > { %v5844_v49 = vpop.f32.mrf.mxu1 }
 0x9c8   : > { %v5859_v50 = vadd.f32 %v5858_v47, %v5844_v49  ;;  %6248 = vmatpush.bf16.msra.mxu2 %v10295_v31  ;;  %6236 = vmatpush.bf16.msrb.mxu0 %v10285_v43  ;;  %v10284_v47 = vld [vmem:[%s13007_s23 + $0x58] sm:$0xff]  ;;  %v10297_v31 = vld [vmem:[%s13007_s23 + $0xc0] sm:$0xff] }
 0x9c9   : > { %v10300_v49 = vld [vmem:[%s13007_s23 + $0xd8] sm:$0xff]  ;;  %v10333_v43 = vld [vmem:[%s13007_s23 + $0x1e0] sm:$0xff] }
 0x9ca   : > { %v5873_v28 = vadd.f32 %v5872_v15, %v5859_v50 }
 0x9cc   : > { %v5890_v41 = vpack.c.bf16 %v5873_v28, %v5871_v35  ;;  %6249 = vmatpush.bf16.msra.mxu2 %v10294_v57  ;;  %v10275_v35 = vld [vmem:[%s13007_s23 + $0x10] sm:$0xff]  ;;  %6237 = vmatpush.bf16.msrb.mxu0 %v10284_v47  ;;  %v10322_v47 = vld [vmem:[%s13007_s23 + $0x188] sm:$0xff] }
 0x9cd   : > { %v10291_v28 = vld [vmem:[%s13007_s23 + $0x90] sm:$0xff]  ;;  %6224 = vmatpush.bf16.msra.mxu3 %v10275_v35  ;;  %v10314_v35 = vld [vmem:[%s13007_s23 + $0x148] sm:$0xff] }
 0x9ce   : > { %5898 = vmatpush.bf16.msrb.mxu1 %v5890_v41  ;;  %v10319_v57 = vld [vmem:[%s13007_s23 + $0x170] sm:$0xff] }
 0x9d0   : > { %6250 = vmatpush.bf16.msra.mxu2 %v10293_v24  ;;  %6238 = vmatpush.bf16.msrb.mxu0 %v10283_v52  ;;  %v10306_v24 = vld [vmem:[%s13007_s23 + $0x108] sm:$0xff]  ;;  %v10329_v52 = vld [vmem:[%s13007_s23 + $0x1c0] sm:$0xff] }
 0x9d1   : > { %9356 = vmatmul.msk.bf16.vlgmr.msrb.gmra.mxu1 %vm2575_vm6, %v12396_v17 }
 0x9d2   : > { %6011 = vmatpush.bf16.msra.mxu1 %v9370_v16 }
 0x9d4   : > { %6251 = vmatpush.bf16.msra.mxu2 %v10292_v12  ;;  %6239 = vmatpush.bf16.msrb.mxu0 %v10282_v4  ;;  %v10332_v12 = vld [vmem:[%s13007_s23 + $0x1d8] sm:$0xff] }
 0x9d6   : > { %6453 = vmatpush.bf16.msrb.mxu1 %v10304_v54  ;;  %v10320_v54 = vld [vmem:[%s13007_s23 + $0x178] sm:$0xff] }
 0x9d8   : > { %6252 = vmatpush.bf16.msra.mxu2 %v10291_v28  ;;  %v10330_v28 = vld [vmem:[%s13007_s23 + $0x1c8] sm:$0xff] }
 0x9da   : > { %6454 = vmatpush.bf16.msrb.mxu1 %v10303_v34  ;;  %v10326_v34 = vld [vmem:[%s13007_s23 + $0x1a8] sm:$0xff] }
 0x9de   : > { %6455 = vmatpush.bf16.msrb.mxu1 %v10302_v38  ;;  %v10325_v38 = vld [vmem:[%s13007_s23 + $0x1a0] sm:$0xff] }
 0x9e2   : > { %6456 = vmatpush.bf16.msrb.mxu1 %v10301_v44  ;;  %v10323_v44 = vld [vmem:[%s13007_s23 + $0x190] sm:$0xff] }
 0x9e6   : > { %6457 = vmatpush.bf16.msrb.mxu1 %v10300_v49  ;;  %v10315_v49 = vld [vmem:[%s13007_s23 + $0x150] sm:$0xff] }
 0x9ea   : > { %6458 = vmatpush.bf16.msrb.mxu1 %v10299_v55 }
 0x9ee   : > { %6459 = vmatpush.bf16.msrb.mxu1 %v10298_v6 }
 0x9f2   : > { %6460 = vmatpush.bf16.msrb.mxu1 %v10297_v31  ;;  %v10345_v31 = vld [vmem:[#allocation5] sm:$0xff] }
 0xa42   : > { %v5885_v53 = vpop.f32.mrf.mxu2 }
 0xa43   : > { %v5886_v58 = vadd.f32 %v5885_v53, %v5636_v13 }
 0xa4a   : > { %v5887_v0 = vpop.f32.mrf.mxu2 }
 0xa4b   : > { %v5888_v7 = vadd.f32 %v5887_v0, %v5638_v2 }
 0xa4e   : > { %v5900_v27 = vpop.f32.mrf.mxu1 }
 0xa4f   : > { %v5905_v25 = vadd.f32 %v5900_v27, %v5886_v58 }
 0xa51   : > { %v5910_v63 = vadd.f32 %v12662_v61, %v5905_v25  ;;  %v10274_v25 = vld [vmem:[%s13007_s23 + $0x8] sm:$0xff] }
 0xa52   : > { %6225 = vmatpush.bf16.msra.mxu3 %v10274_v25 }
 0xa53   : > { %5912 = vst.msk [vmem:[%s12667_s27] sm:$0xff] %vm2575_vm6, %v5910_v63  ;;  %v9357_v17 = vmul.f32 -1.442695, %v5910_v63  ;;  %v10290_v63 = vld [vmem:[%s13007_s23 + $0x88] sm:$0xff] }
 0xa54   : > { %6253 = vmatpush.bf16.msra.mxu2 %v10290_v63 }
 0xa55   : > { %10505 = vpow2.f32 %v9357_v17 }
 0xa56   : > { %v5902_v10 = vpop.f32.mrf.mxu1  ;;  %6226 = vmatpush.bf16.msra.mxu3 %v10273_v42 }
 0xa57   : > { %v5906_v11 = vadd.f32 %v5902_v10, %v5888_v7 }
 0xa58   : > { %6254 = vmatpush.bf16.msra.mxu2 %v10289_v9 }
 0xa59   : > { %v5911_v1 = vadd.f32 %v12662_v61, %v5906_v11 }
 0xa5b   : > { %v10506_v22 = vpop.eup %10505  ;;  %5913 = vst.msk [vmem:[%s12667_s27 + $0x8] sm:$0xff] %vm2575_vm6, %v5911_v1  ;;  %v9358_v23 = vmul.f32 -1.442695, %v5911_v1  ;;  %v10312_v1 = vld [vmem:[%s13007_s23 + $0x138] sm:$0xff] }
 0xa5c   : > { %v12683_v56 = vadd.f32 1.0, %v10506_v22  ;;  %v10311_v22 = vld [vmem:[%s13007_s23 + $0x130] sm:$0xff] }
 0xa5d   : > { %10507 = vpow2.f32 %v9358_v23  ;;  %v10310_v23 = vld [vmem:[%s13007_s23 + $0x128] sm:$0xff] }
 0xa5e   : > { %10509 = vrcp.f32 %v12683_v56  ;;  %vm5927_vm8 = vweird.f32 %v12683_v56  ;;  %v5933_v58 = vand.u32 2147483648, %v12683_v56  ;;  %v5931_v0 = vand.u32 2147483647, %v12683_v56 }
 0xa60   : > { %v5934_v5 = vor.u32 1.1754944e-38, %v5933_v58  ;;  %vm5932_vm13 = vcmp.eq.f32.partialorder %v5931_v0, 8.507059e+37 }
 0xa63   : > { %v10508_v62 = vpop.eup %10507 }
 0xa64   : > { %v12713_v39 = vpop.eup %10509  ;;  %v5921_v20 = vadd.f32 1.0, %v10508_v62  ;;  %v10307_v62 = vld [vmem:[%s13007_s23 + $0x110] sm:$0xff] }
 0xa65   : > { %v5923_v19 = vmul.f32 %v12713_v39, %v12683_v56  ;;  %vm5928_vm7 = vweird.f32 %v12713_v39  ;;  %v10281_v56 = vld [vmem:[%s13007_s23 + $0x40] sm:$0xff] }
 0xa66   : > { %10511 = vrcp.f32 %v5921_v20  ;;  %v5948_v27 = vand.u32 2147483648, %v5921_v20  ;;  %v5946_v17 = vand.u32 2147483647, %v5921_v20  ;;  %vm12765_vm10 = vmor %vm5927_vm8, %vm5928_vm7  ;;  %vm5942_vm11 = vweird.f32 %v5921_v20  ;;  %6240 = vmatpush.bf16.msrb.mxu0 %v10281_v56 }
 0xa67   : > { %v5924_v46 = vsub.f32 1.0, %v5923_v19  ;;  %v10317_v19 = vld [vmem:[%s13007_s23 + $0x160] sm:$0xff] }
 0xa68   : > { %v5949_v8 = vor.u32 1.1754944e-38, %v5948_v27  ;;  %vm5947_vm14 = vcmp.eq.f32.partialorder %v5946_v17, 8.507059e+37 }
 0xa69   : > { %v5925_v50 = vmul.f32 %v12713_v39, %v5924_v46  ;;  %v10305_v46 = vld [vmem:[%s13007_s23 + $0x100] sm:$0xff] }
 0xa6a   : > { %6481 = vmatpush.bf16.msra.mxu0 %v10320_v54 }
 0xa6b   : > { %v5926_v53 = vadd.f32 %v12713_v39, %v5925_v50  ;;  %v10331_v50 = vld [vmem:[%s13007_s23 + $0x1d0] sm:$0xff] }
 0xa6c   : > { %v10512_v15 = vpop.eup %10511 }
 0xa6d   : > { %v5938_v41 = vmul.f32 %v10512_v15, %v5921_v20  ;;  %vm5943_vm9 = vweird.f32 %v10512_v15  ;;  %v5930_v7 = vsel %vm12765_vm10, %v12713_v39, %v5926_v53  ;;  %v10318_v39 = vld [vmem:[%s13007_s23 + $0x168] sm:$0xff] }
 0xa6e   : > { %vm5944_vm12 = vmor %vm5942_vm11, %vm5943_vm9  ;;  %v5935_v16 = vsel %vm5932_vm13, %v5934_v5, %v5930_v7  ;;  %6482 = vmatpush.bf16.msra.mxu0 %v10319_v57  ;;  %v10334_v20 = vld [vmem:[%s13007_s23 + $0x1e8] sm:$0xff] }
 0xa6f   : > { %v5939_v13 = vsub.f32 1.0, %v5938_v41  ;;  %v10313_v41 = vld [vmem:[%s13007_s23 + $0x140] sm:$0xff]  ;;  %v10338_v5 = vld [vmem:[%s13007_s23 + $0x208] sm:$0xff] }
 0xa71   : > { %v5940_v2 = vmul.f32 %v10512_v15, %v5939_v13 }
 0xa72   : > { %6483 = vmatpush.bf16.msra.mxu0 %v10318_v39 }
 0xa73   : > { %v5941_v21 = vadd.f32 %v10512_v15, %v5940_v2 }
 0xa75   : > { %v5945_v10 = vsel %vm5944_vm12, %v10512_v15, %v5941_v21  ;;  %v10321_v15 = vld [vmem:[%s13007_s23 + $0x180] sm:$0xff]  ;;  %v10344_v21 = vld [vmem:[%s13007_s23 + $0x238] sm:$0xff] }
 0xa76   : > { %v5950_v11 = vsel %vm5947_vm14, %v5949_v8, %v5945_v10  ;;  %6484 = vmatpush.bf16.msra.mxu0 %v10317_v19  ;;  %v10337_v8 = vld [vmem:[%s13007_s23 + $0x200] sm:$0xff] }
 0xa77   : > { %v5956_v14 = vpack.c.bf16 %v5950_v11, %v5935_v16 }
 0xa79   : > { %9371 = vmatmul.msk.bf16.vlgmr.msrb.gmra.mxu3 %vm2575_vm6, %v5956_v14  ;;  %9372 = vmatmul.msk.bf16.vlgmr.msrb.gmra.mxu2 %vm2575_vm6, %v5956_v14 }
 0xa7a   : > { %9373 = vmatmul.msk.bf16.vlgmr.msra.gmra.mxu1 %vm2575_vm6, %v5956_v14  ;;  %6467 = vmatpush.bf16.msrb.mxu3 %v10312_v1 }
 0xa7b   : > { %6687 = vmatpush.bf16.msrb.mxu2 %v10328_v18  ;;  %6701 = vmatpush.bf16.msra.mxu1 %v10336_v33 }
 0xa7c   : > { %6485 = vmatpush.bf16.msra.mxu0 %v10316_v51 }
 0xa7e   : > { %6468 = vmatpush.bf16.msrb.mxu3 %v10311_v22 }
 0xa7f   : > { %6688 = vmatpush.bf16.msrb.mxu2 %v10327_v26  ;;  %6702 = vmatpush.bf16.msra.mxu1 %v10335_v37 }
 0xa80   : > { %6486 = vmatpush.bf16.msra.mxu0 %v10315_v49 }
 0xa82   : > { %6469 = vmatpush.bf16.msrb.mxu3 %v10310_v23 }
 0xa83   : > { %6689 = vmatpush.bf16.msrb.mxu2 %v10326_v34  ;;  %6703 = vmatpush.bf16.msra.mxu1 %v10334_v20 }
 0xa84   : > { %6487 = vmatpush.bf16.msra.mxu0 %v10314_v35 }
 0xa86   : > { %6470 = vmatpush.bf16.msrb.mxu3 %v10309_v32 }
 0xa87   : > { %6690 = vmatpush.bf16.msrb.mxu2 %v10325_v38  ;;  %6704 = vmatpush.bf16.msra.mxu1 %v10333_v43 }
 0xa88   : > { %6488 = vmatpush.bf16.msra.mxu0 %v10313_v41 }
 0xa8a   : > { %6471 = vmatpush.bf16.msrb.mxu3 %v10308_v36 }
 0xa8b   : > { %6691 = vmatpush.bf16.msrb.mxu2 %v10324_v40  ;;  %6705 = vmatpush.bf16.msra.mxu1 %v10332_v12 }
 0xa8e   : > { %6472 = vmatpush.bf16.msrb.mxu3 %v10307_v62 }
 0xa8f   : > { %6692 = vmatpush.bf16.msrb.mxu2 %v10323_v44  ;;  %6706 = vmatpush.bf16.msra.mxu1 %v10331_v50 }
 0xa92   : > { %6473 = vmatpush.bf16.msrb.mxu3 %v10306_v24 }
 0xa93   : > { %6693 = vmatpush.bf16.msrb.mxu2 %v10322_v47  ;;  %6707 = vmatpush.bf16.msra.mxu1 %v10330_v28 }
 0xa96   : > { %6474 = vmatpush.bf16.msrb.mxu3 %v10305_v46  ;;  %v10346_v46 = vld [vmem:[#allocation5 + $0x8] sm:$0xff] }
 0xa97   : > { %6694 = vmatpush.bf16.msrb.mxu2 %v10321_v15  ;;  %6708 = vmatpush.bf16.msra.mxu1 %v10329_v52 }
 0xaf7   : > { %v6013_v55 = vpop.f32.mrf.mxu1 }
 0xaf8   : > { %v6020_v27 = vmul.f32 %v6013_v55, %v12648_v29 }
 0xafc   : > { %v5985_v53 = vpop.f32.mrf.mxu3  ;;  %v5999_v13 = vpop.f32.mrf.mxu2 }
 0xafd   : > { %v6018_v17 = vmul.f32 %v5985_v53, %v12597_v48  ;;  %v6019_v3 = vmul.f32 %v5999_v13, %v12601_v59  ;;  %v10343_v48 = vld [vmem:[%s13007_s23 + $0x230] sm:$0xff]  ;;  %v10341_v59 = vld [vmem:[%s13007_s23 + $0x220] sm:$0xff] }
 0xaff   : > { %v6015_v58 = vpop.f32.mrf.mxu1 }
 0xb00   : > { %v6023_v25 = vmul.f32 %v6015_v58, %v12650_v30  ;;  %v10339_v30 = vld [vmem:[%s13007_s23 + $0x210] sm:$0xff] }
 0xb02   : > { %v6026_v63 = vpack.c.bf16 %v6023_v25, %v6020_v27 }
 0xb04   : > { %6255 = vmatmul.bf16.vlgmr.msra.gmra.mxu2 %v6026_v63  ;;  %v5987_v0 = vpop.f32.mrf.mxu3  ;;  %v6001_v2 = vpop.f32.mrf.mxu2 }
 0xb05   : > { %v6021_v4 = vmul.f32 %v5987_v0, %v12599_v45  ;;  %v6022_v6 = vmul.f32 %v6001_v2, %v12603_v60  ;;  %v10342_v45 = vld [vmem:[%s13007_s23 + $0x228] sm:$0xff]  ;;  %v10340_v60 = vld [vmem:[%s13007_s23 + $0x218] sm:$0xff] }
 0xb07   : > { %v6024_v7 = vpack.c.bf16 %v6021_v4, %v6018_v17  ;;  %v6025_v29 = vpack.c.bf16 %v6022_v6, %v6019_v3 }
 0xb09   : > { %6227 = vmatmul.bf16.vlgmr.msra.gmra.mxu3 %v6024_v7  ;;  %6241 = vmatmul.bf16.vlgmr.msrb.gmra.mxu0 %v6025_v29 }
 0xb0a   : > { %6461 = vmatmul.bf16.vlgmr.msrb.gmra.mxu1 %v6024_v7  ;;  %6715 = vmatpush.bf16.msra.mxu3 %v10344_v21 }
 0xb0e   : > { %6716 = vmatpush.bf16.msra.mxu3 %v10343_v48 }
 0xb12   : > { %6717 = vmatpush.bf16.msra.mxu3 %v10342_v45 }
 0xb14   : > { %6695 = vmatmul.bf16.vlgmr.msrb.gmra.mxu2 %v6024_v7 }
 0xb16   : > { %6718 = vmatpush.bf16.msra.mxu3 %v10341_v59 }
 0xb19   : > { %6475 = vmatmul.bf16.vlgmr.msrb.gmra.mxu3 %v6025_v29  ;;  %6489 = vmatmul.bf16.vlgmr.msra.gmra.mxu0 %v6026_v63 }
 0xb1a   : > { %6709 = vmatmul.bf16.vlgmr.msra.gmra.mxu1 %v6025_v29  ;;  %6719 = vmatpush.bf16.msra.mxu3 %v10340_v60 }
 0xb1e   : > { %6720 = vmatpush.bf16.msra.mxu3 %v10339_v30 }
 0xb22   : > { %6721 = vmatpush.bf16.msra.mxu3 %v10338_v5 }
 0xb26   : > { %6722 = vmatpush.bf16.msra.mxu3 %v10337_v8 }
 0xb29   : > { %6723 = vmatmul.bf16.vlgmr.msra.gmra.mxu3 %v6026_v63 }
 0xb86   : > { %v6242_v42 = vpop.f32.mrf.mxu0 }
 0xb87   : > { %v6256_v9 = vpop.f32.mrf.mxu2  ;;  %v6462_v16 = vpop.f32.mrf.mxu1 }
 0xb8c   : > { %v6228_v10 = vpop.f32.mrf.mxu3 }
 0xb8d   : > { %v6243_v11 = vadd.f32 %v6242_v42, %v6228_v10 }
 0xb8e   : > { %v6244_v1 = vpop.f32.mrf.mxu0 }
 0xb8f   : > { %v6258_v22 = vpop.f32.mrf.mxu2  ;;  %v6257_v23 = vadd.f32 %v6256_v9, %v6243_v11  ;;  %v6464_v32 = vpop.f32.mrf.mxu1 }
 0xb94   : > { %v6230_v14 = vpop.f32.mrf.mxu3 }
 0xb95   : > { %v6245_v18 = vadd.f32 %v6244_v1, %v6230_v14 }
 0xb97   : > { %v6259_v26 = vadd.f32 %v6258_v22, %v6245_v18  ;;  %v6696_v57 = vpop.f32.mrf.mxu2  ;;  %v6710_v37 = vpop.f32.mrf.mxu1 }
 0xb98   : > { %v6711_v20 = vadd.f32 %v6710_v37, %v6696_v57 }
 0xb99   : > { %v6731_v56 = vpack.c.bf16 %v6259_v26, %v6257_v23 }
 0xb9b   : > { %6747 = vmatpush.bf16.msrb.mxu0 %v6731_v56 }
 0xb9c   : > { %v6476_v54 = vpop.f32.mrf.mxu3 }
 0xb9d   : > { %v6477_v33 = vadd.f32 %v6476_v54, %v6462_v16 }
 0xb9e   : > { %9762 = vmatmul.msk.bf16.vlgmr.msrb.gmra.mxu0 %vm2575_vm6, %v10345_v31 }
 0xb9f   : > { %v6698_v62 = vpop.f32.mrf.mxu2  ;;  %v6712_v39 = vpop.f32.mrf.mxu1 }
 0xba0   : > { %v6713_v40 = vadd.f32 %v6712_v39, %v6698_v62 }
 0xba4   : > { %v6478_v34 = vpop.f32.mrf.mxu3 }
 0xba5   : > { %v6479_v36 = vadd.f32 %v6478_v34, %v6464_v32 }
 0xbac   : > { %v6724_v38 = vpop.f32.mrf.mxu3 }
 0xbad   : > { %v6725_v19 = vadd.f32 %v6724_v38, %v6711_v20 }
 0xbb4   : > { %v6726_v24 = vpop.f32.mrf.mxu3 }
 0xbb5   : > { %v6727_v43 = vadd.f32 %v6726_v24, %v6713_v40 }
 0xbb7   : > { %v6756_v44 = vpack.c.bf16 %v6727_v43, %v6725_v19 }
 0xbb9   : > { %6772 = vmatpush.bf16.msra.mxu2 %v6756_v44 }
 0xbbc   : > { %9767 = vmatmul.msk.bf16.vlgmr.msra.gmra.mxu2 %vm2575_vm6, %v10346_v46 }
 0xbbd   : > { %10842 = shalt.err (!%p10839_p8)
}
 0xbbe   : > { %s10949_s27 = smov 128   ;;  %s10950_s6 = smov 8   ;;  %v6490_v51 = vpop.f32.mrf.mxu0 }
 0xbbf   : > { %10389 = dma.vmem_to_hbm [thread:$0]  (%p11129_p5), %s6804_s30, 256, %s6806_s4, %s6786_s7, %s10949_s27, %s10949_s27, %s10950_s6   ;;  %v6491_v49 = vadd.f32 %v6490_v51, %v6477_v33 }
 0xbc0   : > { %s13086_s12 = sshll.u32 %s12659_s10, 4  ;;  %s13087_s0 = sld [smem:[#allocation54_spill]] }
 0xbc1   : > { %s1015_s13 = scalar_lea.vmem [#allocation20], %s13086_s12  ;;  %s6791_s4 = scalar_lea.sflag [#allocation21], %s12659_s10 }
 0xbc2   : > { %s6820_s8 = sshll.u32 %s1015_s13, 4  ;;  %s6821_s8 = int_to_ptr.vmem [resolvable:$true] %s6820_s8 }
 0xbc6   : > { %v6492_v12 = vpop.f32.mrf.mxu0  ;;  %s6819_s5 = scalar_lea.hbm %s13087_s0, %s10347_s14  ;;  %s10863_s28 = scalar_lea.hbm %s13087_s0, 32 }
 0xbc7   : > { %v6493_v52 = vadd.f32 %v6492_v12, %v6479_v36  ;;  %s6822_s30 = sshll.u32 %s6819_s5, 4  ;;  %s6823_s30 = int_to_ptr.hbm [resolvable:$true] %s6822_s30 }
 0xbc8   : > { %s10857_s7 = sshra.s32 %s6823_s30, 4  ;;  %s10858_s7 = int_to_ptr.hbm [resolvable:$true] %s10857_s7 }
 0xbc9   : > { %s10859_s9 = scalar_lea.hbm %s10858_s7, 16  ;;  %p10864_p12 = scmp.lt.s32.totalorder %s10858_s7, %s13087_s0 }
 0xbca   : > { %p10860_p9 = scmp.ne.s32.totalorder %s10858_s7, %s10859_s9  ;;  %p10865_p13 = scmp.lt.s32.totalorder %s10863_s28, %s10859_s9 }
 0xbcc   : > { %p10861_p10 = pnand %p10860_p9, %p11129_p5  ;;  %p10866_p0 = por %p10865_p13, %p10864_p12 }
 0xbce   : > { %p10862_p11 = pneg %p10861_p10 }
 0xbd0   : > { %p10867_p1 = pnand %p10866_p0, %p10862_p11 }
 0xc1b   : > { %v6749_v47 = vpop.f32.mrf.mxu0 }
 0xc1c   : > { %v6750_v50 = vadd.f32 %v6749_v47, %v6491_v49 }
 0xc23   : > { %v6751_v41 = vpop.f32.mrf.mxu0 }
 0xc24   : > { %v6752_v55 = vadd.f32 %v6751_v41, %v6493_v52 }
 0xc3f   : > { %v6774_v15 = vpop.f32.mrf.mxu2 }
 0xc40   : > { %v6779_v35 = vadd.f32 %v6774_v15, %v6750_v50 }
 0xc42   : > { %v6781_v28 = vadd.f32 %v12662_v61, %v6779_v35 }
 0xc44   : > { %6783 = vst.msk [vmem:[%s1015_s13] sm:$0xff] %vm2575_vm6, %v6781_v28 }
 0xc47   : > { %v6776_v53 = vpop.f32.mrf.mxu2 }
 0xc48   : > { %v6780_v13 = vadd.f32 %v6776_v53, %v6752_v55 }
 0xc4a   : > { %v6782_v58 = vadd.f32 %v12662_v61, %v6780_v13 }
 0xc4c   : > { %6784 = vst.msk [vmem:[%s1015_s13 + $0x8] sm:$0xff] %vm2575_vm6, %v6782_v58 }
 0xc4d   : > { %10870 = shalt.err (!%p10867_p1)
}
 0xc4e   : > { %10390 = dma.vmem_to_hbm [thread:$0]  (%p11129_p5), %s6821_s8, 256, %s6823_s30, %s6791_s4, %s10949_s27, %s10949_s27, %s10950_s6  }
 0xc4f PF: > { %s13088_s10 = sld [smem:[#allocation33_spill]] }
 0xc50   : > { %s13089_s13 = sld [smem:[#allocation30_spill]] }
 0xc55   : > { %p10451_p2 = scmp.ge.s32.totalorder %s13088_s10, 2 }
 0xc56   : > { %s6837_s5 = sand.u32 1, %s13089_s13  }
 0xc57   : > { %p10425_p3 = pnand %p10451_p2, %p11133_p6  ;;  %s6838_s7 = scalar_lea.sflag [#allocation4], %s6837_s5 }
 0xc59   : > { %p10426_p4 = pneg %p10425_p3 }
 0xc5b   : > { %10912 = dma.done.wait (%p10426_p4), %s6838_s7, 256  }
 0xc5c   : > { %10914 = vsyncadd (%p10426_p4), %s6838_s7, 4294967040  ;;  %s6848_s9 = scalar_lea.sflag [#allocation21], %s6837_s5 }
 0xc5d   : > { %10916 = dma.done.wait (%p10426_p4), %s6848_s9, 256  }
 0xc5e   : > { %10918 = vsyncadd (%p10426_p4), %s6848_s9, 4294967040  ;;  %s13091_s30 = sld [smem:[#allocation34_spill]] }
 0xc5f   : > { %s13092_s7 = sld [smem:[#allocation31_spill]] }
 0xc60   : > { %s13093_s4 = sld [smem:[#allocation32_spill]] }
 0xc61   : > { %s13094_s8 = sld [smem:[#allocation35_spill]] }
 0xc64   : > { %p47_p5 = scmp.ge.s32.totalorder %s13091_s30, 4  }
 0xc66   :  { %49 = sbr.rel (!%p47_p5) target bundleno = 29 (0x1d), region = 242 }
 0xc6b   :  { %6854 = vsyncpa [#allocation3], 1 }
 0xc6c   :  { %6856 = vsyncpa [#allocation3 + $0x1], 1 }
 0xc6d   :  { %6857 = vsyncpa [#allocation6], 1 }
 0xc6e   :  { %6858 = vsyncpa [#allocation9], 1 }
 0xc6f   :  { %6859 = vsyncpa [#allocation12], 1 }
 0xc70   :  { %6860 = vsyncpa [#allocation15], 1 }
 0xc71   :  { %6861 = vsyncpa [#allocation18], 1 }
 0xc72   :  { %6862 = vsyncpa [#allocation4], 1 }
 0xc73   :  { %6864 = vsyncpa [#allocation4 + $0x1], 1 }
 0xc74   :  { %6865 = vsyncpa [#allocation21], 1 }
 0xc75   :  { %6867 = vsyncpa [#allocation21 + $0x1], 1 }

</bundles_post_ra>
